<compile_context>
chip_gen: v7x
topology: tpu7x:2x2x1
jax: 0.10.0
libtpu: 0.0.40
codegen_flags: <defaults>
</compile_context>

<pallas_src>
import jax
import jax.numpy as jnp
from jax.experimental import pallas as pl
from jax.experimental.pallas import tpu as pltpu

NUM_CLASSES = 10
FEAT_DIM = 2048        # ResNet-50 penultimate feature width (fc1 input)
HID1 = 1000
HID1_PAD = 1024        # 1000 padded to a lane-aligned multiple of 128
HID2 = 256
OUT_PAD = 128          # logits padded to one full lane width


def classifier_kernel(feat_ref, w1_ref, b1_ref, w2_ref, b2_ref, w3_ref, b3_ref,
                      o_ref):
    # feat_ref: (b_tile, 2048) f32; weights bf16; biases f32.
    feat = feat_ref[...]

    # fc1 -> ReLU   (bf16 x bf16 on the MXU, f32 accumulate, f32 bias add)
    h1 = jnp.dot(feat.astype(jnp.bfloat16), w1_ref[...],
                 preferred_element_type=jnp.float32) + b1_ref[...]
    h1 = jnp.maximum(h1, 0.0)

    # fc2 -> ReLU
    h2 = jnp.dot(h1.astype(jnp.bfloat16), w2_ref[...],
                 preferred_element_type=jnp.float32) + b2_ref[...]
    h2 = jnp.maximum(h2, 0.0)

    # fc3 (padded to 128 lane-dense output columns; sliced outside)
    o_ref[...] = jnp.dot(h2.astype(jnp.bfloat16), w3_ref[...],
                         preferred_element_type=jnp.float32) + b3_ref[...]


def finetune_resnet_forward(x_nchw, params, num_classes=NUM_CLASSES):
    """x_nchw: (B, 2048, H, W) f32 pre-pool feature map. Returns (B, num_classes) f32."""
    w1, b1, w2, b2, w3, b3 = params
    B, C, H, W = x_nchw.shape
    assert C == FEAT_DIM

    # features tail: AdaptiveAvgPool2d((1,1)) + flatten, done in the wrapper so the
    # kernel reads B*2048*4 bytes instead of B*HW*2048*4 and no transpose copy exists.
    feat = jnp.mean(x_nchw, axis=(2, 3))                     # (B, 2048) f32

    # batch tiling: one block if B <= 256, else 256-row tiles (pad B up as needed).
    b_tile = min(B, 256)
    num_b = pl.cdiv(B, b_tile)
    b_padded = num_b * b_tile
    if b_padded != B:
        feat = jnp.pad(feat, ((0, b_padded - B), (0, 0)))

    const_map = lambda i: (0, 0)     # weights/biases: resident across the B grid
    out = pl.pallas_call(
        classifier_kernel,
        out_shape=jax.ShapeDtypeStruct((b_padded, OUT_PAD), jnp.float32),
        grid=(num_b,),
        in_specs=[
            pl.BlockSpec((b_tile, FEAT_DIM), lambda i: (i, 0)),   # feat: blocked over B
            pl.BlockSpec((FEAT_DIM, HID1_PAD), const_map),        # w1  (bf16)
            pl.BlockSpec((1, HID1_PAD), const_map),               # b1  (f32)
            pl.BlockSpec((HID1_PAD, HID2), const_map),            # w2  (bf16)
            pl.BlockSpec((1, HID2), const_map),                   # b2  (f32)
            pl.BlockSpec((HID2, OUT_PAD), const_map),             # w3  (bf16)
            pl.BlockSpec((1, OUT_PAD), const_map),                # b3  (f32)
        ],
        out_specs=pl.BlockSpec((b_tile, OUT_PAD), lambda i: (i, 0)),
        compiler_params=pltpu.CompilerParams(
            dimension_semantics=("parallel",),
            vmem_limit_bytes=32 << 20,
        ),
    )(feat, w1, b1, w2, b2, w3, b3)

    return out[:B, :num_classes]


def init_params(key, num_classes=NUM_CLASSES):
    """Deterministic synthetic weights, stored transposed vs nn.Linear.weight.

    w1/w2/w3 are zero-padded to lane-aligned shapes and cast to bf16; biases stay f32.
    """
    k1, k2, k3, k4, k5, k6 = jax.random.split(key, 6)
    s1 = 1.0 / jnp.sqrt(FEAT_DIM)
    s2 = 1.0 / jnp.sqrt(HID1)
    s3 = 1.0 / jnp.sqrt(HID2)

    w1 = jax.random.uniform(k1, (FEAT_DIM, HID1), jnp.float32, -s1, s1)
    b1 = jax.random.uniform(k2, (1, HID1), jnp.float32, -s1, s1)
    w2 = jax.random.uniform(k3, (HID1, HID2), jnp.float32, -s2, s2)
    b2 = jax.random.uniform(k4, (1, HID2), jnp.float32, -s2, s2)
    w3 = jax.random.uniform(k5, (HID2, num_classes), jnp.float32, -s3, s3)
    b3 = jax.random.uniform(k6, (1, num_classes), jnp.float32, -s3, s3)

    # zero-pad to aligned shapes (exact no-op through ReLU / sliced logits)
    w1 = jnp.pad(w1, ((0, 0), (0, HID1_PAD - HID1)))
    b1 = jnp.pad(b1, ((0, 0), (0, HID1_PAD - HID1)))
    w2 = jnp.pad(w2, ((0, HID1_PAD - HID1), (0, 0)))
    w3 = jnp.pad(w3, ((0, 0), (0, OUT_PAD - num_classes)))
    b3 = jnp.pad(b3, ((0, 0), (0, OUT_PAD - num_classes)))

    # bf16 weights (half the HBM traffic, MXU-native); biases remain f32.
    return (w1.astype(jnp.bfloat16), b1,
            w2.astype(jnp.bfloat16), b2,
            w3.astype(jnp.bfloat16), b3)


def reference_forward(x_nchw, params, num_classes=NUM_CLASSES):
    """Pure-JAX reference: avgpool + flatten + fc1/relu/fc2/relu/fc3 in f32."""
    w1, b1, w2, b2, w3, b3 = params
    feat = jnp.mean(x_nchw, axis=(2, 3))
    h1 = jnp.maximum(feat @ w1.astype(jnp.float32) + b1, 0.0)
    h2 = jnp.maximum(h1 @ w2.astype(jnp.float32) + b2, 0.0)
    out = h2 @ w3.astype(jnp.float32) + b3
    return out[:, :num_classes]


if __name__ == "__main__":
    key = jax.random.PRNGKey(0)
    kx, kp = jax.random.split(key)

    B, H, W = 2, 4, 4
    x = jax.random.normal(kx, (B, FEAT_DIM, H, W), jnp.float32)  # NCHW feature map
    params = init_params(kp, NUM_CLASSES)

    out = jax.block_until_ready(finetune_resnet_forward(x, params))
    ref = jax.block_until_ready(reference_forward(x, params))

    assert out.shape == (B, NUM_CLASSES), out.shape
    # bf16 weight storage + bf16 MXU operands vs f32 reference -> loosened tolerance
    assert jnp.allclose(out, ref, rtol=2e-2, atol=2e-2), (
        float(jnp.max(jnp.abs(out - ref))))

    print("KERNEL_OK")
</pallas_src>

<mosaic_0001>
module attributes {stable_mosaic.version = 11 : i64} {
  func.func @classifier_kernel(%arg0: i32, %arg1: memref<2x2048xf32, #tpu.memory_space<vmem>>, %arg2: memref<2048x1024xbf16, #tpu.memory_space<vmem>>, %arg3: memref<1x1024xf32, #tpu.memory_space<vmem>>, %arg4: memref<1024x256xbf16, #tpu.memory_space<vmem>>, %arg5: memref<1x256xf32, #tpu.memory_space<vmem>>, %arg6: memref<256x128xbf16, #tpu.memory_space<vmem>>, %arg7: memref<1x128xf32, #tpu.memory_space<vmem>>, %arg8: memref<2x128xf32, #tpu.memory_space<vmem>>) attributes {dimension_semantics = [#tpu.dimension_semantics<parallel>], iteration_bounds = array<i64: 1>, scalar_prefetch = 0 : i64, scratch_operands = 0 : i64, tpu.core_type = #tpu.core_type<tc>, window_params = [{transform_indices = @transform_0, window_bounds = array<i64: 2, 2048>}, {pipeline_mode = #tpu.pipeline_mode<synchronous>, transform_indices = @transform_1, window_bounds = array<i64: 2048, 1024>}, {pipeline_mode = #tpu.pipeline_mode<synchronous>, transform_indices = @transform_2, window_bounds = array<i64: 1, 1024>}, {pipeline_mode = #tpu.pipeline_mode<synchronous>, transform_indices = @transform_3, window_bounds = array<i64: 1024, 256>}, {pipeline_mode = #tpu.pipeline_mode<synchronous>, transform_indices = @transform_4, window_bounds = array<i64: 1, 256>}, {pipeline_mode = #tpu.pipeline_mode<synchronous>, transform_indices = @transform_5, window_bounds = array<i64: 256, 128>}, {pipeline_mode = #tpu.pipeline_mode<synchronous>, transform_indices = @transform_6, window_bounds = array<i64: 1, 128>}, {transform_indices = @transform_7, window_bounds = array<i64: 2, 128>}]} {
    %c0 = arith.constant 0 : index
    %c0_0 = arith.constant 0 : index
    %0 = vector.load %arg1[%c0, %c0_0] : memref<2x2048xf32, #tpu.memory_space<vmem>>, vector<2x2048xf32>
    %1 = arith.truncf %0 : vector<2x2048xf32> to vector<2x2048xbf16>
    %c0_1 = arith.constant 0 : index
    %c0_2 = arith.constant 0 : index
    %2 = vector.load %arg2[%c0_1, %c0_2] : memref<2048x1024xbf16, #tpu.memory_space<vmem>>, vector<2048x1024xbf16>
    %cst = arith.constant dense<0.000000e+00> : vector<2x1024xf32>
    %3 = tpu.matmul %1, %2, %cst {dimension_numbers = #tpu.dot_dimension_numbers<[1], [0], [0], [1], [0, 0, 1, 1], [], []>} : vector<2x2048xbf16>, vector<2048x1024xbf16>, vector<2x1024xf32> -> vector<2x1024xf32>
    %c0_3 = arith.constant 0 : index
    %c0_4 = arith.constant 0 : index
    %4 = vector.load %arg3[%c0_3, %c0_4] : memref<1x1024xf32, #tpu.memory_space<vmem>>, vector<1x1024xf32>
    %5 = vector.broadcast %4 : vector<1x1024xf32> to vector<2x1024xf32>
    %6 = arith.addf %3, %5 : vector<2x1024xf32>
    %cst_5 = arith.constant 0.000000e+00 : f32
    %7 = vector.broadcast %cst_5 : f32 to vector<2x1024xf32>
    %8 = arith.maximumf %6, %7 : vector<2x1024xf32>
    %9 = arith.truncf %8 : vector<2x1024xf32> to vector<2x1024xbf16>
    %c0_6 = arith.constant 0 : index
    %c0_7 = arith.constant 0 : index
    %10 = vector.load %arg4[%c0_6, %c0_7] : memref<1024x256xbf16, #tpu.memory_space<vmem>>, vector<1024x256xbf16>
    %cst_8 = arith.constant dense<0.000000e+00> : vector<2x256xf32>
    %11 = tpu.matmul %9, %10, %cst_8 {dimension_numbers = #tpu.dot_dimension_numbers<[1], [0], [0], [1], [0, 0, 1, 1], [], []>} : vector<2x1024xbf16>, vector<1024x256xbf16>, vector<2x256xf32> -> vector<2x256xf32>
    %c0_9 = arith.constant 0 : index
    %c0_10 = arith.constant 0 : index
    %12 = vector.load %arg5[%c0_9, %c0_10] : memref<1x256xf32, #tpu.memory_space<vmem>>, vector<1x256xf32>
    %13 = vector.broadcast %12 : vector<1x256xf32> to vector<2x256xf32>
    %14 = arith.addf %11, %13 : vector<2x256xf32>
    %cst_11 = arith.constant 0.000000e+00 : f32
    %15 = vector.broadcast %cst_11 : f32 to vector<2x256xf32>
    %16 = arith.maximumf %14, %15 : vector<2x256xf32>
    %17 = arith.truncf %16 : vector<2x256xf32> to vector<2x256xbf16>
    %c0_12 = arith.constant 0 : index
    %c0_13 = arith.constant 0 : index
    %18 = vector.load %arg6[%c0_12, %c0_13] : memref<256x128xbf16, #tpu.memory_space<vmem>>, vector<256x128xbf16>
    %cst_14 = arith.constant dense<0.000000e+00> : vector<2x128xf32>
    %19 = tpu.matmul %17, %18, %cst_14 {dimension_numbers = #tpu.dot_dimension_numbers<[1], [0], [0], [1], [0, 0, 1, 1], [], []>} : vector<2x256xbf16>, vector<256x128xbf16>, vector<2x128xf32> -> vector<2x128xf32>
    %c0_15 = arith.constant 0 : index
    %c0_16 = arith.constant 0 : index
    %20 = vector.load %arg7[%c0_15, %c0_16] : memref<1x128xf32, #tpu.memory_space<vmem>>, vector<1x128xf32>
    %21 = vector.broadcast %20 : vector<1x128xf32> to vector<2x128xf32>
    %22 = arith.addf %19, %21 : vector<2x128xf32>
    %c0_17 = arith.constant 0 : index
    %c0_18 = arith.constant 0 : index
    %23 = vector.load %arg8[%c0_17, %c0_18] : memref<2x128xf32, #tpu.memory_space<vmem>>, vector<2x128xf32>
    tpu.vector_store %arg8[%c0_17, %c0_18], %22 {strides = array<i32>} : memref<2x128xf32, #tpu.memory_space<vmem>>, vector<2x128xf32>,
    return
  }
  func.func @transform_0(%arg0: i32) -> (i32, i32) {
    %c0_i32 = arith.constant 0 : i32
    %c0_i32_0 = arith.constant 0 : i32
    return %arg0, %c0_i32 : i32, i32
  }
  func.func @transform_1(%arg0: i32) -> (i32, i32) {
    %c0_i32 = arith.constant 0 : i32
    %c0_i32_0 = arith.constant 0 : i32
    %c0_i32_1 = arith.constant 0 : i32
    return %c0_i32, %c0_i32_0 : i32, i32
  }
  func.func @transform_2(%arg0: i32) -> (i32, i32) {
    %c0_i32 = arith.constant 0 : i32
    %c0_i32_0 = arith.constant 0 : i32
    %c0_i32_1 = arith.constant 0 : i32
    return %c0_i32, %c0_i32_0 : i32, i32
  }
  func.func @transform_3(%arg0: i32) -> (i32, i32) {
    %c0_i32 = arith.constant 0 : i32
    %c0_i32_0 = arith.constant 0 : i32
    %c0_i32_1 = arith.constant 0 : i32
    return %c0_i32, %c0_i32_0 : i32, i32
  }
  func.func @transform_4(%arg0: i32) -> (i32, i32) {
    %c0_i32 = arith.constant 0 : i32
    %c0_i32_0 = arith.constant 0 : i32
    %c0_i32_1 = arith.constant 0 : i32
    return %c0_i32, %c0_i32_0 : i32, i32
  }
  func.func @transform_5(%arg0: i32) -> (i32, i32) {
    %c0_i32 = arith.constant 0 : i32
    %c0_i32_0 = arith.constant 0 : i32
    %c0_i32_1 = arith.constant 0 : i32
    return %c0_i32, %c0_i32_0 : i32, i32
  }
  func.func @transform_6(%arg0: i32) -> (i32, i32) {
    %c0_i32 = arith.constant 0 : i32
    %c0_i32_0 = arith.constant 0 : i32
    %c0_i32_1 = arith.constant 0 : i32
    return %c0_i32, %c0_i32_0 : i32, i32
  }
  func.func @transform_7(%arg0: i32) -> (i32, i32) {
    %c0_i32 = arith.constant 0 : i32
    %c0_i32_0 = arith.constant 0 : i32
    return %arg0, %c0_i32 : i32, i32
  }
}

</mosaic_0001>

<bundles_post_ra>
// kernel: tpu_custom_call.1
= control target key start
LH: loop header
LB: loop body
LE: loop exit
PB: predicated region body
PF: predicated region fallthrough
CT: control target
= control target key end

     0   :  { %12 = vsyncpa [#allocation3], 0  ;;  %s10985_s0 = inlined_call_operand.hbm [shape: f32[2,2048], index: 0, kind: input, shape index: {}]   ;;  %s10986_s1 = inlined_call_operand.hbm [shape: bf16[2048,1024], index: 1, kind: input, shape index: {}]   ;;  %s10987_s2 = inlined_call_operand.hbm [shape: f32[1,1024], index: 2, kind: input, shape index: {}]   ;;  %s10988_s3 = inlined_call_operand.hbm [shape: bf16[1024,256], index: 3, kind: input, shape index: {}]   ;;  %s10989_s4 = inlined_call_operand.hbm [shape: f32[1,256], index: 4, kind: input, shape index: {}]   ;;  %s10990_s5 = inlined_call_operand.hbm [shape: bf16[256,128], index: 5, kind: input, shape index: {}]   ;;  %s10991_s6 = inlined_call_operand.hbm [shape: f32[1,128], index: 6, kind: input, shape index: {}]   ;;  %s10992_s7 = inlined_call_operand.hbm [shape: f32[2,128], index: 7, kind: output, shape index: {}]  }
   0x1   :  { %13 = vsyncpa [#allocation6], 0 }
   0x2   :  { %14 = vsyncpa [#allocation9], 0 }
   0x3   :  { %15 = vsyncpa [#allocation12], 0 }
   0x4   :  { %16 = vsyncpa [#allocation4], 0  ;;  %s10617_s24 = smov [#allocation5]   ;;  %s10431_s28 = scalar_lea.hbm %s10986_s1, 131072 }
   0x5   :  { %s32_s25 = sshll.u32 %s10617_s24, 4  ;;  %p10432_p0 = scmp.ne.s32.totalorder %s10986_s1, %s10431_s28  ;;  %s33_s25 = int_to_ptr.vmem [resolvable:$true] %s32_s25 }
   0x6   :  { %p10435_p1 = scmp.lt.u32.totalorder %s10431_s28, %s10986_s1 }
   0x8   :  { %p10437_p2 = pnand %p10435_p1, %p10432_p0 }
   0xa   :  { %10440 = shalt.err (!%p10437_p2)
}
   0xb   :  { %s10441_s10 = scalar_lea.vmem %s33_s25, 131072  ;;  %p10446_p4 = scmp.lt.s32.totalorder %s33_s25, %s33_s25 }
   0xc   :  { %p10442_p3 = scmp.ne.s32.totalorder %s33_s25, %s10441_s10  ;;  %p10447_p5 = scmp.lt.s32.totalorder %s10441_s10, %s10441_s10 }
   0xe   :  { %p10448_p6 = por %p10447_p5, %p10446_p4 }
  0x10   :  { %p10449_p7 = pnand %p10448_p6, %p10442_p3 }
  0x12   :  { %10452 = shalt.err (!%p10449_p7)
}
  0x13   :  { %s10618_s11 = smov 512   ;;  %s10619_s12 = smov 32  }
  0x14   :  { %38 = dma.hbm_to_vmem [thread:$0]  %s10986_s1, 131072, %s33_s25, [#allocation6], %s10618_s11, %s10618_s11, %s10619_s12  }
  0x15   :  { %s10620_s15 = smov [#allocation8]   ;;  %s10453_s19 = scalar_lea.hbm %s10988_s3, 16384 }
  0x16   :  { %s54_s16 = sshll.u32 %s10620_s15, 4  ;;  %p10454_p8 = scmp.ne.s32.totalorder %s10988_s3, %s10453_s19  ;;  %s55_s16 = int_to_ptr.vmem [resolvable:$true] %s54_s16 }
  0x17   :  { %p10457_p9 = scmp.lt.u32.totalorder %s10453_s19, %s10988_s3 }
  0x19   :  { %p10459_p10 = pnand %p10457_p9, %p10454_p8 }
  0x1b   :  { %10462 = shalt.err (!%p10459_p10)
}
  0x1c   :  { %s10463_s24 = scalar_lea.vmem %s55_s16, 16384  ;;  %p10468_p12 = scmp.lt.s32.totalorder %s55_s16, %s55_s16 }
  0x1d   :  { %p10464_p11 = scmp.ne.s32.totalorder %s55_s16, %s10463_s24  ;;  %p10469_p13 = scmp.lt.s32.totalorder %s10463_s24, %s10463_s24 }
  0x1f   :  { %p10470_p0 = por %p10469_p13, %p10468_p12 }
  0x21   :  { %p10471_p1 = pnand %p10470_p0, %p10464_p11 }
  0x23   :  { %10474 = shalt.err (!%p10471_p1)
}
  0x24   :  { %s10621_s1 = smov 128   ;;  %s10622_s25 = smov 8  }
  0x25   :  { %60 = dma.hbm_to_vmem [thread:$0]  %s10988_s3, 16384, %s55_s16, [#allocation9], %s10621_s1, %s10621_s1, %s10622_s25  }
  0x26   :  { %s10623_s28 = smov [#allocation11]   ;;  %s10475_s9 = scalar_lea.hbm %s10990_s5, 2048 }
  0x27   :  { %s76_s29 = sshll.u32 %s10623_s28, 4  ;;  %p10476_p2 = scmp.ne.s32.totalorder %s10990_s5, %s10475_s9  ;;  %s77_s29 = int_to_ptr.vmem [resolvable:$true] %s76_s29 }
  0x28   :  { %p10479_p3 = scmp.lt.u32.totalorder %s10475_s9, %s10990_s5 }
  0x2a   :  { %p10481_p4 = pnand %p10479_p3, %p10476_p2 }
  0x2c   :  { %10484 = shalt.err (!%p10481_p4)
}
  0x2d   :  { %s10485_s14 = scalar_lea.vmem %s77_s29, 2048  ;;  %p10490_p6 = scmp.lt.s32.totalorder %s77_s29, %s77_s29 }
  0x2e   :  { %p10486_p5 = scmp.ne.s32.totalorder %s77_s29, %s10485_s14  ;;  %p10491_p7 = scmp.lt.s32.totalorder %s10485_s14, %s10485_s14 }
  0x30   :  { %p10492_p8 = por %p10491_p7, %p10490_p6 }
  0x32   :  { %p10493_p9 = pnand %p10492_p8, %p10486_p5 }
  0x34   :  { %10496 = shalt.err (!%p10493_p9)
}
  0x35   :  { %s10624_s3 = smov 64   ;;  %s10625_s15 = smov 4  }
  0x36   :  { %82 = dma.hbm_to_vmem [thread:$0]  %s10990_s5, 2048, %s77_s29, [#allocation12], %s10624_s3, %s10624_s3, %s10625_s15  }
  0x37   :  { %s10626_s18 = smov [#allocation2]   ;;  %s10627_s20 = smov [#allocation7]  }
  0x38   :  { %s23_s19 = sshll.u32 %s10626_s18, 4  ;;  %s45_s21 = sshll.u32 %s10627_s20, 4  ;;  %s24_s19 = int_to_ptr.vmem [resolvable:$true] %s23_s19  ;;  %s46_s21 = int_to_ptr.vmem [resolvable:$true] %s45_s21 }
  0x39   :  { %s10497_s24 = scalar_lea.hbm %s10985_s0, 512 }
  0x3a   :  { %p10498_p10 = scmp.ne.s32.totalorder %s10985_s0, %s10497_s24  ;;  %p10501_p11 = scmp.lt.u32.totalorder %s10497_s24, %s10985_s0 }
  0x3c   :  { %p10503_p12 = pnand %p10501_p11, %p10498_p10 }
  0x3e   :  { %10506 = shalt.err (!%p10503_p12)
}
  0x3f   :  { %s10507_s5 = scalar_lea.vmem %s24_s19, 512  ;;  %p10512_p0 = scmp.lt.s32.totalorder %s24_s19, %s24_s19 }
  0x40   :  { %p10508_p13 = scmp.ne.s32.totalorder %s24_s19, %s10507_s5  ;;  %p10513_p1 = scmp.lt.s32.totalorder %s10507_s5, %s10507_s5 }
  0x42   :  { %p10514_p2 = por %p10513_p1, %p10512_p0 }
  0x44   :  { %p10515_p3 = pnand %p10514_p2, %p10508_p13 }
  0x46   :  { %10518 = shalt.err (!%p10515_p3)
}
  0x47   :  { %26 = dma.hbm_to_vmem [thread:$0]  %s10985_s0, 512, %s24_s19, [#allocation3]  }
  0x48   :  { %s10519_s9 = scalar_lea.hbm %s10987_s2, 128 }
  0x49   :  { %p10520_p4 = scmp.ne.s32.totalorder %s10987_s2, %s10519_s9  ;;  %p10523_p5 = scmp.lt.u32.totalorder %s10519_s9, %s10987_s2 }
  0x4b   :  { %p10525_p6 = pnand %p10523_p5, %p10520_p4 }
  0x4d   :  { %10528 = shalt.err (!%p10525_p6)
}
  0x4e   :  { %s10529_s14 = scalar_lea.vmem %s46_s21, 128  ;;  %p10534_p8 = scmp.lt.s32.totalorder %s46_s21, %s46_s21 }
  0x4f   :  { %p10530_p7 = scmp.ne.s32.totalorder %s46_s21, %s10529_s14  ;;  %p10535_p9 = scmp.lt.s32.totalorder %s10529_s14, %s10529_s14 }
  0x51   :  { %p10536_p10 = por %p10535_p9, %p10534_p8 }
  0x53   :  { %p10537_p11 = pnand %p10536_p10, %p10530_p7 }
  0x55   :  { %10540 = shalt.err (!%p10537_p11)
}
  0x56   :  { %48 = dma.hbm_to_vmem [thread:$0]  %s10987_s2, 128, %s46_s21, [#allocation6]  }
  0x57   :  { %s10628_s15 = smov [#allocation10]   ;;  %s10629_s17 = smov [#allocation13]  }
  0x58   :  { %s67_s16 = sshll.u32 %s10628_s15, 4  ;;  %s89_s18 = sshll.u32 %s10629_s17, 4  ;;  %s68_s16 = int_to_ptr.vmem [resolvable:$true] %s67_s16  ;;  %s90_s18 = int_to_ptr.vmem [resolvable:$true] %s89_s18 }
  0x59   :  { %s10541_s22 = scalar_lea.hbm %s10989_s4, 32 }
  0x5a   :  { %p10542_p12 = scmp.ne.s32.totalorder %s10989_s4, %s10541_s22  ;;  %p10545_p13 = scmp.lt.u32.totalorder %s10541_s22, %s10989_s4 }
  0x5c   :  { %p10547_p0 = pnand %p10545_p13, %p10542_p12 }
  0x5e   :  { %10550 = shalt.err (!%p10547_p0)
}
  0x5f   :  { %s10551_s2 = scalar_lea.vmem %s68_s16, 32  ;;  %p10556_p2 = scmp.lt.s32.totalorder %s68_s16, %s68_s16 }
  0x60   :  { %p10552_p1 = scmp.ne.s32.totalorder %s68_s16, %s10551_s2  ;;  %p10557_p3 = scmp.lt.s32.totalorder %s10551_s2, %s10551_s2 }
  0x62   :  { %p10558_p4 = por %p10557_p3, %p10556_p2 }
  0x64   :  { %p10559_p5 = pnand %p10558_p4, %p10552_p1 }
  0x66   :  { %10562 = shalt.err (!%p10559_p5)
}
  0x67   :  { %70 = dma.hbm_to_vmem [thread:$0]  %s10989_s4, 32, %s68_s16, [#allocation9]  }
  0x68   :  { %s10563_s28 = scalar_lea.hbm %s10991_s6, 16 }
  0x69   :  { %p10564_p6 = scmp.ne.s32.totalorder %s10991_s6, %s10563_s28  ;;  %p10567_p7 = scmp.lt.u32.totalorder %s10563_s28, %s10991_s6 }
  0x6b   :  { %p10569_p8 = pnand %p10567_p7, %p10564_p6 }
  0x6d   :  { %10572 = shalt.err (!%p10569_p8)
}
  0x6e   :  { %s10573_s10 = scalar_lea.vmem %s90_s18, 16  ;;  %s10577_s11 = scalar_lea.vmem %s90_s18, 32 }
  0x6f   :  { %p10574_p9 = scmp.ne.s32.totalorder %s90_s18, %s10573_s10  ;;  %p10578_p10 = scmp.lt.s32.totalorder %s90_s18, %s90_s18 }
  0x70   :  { %p10579_p11 = scmp.lt.s32.totalorder %s10577_s11, %s10573_s10 }
  0x72   :  { %p10580_p12 = por %p10579_p11, %p10578_p10 }
  0x74   :  { %p10581_p13 = pnand %p10580_p12, %p10574_p9 }
  0x76   :  { %10584 = shalt.err (!%p10581_p13)
}
  0x77   :  { %92 = dma.hbm_to_vmem [thread:$0]  %s10991_s6, 16, %s90_s18, [#allocation12]  }
  0x78   :  { %10607 = dma.done.wait [#allocation3], 512  }
  0x79   :  { %10608 = vsyncadd [#allocation3], 4294966784 }
  0x7a   :  { %10609 = dma.done.wait [#allocation6], 131200  }
  0x7b   :  { %10610 = vsyncadd [#allocation6], 4294836096 }
  0x7c   :  { %10611 = dma.done.wait [#allocation9], 16416  }
  0x7d   :  { %10612 = vsyncadd [#allocation9], 4294950880 }
  0x7e   :  { %10613 = dma.done.wait [#allocation12], 2064  }
  0x7f   :  { %10614 = vsyncadd [#allocation12], 4294965232  ;;  %v223_v0 = vld [vmem:[#allocation5] sm:$0xff]  ;;  %v10630_v32 = vmov 1983009808   ;;  %v127_v34 = vlaneseq  ;;  %s10631_s6 = smov [#allocation14]  }
  0x80   :  { %v227_v1 = vld [vmem:[#allocation5 + $0x20] sm:$0xff]  ;;  %v125_v33 = vunpack.c.l.s4 %v10630_v32  ;;  %s8867_s13 = sshll.u32 %s10631_s6, 4  ;;  %s8868_s13 = int_to_ptr.vmem [resolvable:$true] %s8867_s13 }
  0x81   :  { %v479_v2 = vld [vmem:[#allocation5 + $0x800] sm:$0xff]  ;;  %v8880_v3 = vcombine.high %v223_v0, %v227_v1  ;;  %v8879_v5 = vcombine.low %v223_v0, %v227_v1  ;;  %v10756_v44 = vshrl.u32 %v127_v34, 7  ;;  %v10767_v0 = vld [vmem:[#allocation2 + $0x8] sm:$0xff]  ;;  %s10585_s14 = scalar_lea.vmem %s8868_s13, 32  ;;  %p10590_p1 = scmp.lt.s32.totalorder %s8868_s13, %s8868_s13 }
  0x82   :  { %v483_v4 = vld [vmem:[#allocation5 + $0x820] sm:$0xff]  ;;  %v126_v43 = vunpack.c.0.s8 %v125_v33  ;;  %p10586_p0 = scmp.ne.s32.totalorder %s8868_s13, %s10585_s14  ;;  %p10591_p2 = scmp.lt.s32.totalorder %s10585_s14, %s10585_s14 }
  0x83   :  { %v231_v6 = vld [vmem:[#allocation5 + $0x40] sm:$0xff]  ;;  %v9136_v8 = vcombine.high %v479_v2, %v483_v4  ;;  %v9135_v9 = vcombine.low %v479_v2, %v483_v4  ;;  %6409 = vmatprep.subr.bf16.mxu1 %v8880_v3 }
  0x84   :  { %v235_v7 = vld [vmem:[#allocation5 + $0x60] sm:$0xff]  ;;  %6410 = vmatpush1.bf16.msra.mxu1 %v8879_v5  ;;  %v10759_v53 = vsub.s32 %v126_v43, %v10756_v44  ;;  %p10592_p3 = por %p10591_p2, %p10590_p1 }
  0x85   :  { %v8888_v10 = vcombine.high %v231_v6, %v235_v7  ;;  %v487_v11 = vld [vmem:[#allocation5 + $0x840] sm:$0xff]  ;;  %6491 = vmatprep.subr.bf16.mxu0 %v9136_v8  ;;  %v8887_v18 = vcombine.low %v231_v6, %v235_v7 }
  0x86   :  { %v491_v12 = vld [vmem:[#allocation5 + $0x860] sm:$0xff]  ;;  %6492 = vmatpush1.bf16.msra.mxu0 %v9135_v9  ;;  %v10771_v3 = vrot.slane %v10767_v0, %v10759_v53  ;;  %p10593_p4 = pnand %p10592_p3, %p10586_p0 }
  0x87   :  { %v239_v13 = vld [vmem:[#allocation5 + $0x80] sm:$0xff]  ;;  %v9144_v14 = vcombine.high %v487_v11, %v491_v12  ;;  %6411 = vmatprep.subr.bf16.mxu1 %v8888_v10  ;;  %v9143_v19 = vcombine.low %v487_v11, %v491_v12 }
  0x88   :  { %v243_v15 = vld [vmem:[#allocation5 + $0xa0] sm:$0xff]  ;;  %6412 = vmatpush1.bf16.msra.mxu1 %v8887_v18  ;;  %v155_v8 = vcombine.high %v10771_v3, %v10771_v3 }
  0x89   :  { %v495_v16 = vld [vmem:[#allocation5 + $0x880] sm:$0xff]  ;;  %v8896_v20 = vcombine.high %v239_v13, %v243_v15  ;;  %6493 = vmatprep.subr.bf16.mxu0 %v9144_v14  ;;  %v8895_v26 = vcombine.low %v239_v13, %v243_v15 }
  0x8a   :  { %v499_v17 = vld [vmem:[#allocation5 + $0x8a0] sm:$0xff]  ;;  %6494 = vmatpush1.bf16.msra.mxu0 %v9143_v19  ;;  %v10779_v15 = vpack.c.bf16 %v155_v8, %v155_v8 }
  0x8b   :  { %v9152_v21 = vcombine.high %v495_v16, %v499_v17  ;;  %v247_v22 = vld [vmem:[#allocation5 + $0xc0] sm:$0xff]  ;;  %6413 = vmatprep.subr.bf16.mxu1 %v8896_v20  ;;  %v9151_v27 = vcombine.low %v495_v16, %v499_v17 }
  0x8c   :  { %v251_v23 = vld [vmem:[#allocation5 + $0xe0] sm:$0xff]  ;;  %6414 = vmatpush1.bf16.msra.mxu1 %v8895_v26  ;;  %6523 = vmatprep.mubr.bf16.mxu0 %v10779_v15 }
  0x8d   :  { %v503_v24 = vld [vmem:[#allocation5 + $0x8c0] sm:$0xff]  ;;  %v8904_v28 = vcombine.high %v247_v22, %v251_v23  ;;  %6495 = vmatprep.subr.bf16.mxu0 %v9152_v21  ;;  %v8903_v37 = vcombine.low %v247_v22, %v251_v23 }
  0x8e   :  { %v507_v25 = vld [vmem:[#allocation5 + $0x8e0] sm:$0xff]  ;;  %6496 = vmatpush1.bf16.msra.mxu0 %v9151_v27 }
  0x8f   :  { %v9160_v29 = vcombine.high %v503_v24, %v507_v25  ;;  %v255_v30 = vld [vmem:[#allocation5 + $0x100] sm:$0xff]  ;;  %6415 = vmatprep.subr.bf16.mxu1 %v8904_v28  ;;  %v9159_v38 = vcombine.low %v503_v24, %v507_v25 }
  0x90   :  { %v259_v31 = vld [vmem:[#allocation5 + $0x120] sm:$0xff]  ;;  %6416 = vmatpush1.bf16.msra.mxu1 %v8903_v37 }
  0x91   :  { %v511_v35 = vld [vmem:[#allocation5 + $0x900] sm:$0xff]  ;;  %v8912_v39 = vcombine.high %v255_v30, %v259_v31  ;;  %6497 = vmatprep.subr.bf16.mxu0 %v9160_v29  ;;  %v8911_v47 = vcombine.low %v255_v30, %v259_v31 }
  0x92   :  { %v515_v36 = vld [vmem:[#allocation5 + $0x920] sm:$0xff]  ;;  %6498 = vmatpush1.bf16.msra.mxu0 %v9159_v38 }
  0x93   :  { %v9168_v40 = vcombine.high %v511_v35, %v515_v36  ;;  %v263_v41 = vld [vmem:[#allocation5 + $0x140] sm:$0xff]  ;;  %6417 = vmatprep.subr.bf16.mxu1 %v8912_v39  ;;  %v9167_v48 = vcombine.low %v511_v35, %v515_v36 }
  0x94   :  { %v267_v42 = vld [vmem:[#allocation5 + $0x160] sm:$0xff]  ;;  %6418 = vmatpush1.bf16.msra.mxu1 %v8911_v47 }
  0x95   :  { %v519_v45 = vld [vmem:[#allocation5 + $0x940] sm:$0xff]  ;;  %v8920_v49 = vcombine.high %v263_v41, %v267_v42  ;;  %6499 = vmatprep.subr.bf16.mxu0 %v9168_v40  ;;  %v8919_v56 = vcombine.low %v263_v41, %v267_v42 }
  0x96   :  { %v523_v46 = vld [vmem:[#allocation5 + $0x960] sm:$0xff]  ;;  %6500 = vmatpush1.bf16.msra.mxu0 %v9167_v48 }
  0x97   :  { %v9176_v50 = vcombine.high %v519_v45, %v523_v46  ;;  %v271_v51 = vld [vmem:[#allocation5 + $0x180] sm:$0xff]  ;;  %6419 = vmatprep.subr.bf16.mxu1 %v8920_v49  ;;  %v9175_v57 = vcombine.low %v519_v45, %v523_v46 }
  0x98   :  { %v275_v52 = vld [vmem:[#allocation5 + $0x1a0] sm:$0xff]  ;;  %6420 = vmatpush1.bf16.msra.mxu1 %v8919_v56 }
  0x99   :  { %v527_v54 = vld [vmem:[#allocation5 + $0x980] sm:$0xff]  ;;  %v8928_v58 = vcombine.high %v271_v51, %v275_v52  ;;  %6501 = vmatprep.subr.bf16.mxu0 %v9176_v50  ;;  %v8927_v4 = vcombine.low %v271_v51, %v275_v52 }
  0x9a   :  { %v531_v55 = vld [vmem:[#allocation5 + $0x9a0] sm:$0xff]  ;;  %6502 = vmatpush1.bf16.msra.mxu0 %v9175_v57 }
  0x9b   :  { %v10761_v59 = vld [vmem:[#allocation2] sm:$0xff]  ;;  %v9184_v60 = vcombine.high %v527_v54, %v531_v55  ;;  %6421 = vmatprep.subr.bf16.mxu1 %v8928_v58  ;;  %v9183_v6 = vcombine.low %v527_v54, %v531_v55 }
  0x9c   :  { %v279_v61 = vld [vmem:[#allocation5 + $0x1c0] sm:$0xff]  ;;  %v10765_v63 = vrot.slane %v10761_v59, %v10759_v53  ;;  %6422 = vmatpush1.bf16.msra.mxu1 %v8927_v4 }
  0x9d   :  { %v283_v62 = vld [vmem:[#allocation5 + $0x1e0] sm:$0xff]  ;;  %6503 = vmatprep.subr.bf16.mxu0 %v9184_v60 }
  0x9e   :  { %v535_v1 = vld [vmem:[#allocation5 + $0x9c0] sm:$0xff]  ;;  %v138_v5 = vcombine.high %v10765_v63, %v10765_v63  ;;  %v8936_v7 = vcombine.high %v279_v61, %v283_v62  ;;  %v8935_v16 = vcombine.low %v279_v61, %v283_v62  ;;  %6504 = vmatpush1.bf16.msra.mxu0 %v9183_v6 }
  0x9f   :  { %v539_v2 = vld [vmem:[#allocation5 + $0x9e0] sm:$0xff] }
  0xa0   :  { %v9192_v9 = vcombine.high %v535_v1, %v539_v2  ;;  %v287_v10 = vld [vmem:[#allocation5 + $0x200] sm:$0xff]  ;;  %v10777_v12 = vpack.c.bf16 %v138_v5, %v138_v5  ;;  %6423 = vmatprep.subr.bf16.mxu1 %v8936_v7  ;;  %v9191_v17 = vcombine.low %v535_v1, %v539_v2 }
  0xa1   :  { %v291_v11 = vld [vmem:[#allocation5 + $0x220] sm:$0xff]  ;;  %6424 = vmatpush1.bf16.msra.mxu1 %v8935_v16 }
  0xa2   :  { %v543_v13 = vld [vmem:[#allocation5 + $0xa00] sm:$0xff]  ;;  %6441 = vmatprep.mubr.bf16.mxu1 %v10777_v12  ;;  %v8944_v18 = vcombine.high %v287_v10, %v291_v11  ;;  %6505 = vmatprep.subr.bf16.mxu0 %v9192_v9  ;;  %v8943_v24 = vcombine.low %v287_v10, %v291_v11 }
  0xa3   :  { %v547_v14 = vld [vmem:[#allocation5 + $0xa20] sm:$0xff]  ;;  %6506 = vmatpush1.bf16.msra.mxu0 %v9191_v17  ;;  %v140_v17 = vcombine.high %v10767_v0, %v10767_v0 }
  0xa4   :  { %v9200_v19 = vcombine.high %v543_v13, %v547_v14  ;;  %v295_v20 = vld [vmem:[#allocation5 + $0x240] sm:$0xff]  ;;  %6425 = vmatprep.subr.bf16.mxu1 %v8944_v18  ;;  %v9199_v25 = vcombine.low %v543_v13, %v547_v14  ;;  %v123_v13 = vcombine.high %v10761_v59, %v10761_v59 }
  0xa5   :  { %v299_v21 = vld [vmem:[#allocation5 + $0x260] sm:$0xff]  ;;  %6426 = vmatpush1.bf16.msra.mxu1 %v8943_v24 }
  0xa6   :  { %v551_v22 = vld [vmem:[#allocation5 + $0xa40] sm:$0xff]  ;;  %v8952_v26 = vcombine.high %v295_v20, %v299_v21  ;;  %6507 = vmatprep.subr.bf16.mxu0 %v9200_v19  ;;  %v8951_v32 = vcombine.low %v295_v20, %v299_v21  ;;  %v10788_v24 = vrot.slane %v123_v13, %v10759_v53 }
  0xa7   :  { %v555_v23 = vld [vmem:[#allocation5 + $0xa60] sm:$0xff]  ;;  %6508 = vmatpush1.bf16.msra.mxu0 %v9199_v25 }
  0xa8   :  { %v9208_v27 = vcombine.high %v551_v22, %v555_v23  ;;  %v303_v28 = vld [vmem:[#allocation5 + $0x280] sm:$0xff]  ;;  %6427 = vmatprep.subr.bf16.mxu1 %v8952_v26  ;;  %v9207_v33 = vcombine.low %v551_v22, %v555_v23  ;;  %v10791_v26 = vrot.slane %v140_v17, %v10759_v53 }
  0xa9   :  { %v307_v29 = vld [vmem:[#allocation5 + $0x2a0] sm:$0xff]  ;;  %6428 = vmatpush1.bf16.msra.mxu1 %v8951_v32  ;;  %v139_v32 = vcombine.high %v10788_v24, %v10788_v24 }
  0xaa   :  { %v559_v30 = vld [vmem:[#allocation5 + $0xa80] sm:$0xff]  ;;  %v8960_v34 = vcombine.high %v303_v28, %v307_v29  ;;  %6509 = vmatprep.subr.bf16.mxu0 %v9208_v27  ;;  %v8959_v40 = vcombine.low %v303_v28, %v307_v29 }
  0xab   :  { %v563_v31 = vld [vmem:[#allocation5 + $0xaa0] sm:$0xff]  ;;  %6510 = vmatpush1.bf16.msra.mxu0 %v9207_v33  ;;  %v10797_v33 = vpack.c.bf16 %v10765_v63, %v10765_v63 }
  0xac   :  { %v9216_v35 = vcombine.high %v559_v30, %v563_v31  ;;  %v311_v36 = vld [vmem:[#allocation5 + $0x2c0] sm:$0xff]  ;;  %6429 = vmatprep.subr.bf16.mxu1 %v8960_v34  ;;  %v9215_v41 = vcombine.low %v559_v30, %v563_v31 }
  0xad   :  { %v315_v37 = vld [vmem:[#allocation5 + $0x2e0] sm:$0xff]  ;;  %6430 = vmatpush1.bf16.msra.mxu1 %v8959_v40 }
  0xae   :  { %v567_v38 = vld [vmem:[#allocation5 + $0xac0] sm:$0xff]  ;;  %v8968_v42 = vcombine.high %v311_v36, %v315_v37  ;;  %6511 = vmatprep.subr.bf16.mxu0 %v9216_v35  ;;  %v8967_v49 = vcombine.low %v311_v36, %v315_v37  ;;  %v156_v36 = vcombine.high %v10791_v26, %v10791_v26 }
  0xaf   :  { %v571_v39 = vld [vmem:[#allocation5 + $0xae0] sm:$0xff]  ;;  %6512 = vmatpush1.bf16.msra.mxu0 %v9215_v41 }
  0xb0   :  { %v9224_v43 = vcombine.high %v567_v38, %v571_v39  ;;  %v319_v45 = vld [vmem:[#allocation5 + $0x300] sm:$0xff]  ;;  %6431 = vmatprep.subr.bf16.mxu1 %v8968_v42  ;;  %v9223_v50 = vcombine.low %v567_v38, %v571_v39  ;;  %v10803_v38 = vpack.c.bf16 %v10771_v3, %v10771_v3 }
  0xb1   :  { %v323_v46 = vld [vmem:[#allocation5 + $0x320] sm:$0xff]  ;;  %6432 = vmatpush1.bf16.msra.mxu1 %v8967_v49 }
  0xb2   :  { %v575_v47 = vld [vmem:[#allocation5 + $0xb00] sm:$0xff]  ;;  %v8976_v51 = vcombine.high %v319_v45, %v323_v46  ;;  %6513 = vmatprep.subr.bf16.mxu0 %v9224_v43  ;;  %v8975_v58 = vcombine.low %v319_v45, %v323_v46  ;;  %v10805_v46 = vpack.c.bf16 %v139_v32, %v139_v32 }
  0xb3   :  { %v579_v48 = vld [vmem:[#allocation5 + $0xb20] sm:$0xff]  ;;  %6514 = vmatpush1.bf16.msra.mxu0 %v9223_v50 }
  0xb4   :  { %v9232_v52 = vcombine.high %v575_v47, %v579_v48  ;;  %v327_v54 = vld [vmem:[#allocation5 + $0x340] sm:$0xff]  ;;  %6433 = vmatprep.subr.bf16.mxu1 %v8976_v51  ;;  %v9231_v60 = vcombine.low %v575_v47, %v579_v48  ;;  %v10808_v47 = vpack.c.bf16 %v156_v36, %v156_v36 }
  0xb5   :  { %v331_v55 = vld [vmem:[#allocation5 + $0x360] sm:$0xff]  ;;  %6434 = vmatpush1.bf16.msra.mxu1 %v8975_v58 }
  0xb6   :  { %v583_v56 = vld [vmem:[#allocation5 + $0xb40] sm:$0xff]  ;;  %v8984_v61 = vcombine.high %v327_v54, %v331_v55  ;;  %6515 = vmatprep.subr.bf16.mxu0 %v9232_v52  ;;  %v8983_v6 = vcombine.low %v327_v54, %v331_v55 }
  0xb7   :  { %v587_v57 = vld [vmem:[#allocation5 + $0xb60] sm:$0xff]  ;;  %6516 = vmatpush1.bf16.msra.mxu0 %v9231_v60 }
  0xb8   :  { %v9240_v62 = vcombine.high %v583_v56, %v587_v57  ;;  %v335_v1 = vld [vmem:[#allocation5 + $0x380] sm:$0xff]  ;;  %6435 = vmatprep.subr.bf16.mxu1 %v8984_v61  ;;  %v9239_v7 = vcombine.low %v583_v56, %v587_v57 }
  0xb9   :  { %v339_v2 = vld [vmem:[#allocation5 + $0x3a0] sm:$0xff]  ;;  %6436 = vmatpush1.bf16.msra.mxu1 %v8983_v6 }
  0xba   :  { %v591_v4 = vld [vmem:[#allocation5 + $0xb80] sm:$0xff]  ;;  %v8992_v8 = vcombine.high %v335_v1, %v339_v2  ;;  %6517 = vmatprep.subr.bf16.mxu0 %v9240_v62  ;;  %v8991_v18 = vcombine.low %v335_v1, %v339_v2 }
  0xbb   :  { %v595_v5 = vld [vmem:[#allocation5 + $0xba0] sm:$0xff]  ;;  %6518 = vmatpush1.bf16.msra.mxu0 %v9239_v7 }
  0xbc   :  { %v9248_v9 = vcombine.high %v591_v4, %v595_v5  ;;  %v343_v10 = vld [vmem:[#allocation5 + $0x3c0] sm:$0xff]  ;;  %6437 = vmatprep.subr.bf16.mxu1 %v8992_v8  ;;  %v9247_v19 = vcombine.low %v591_v4, %v595_v5 }
  0xbd   :  { %v347_v11 = vld [vmem:[#allocation5 + $0x3e0] sm:$0xff]  ;;  %6438 = vmatpush1.bf16.msra.mxu1 %v8991_v18 }
  0xbe   :  { %v599_v14 = vld [vmem:[#allocation5 + $0xbc0] sm:$0xff]  ;;  %v9000_v20 = vcombine.high %v343_v10, %v347_v11  ;;  %6519 = vmatprep.subr.bf16.mxu0 %v9248_v9  ;;  %v8999_v0 = vcombine.low %v343_v10, %v347_v11 }
  0xbf   :  { %v603_v16 = vld [vmem:[#allocation5 + $0xbe0] sm:$0xff]  ;;  %6520 = vmatpush1.bf16.msra.mxu0 %v9247_v19 }
  0xc0   :  { %v9256_v21 = vcombine.high %v599_v14, %v603_v16  ;;  %v351_v22 = vld [vmem:[#allocation5 + $0x400] sm:$0xff]  ;;  %6439 = vmatprep.subr.bf16.mxu1 %v9000_v20  ;;  %v9255_v27 = vcombine.low %v599_v14, %v603_v16 }
  0xc1   :  { %v355_v23 = vld [vmem:[#allocation5 + $0x420] sm:$0xff]  ;;  %6440 = vmatpush1.bf16.msra.mxu1 %v8999_v0 }
  0xc2   :  { %v607_v25 = vld [vmem:[#allocation5 + $0xc00] sm:$0xff]  ;;  %v9008_v28 = vcombine.high %v351_v22, %v355_v23  ;;  %6521 = vmatprep.subr.bf16.mxu0 %v9256_v21  ;;  %v9007_v37 = vcombine.low %v351_v22, %v355_v23 }
  0xc3   :  { %v611_v59 = vld [vmem:[#allocation5 + $0xc20] sm:$0xff]  ;;  %6522 = vmatpush1.bf16.msra.mxu0 %v9255_v27 }
  0xc4   :  { %v9264_v29 = vcombine.high %v607_v25, %v611_v59  ;;  %v359_v30 = vld [vmem:[#allocation5 + $0x440] sm:$0xff]  ;;  %6450 = vmatprep.subr.bf16.mxu1 %v9008_v28  ;;  %v9263_v39 = vcombine.low %v607_v25, %v611_v59  ;;  %6442 = vmatmul.mubr.bf16.vlgmr.msra.gmra.mrb[0].mxu1 %v10797_v33 }
  0xc5   :  { %v363_v31 = vld [vmem:[#allocation5 + $0x460] sm:$0xff]  ;;  %6451 = vmatpush1.bf16.msra.mxu1 %v9007_v37  ;;  %6482 = vmatprep.mubr.bf16.mxu1 %v10805_v46 }
  0xc6   :  { %v615_v34 = vld [vmem:[#allocation5 + $0xc40] sm:$0xff]  ;;  %v9016_v40 = vcombine.high %v359_v30, %v363_v31  ;;  %6532 = vmatprep.subr.bf16.mxu0 %v9264_v29  ;;  %6524 = vmatmul.mubr.bf16.vlgmr.msra.gmra.mrb[0].mxu0 %v10803_v38  ;;  %v9015_v3 = vcombine.low %v359_v30, %v363_v31 }
  0xc7   :  { %v619_v35 = vld [vmem:[#allocation5 + $0xc60] sm:$0xff]  ;;  %6533 = vmatpush1.bf16.msra.mxu0 %v9263_v39  ;;  %6564 = vmatprep.mubr.bf16.mxu0 %v10808_v47 }
  0xc8   :  { %v367_v41 = vld [vmem:[#allocation5 + $0x480] sm:$0xff]  ;;  %v9272_v63 = vcombine.high %v615_v34, %v619_v35  ;;  %6452 = vmatprep.subr.bf16.mxu1 %v9016_v40  ;;  %v9271_v48 = vcombine.low %v615_v34, %v619_v35 }
  0xc9   :  { %v371_v42 = vld [vmem:[#allocation5 + $0x4a0] sm:$0xff]  ;;  %6453 = vmatpush1.bf16.msra.mxu1 %v9015_v3 }
  0xca   :  { %v623_v43 = vld [vmem:[#allocation5 + $0xc80] sm:$0xff]  ;;  %v9024_v49 = vcombine.high %v367_v41, %v371_v42  ;;  %6534 = vmatprep.subr.bf16.mxu0 %v9272_v63  ;;  %v9023_v56 = vcombine.low %v367_v41, %v371_v42 }
  0xcb   :  { %v627_v45 = vld [vmem:[#allocation5 + $0xca0] sm:$0xff]  ;;  %6535 = vmatpush1.bf16.msra.mxu0 %v9271_v48 }
  0xcc   :  { %v375_v50 = vld [vmem:[#allocation5 + $0x4c0] sm:$0xff]  ;;  %v9280_v54 = vcombine.high %v623_v43, %v627_v45  ;;  %6454 = vmatprep.subr.bf16.mxu1 %v9024_v49  ;;  %v9279_v57 = vcombine.low %v623_v43, %v627_v45 }
  0xcd   :  { %v379_v51 = vld [vmem:[#allocation5 + $0x4e0] sm:$0xff]  ;;  %6455 = vmatpush1.bf16.msra.mxu1 %v9023_v56 }
  0xce   :  { %v631_v52 = vld [vmem:[#allocation5 + $0xcc0] sm:$0xff]  ;;  %v9032_v58 = vcombine.high %v375_v50, %v379_v51  ;;  %6536 = vmatprep.subr.bf16.mxu0 %v9280_v54  ;;  %v9031_v4 = vcombine.low %v375_v50, %v379_v51 }
  0xcf   :  { %v635_v55 = vld [vmem:[#allocation5 + $0xce0] sm:$0xff]  ;;  %6537 = vmatpush1.bf16.msra.mxu0 %v9279_v57 }
  0xd0   :  { %v383_v60 = vld [vmem:[#allocation5 + $0x500] sm:$0xff]  ;;  %v9288_v1 = vcombine.high %v631_v52, %v635_v55  ;;  %6456 = vmatprep.subr.bf16.mxu1 %v9032_v58  ;;  %v9287_v5 = vcombine.low %v631_v52, %v635_v55 }
  0xd1   :  { %v387_v61 = vld [vmem:[#allocation5 + $0x520] sm:$0xff]  ;;  %6457 = vmatpush1.bf16.msra.mxu1 %v9031_v4 }
  0xd2   :  { %v639_v62 = vld [vmem:[#allocation5 + $0xd00] sm:$0xff]  ;;  %v9040_v6 = vcombine.high %v383_v60, %v387_v61  ;;  %6538 = vmatprep.subr.bf16.mxu0 %v9288_v1  ;;  %v9039_v13 = vcombine.low %v383_v60, %v387_v61 }
  0xd3   :  { %v643_v2 = vld [vmem:[#allocation5 + $0xd20] sm:$0xff]  ;;  %6539 = vmatpush1.bf16.msra.mxu0 %v9287_v5 }
  0xd4   :  { %v391_v7 = vld [vmem:[#allocation5 + $0x540] sm:$0xff]  ;;  %v9296_v10 = vcombine.high %v639_v62, %v643_v2  ;;  %6458 = vmatprep.subr.bf16.mxu1 %v9040_v6  ;;  %v9295_v14 = vcombine.low %v639_v62, %v643_v2 }
  0xd5   :  { %v395_v8 = vld [vmem:[#allocation5 + $0x560] sm:$0xff]  ;;  %6459 = vmatpush1.bf16.msra.mxu1 %v9039_v13 }
  0xd6   :  { %v647_v9 = vld [vmem:[#allocation5 + $0xd40] sm:$0xff]  ;;  %v9048_v16 = vcombine.high %v391_v7, %v395_v8  ;;  %6540 = vmatprep.subr.bf16.mxu0 %v9296_v10  ;;  %v9047_v22 = vcombine.low %v391_v7, %v395_v8 }
  0xd7   :  { %v651_v11 = vld [vmem:[#allocation5 + $0xd60] sm:$0xff]  ;;  %6541 = vmatpush1.bf16.msra.mxu0 %v9295_v14 }
  0xd8   :  { %v399_v17 = vld [vmem:[#allocation5 + $0x580] sm:$0xff]  ;;  %v9304_v20 = vcombine.high %v647_v9, %v651_v11  ;;  %6460 = vmatprep.subr.bf16.mxu1 %v9048_v16  ;;  %v9303_v23 = vcombine.low %v647_v9, %v651_v11 }
  0xd9   :  { %v403_v18 = vld [vmem:[#allocation5 + $0x5a0] sm:$0xff]  ;;  %6461 = vmatpush1.bf16.msra.mxu1 %v9047_v22 }
  0xda   :  { %v655_v19 = vld [vmem:[#allocation5 + $0xd80] sm:$0xff]  ;;  %v9056_v25 = vcombine.high %v399_v17, %v403_v18  ;;  %6542 = vmatprep.subr.bf16.mxu0 %v9304_v20  ;;  %v9055_v30 = vcombine.low %v399_v17, %v403_v18 }
  0xdb   :  { %v659_v21 = vld [vmem:[#allocation5 + $0xda0] sm:$0xff]  ;;  %6543 = vmatpush1.bf16.msra.mxu0 %v9303_v23 }
  0xdc   :  { %v407_v59 = vld [vmem:[#allocation5 + $0x5c0] sm:$0xff]  ;;  %v9312_v28 = vcombine.high %v655_v19, %v659_v21  ;;  %6462 = vmatprep.subr.bf16.mxu1 %v9056_v25  ;;  %v9311_v31 = vcombine.low %v655_v19, %v659_v21 }
  0xdd   :  { %v411_v0 = vld [vmem:[#allocation5 + $0x5e0] sm:$0xff]  ;;  %6463 = vmatpush1.bf16.msra.mxu1 %v9055_v30 }
  0xde   :  { %v663_v27 = vld [vmem:[#allocation5 + $0xdc0] sm:$0xff]  ;;  %v9064_v32 = vcombine.high %v407_v59, %v411_v0  ;;  %6544 = vmatprep.subr.bf16.mxu0 %v9312_v28  ;;  %v9063_v40 = vcombine.low %v407_v59, %v411_v0 }
  0xdf   :  { %v667_v29 = vld [vmem:[#allocation5 + $0xde0] sm:$0xff]  ;;  %6545 = vmatpush1.bf16.msra.mxu0 %v9311_v31 }
  0xe0   :  { %v415_v34 = vld [vmem:[#allocation5 + $0x600] sm:$0xff]  ;;  %v9320_v37 = vcombine.high %v663_v27, %v667_v29  ;;  %6464 = vmatprep.subr.bf16.mxu1 %v9064_v32  ;;  %v9319_v41 = vcombine.low %v663_v27, %v667_v29 }
  0xe1   :  { %v419_v35 = vld [vmem:[#allocation5 + $0x620] sm:$0xff]  ;;  %6465 = vmatpush1.bf16.msra.mxu1 %v9063_v40 }
  0xe2   :  { %v671_v36 = vld [vmem:[#allocation5 + $0xe00] sm:$0xff]  ;;  %v9072_v42 = vcombine.high %v415_v34, %v419_v35  ;;  %6546 = vmatprep.subr.bf16.mxu0 %v9320_v37  ;;  %v9071_v49 = vcombine.low %v415_v34, %v419_v35 }
  0xe3   :  { %v675_v39 = vld [vmem:[#allocation5 + $0xe20] sm:$0xff]  ;;  %6547 = vmatpush1.bf16.msra.mxu0 %v9319_v41 }
  0xe4   :  { %v423_v43 = vld [vmem:[#allocation5 + $0x640] sm:$0xff]  ;;  %v9328_v3 = vcombine.high %v671_v36, %v675_v39  ;;  %6466 = vmatprep.subr.bf16.mxu1 %v9072_v42  ;;  %v9327_v50 = vcombine.low %v671_v36, %v675_v39  ;;  %v10813_v42 = vld [vmem:[#allocation2 + $0x10] sm:$0xff] }
  0xe5   :  { %v427_v63 = vld [vmem:[#allocation5 + $0x660] sm:$0xff]  ;;  %6467 = vmatpush1.bf16.msra.mxu1 %v9071_v49  ;;  %v224_v49 = vld [vmem:[#allocation5 + $0x8] sm:$0xff] }
  0xe6   :  { %v679_v45 = vld [vmem:[#allocation5 + $0xe40] sm:$0xff]  ;;  %v9080_v51 = vcombine.high %v423_v43, %v427_v63  ;;  %6548 = vmatprep.subr.bf16.mxu0 %v9328_v3  ;;  %v9079_v58 = vcombine.low %v423_v43, %v427_v63 }
  0xe7   :  { %v683_v48 = vld [vmem:[#allocation5 + $0xe60] sm:$0xff]  ;;  %6549 = vmatpush1.bf16.msra.mxu0 %v9327_v50 }
  0xe8   :  { %v431_v52 = vld [vmem:[#allocation5 + $0x680] sm:$0xff]  ;;  %v9336_v56 = vcombine.high %v679_v45, %v683_v48  ;;  %6468 = vmatprep.subr.bf16.mxu1 %v9080_v51  ;;  %v9335_v60 = vcombine.low %v679_v45, %v683_v48  ;;  %v228_v51 = vld [vmem:[#allocation5 + $0x28] sm:$0xff] }
  0xe9   :  { %v435_v54 = vld [vmem:[#allocation5 + $0x6a0] sm:$0xff]  ;;  %6469 = vmatpush1.bf16.msra.mxu1 %v9079_v58 }
  0xea   :  { %v687_v55 = vld [vmem:[#allocation5 + $0xe80] sm:$0xff]  ;;  %v9088_v61 = vcombine.high %v431_v52, %v435_v54  ;;  %6550 = vmatprep.subr.bf16.mxu0 %v9336_v56  ;;  %v9087_v6 = vcombine.low %v431_v52, %v435_v54  ;;  %v10817_v52 = vrot.slane %v10813_v42, %v10759_v53  ;;  %v8882_v56 = vcombine.high %v224_v49, %v228_v51 }
  0xeb   :  { %v691_v57 = vld [vmem:[#allocation5 + $0xea0] sm:$0xff]  ;;  %6551 = vmatpush1.bf16.msra.mxu0 %v9335_v60  ;;  %v232_v60 = vld [vmem:[#allocation5 + $0x48] sm:$0xff] }
  0xec   :  { %v439_v62 = vld [vmem:[#allocation5 + $0x6c0] sm:$0xff]  ;;  %v9344_v4 = vcombine.high %v687_v55, %v691_v57  ;;  %6470 = vmatprep.subr.bf16.mxu1 %v9088_v61  ;;  %v9343_v7 = vcombine.low %v687_v55, %v691_v57 }
  0xed   :  { %v443_v1 = vld [vmem:[#allocation5 + $0x6e0] sm:$0xff]  ;;  %6471 = vmatpush1.bf16.msra.mxu1 %v9087_v6 }
  0xee   :  { %v695_v2 = vld [vmem:[#allocation5 + $0xec0] sm:$0xff]  ;;  %v9096_v8 = vcombine.high %v439_v62, %v443_v1  ;;  %6552 = vmatprep.subr.bf16.mxu0 %v9344_v4  ;;  %v9095_v16 = vcombine.low %v439_v62, %v443_v1  ;;  %v236_v62 = vld [vmem:[#allocation5 + $0x68] sm:$0xff]  ;;  %v172_v1 = vcombine.high %v10817_v52, %v10817_v52  ;;  %v8881_v4 = vcombine.low %v224_v49, %v228_v51 }
  0xef   :  { %v699_v5 = vld [vmem:[#allocation5 + $0xee0] sm:$0xff]  ;;  %6553 = vmatpush1.bf16.msra.mxu0 %v9343_v7  ;;  %v8890_v7 = vcombine.high %v232_v60, %v236_v62 }
  0xf0   :  { %v447_v9 = vld [vmem:[#allocation5 + $0x700] sm:$0xff]  ;;  %v9352_v13 = vcombine.high %v695_v2, %v699_v5  ;;  %6472 = vmatprep.subr.bf16.mxu1 %v9096_v8  ;;  %v9351_v17 = vcombine.low %v695_v2, %v699_v5  ;;  %v10823_v2 = vpack.c.bf16 %v10788_v24, %v10788_v24  ;;  %v10827_v5 = vpack.c.bf16 %v10791_v26, %v10791_v26 }
  0xf1   :  { %v451_v10 = vld [vmem:[#allocation5 + $0x720] sm:$0xff]  ;;  %6473 = vmatpush1.bf16.msra.mxu1 %v9095_v16  ;;  %v8889_v24 = vcombine.low %v232_v60, %v236_v62 }
  0xf2   :  { %v703_v11 = vld [vmem:[#allocation5 + $0xf00] sm:$0xff]  ;;  %v9104_v18 = vcombine.high %v447_v9, %v451_v10  ;;  %6554 = vmatprep.subr.bf16.mxu0 %v9352_v13  ;;  %v9103_v25 = vcombine.low %v447_v9, %v451_v10  ;;  %v240_v10 = vld [vmem:[#allocation5 + $0x88] sm:$0xff] }
  0xf3   :  { %v707_v14 = vld [vmem:[#allocation5 + $0xf20] sm:$0xff]  ;;  %6555 = vmatpush1.bf16.msra.mxu0 %v9351_v17  ;;  %v244_v13 = vld [vmem:[#allocation5 + $0xa8] sm:$0xff] }
  0xf4   :  { %v455_v19 = vld [vmem:[#allocation5 + $0x740] sm:$0xff]  ;;  %v9360_v22 = vcombine.high %v703_v11, %v707_v14  ;;  %6474 = vmatprep.subr.bf16.mxu1 %v9104_v18  ;;  %v9359_v59 = vcombine.low %v703_v11, %v707_v14  ;;  %v10829_v14 = vpack.c.bf16 %v172_v1, %v172_v1  ;;  %v8898_v16 = vcombine.high %v240_v10, %v244_v13 }
  0xf5   :  { %v459_v20 = vld [vmem:[#allocation5 + $0x760] sm:$0xff]  ;;  %6475 = vmatpush1.bf16.msra.mxu1 %v9103_v25 }
  0xf6   :  { %v711_v21 = vld [vmem:[#allocation5 + $0xf40] sm:$0xff]  ;;  %v9112_v0 = vcombine.high %v455_v19, %v459_v20  ;;  %6556 = vmatprep.subr.bf16.mxu0 %v9360_v22  ;;  %v9111_v32 = vcombine.low %v455_v19, %v459_v20  ;;  %v248_v19 = vld [vmem:[#allocation5 + $0xc8] sm:$0xff]  ;;  %v8897_v22 = vcombine.low %v240_v10, %v244_v13 }
  0xf7   :  { %v715_v23 = vld [vmem:[#allocation5 + $0xf60] sm:$0xff]  ;;  %6557 = vmatpush1.bf16.msra.mxu0 %v9359_v59 }
  0xf8   :  { %v463_v27 = vld [vmem:[#allocation5 + $0x780] sm:$0xff]  ;;  %v9368_v30 = vcombine.high %v711_v21, %v715_v23  ;;  %6476 = vmatprep.subr.bf16.mxu1 %v9112_v0  ;;  %v9367_v35 = vcombine.low %v711_v21, %v715_v23  ;;  %v252_v21 = vld [vmem:[#allocation5 + $0xe8] sm:$0xff] }
  0xf9   :  { %v467_v28 = vld [vmem:[#allocation5 + $0x7a0] sm:$0xff]  ;;  %6477 = vmatpush1.bf16.msra.mxu1 %v9111_v32  ;;  %v8906_v25 = vcombine.high %v248_v19, %v252_v21 }
  0xfa   :  { %v719_v29 = vld [vmem:[#allocation5 + $0xf80] sm:$0xff]  ;;  %v9120_v36 = vcombine.high %v463_v27, %v467_v28  ;;  %6558 = vmatprep.subr.bf16.mxu0 %v9368_v30  ;;  %v9119_v43 = vcombine.low %v463_v27, %v467_v28  ;;  %v256_v27 = vld [vmem:[#allocation5 + $0x108] sm:$0xff]  ;;  %v8905_v30 = vcombine.low %v248_v19, %v252_v21 }
  0xfb   :  { %v723_v31 = vld [vmem:[#allocation5 + $0xfa0] sm:$0xff]  ;;  %6559 = vmatpush1.bf16.msra.mxu0 %v9367_v35 }
  0xfc   :  { %v471_v34 = vld [vmem:[#allocation5 + $0x7c0] sm:$0xff]  ;;  %v9376_v41 = vcombine.high %v719_v29, %v723_v31  ;;  %6478 = vmatprep.subr.bf16.mxu1 %v9120_v36  ;;  %v9375_v63 = vcombine.low %v719_v29, %v723_v31  ;;  %v260_v29 = vld [vmem:[#allocation5 + $0x128] sm:$0xff] }
  0xfd   :  { %v475_v37 = vld [vmem:[#allocation5 + $0x7e0] sm:$0xff]  ;;  %6479 = vmatpush1.bf16.msra.mxu1 %v9119_v43  ;;  %v8914_v32 = vcombine.high %v256_v27, %v260_v29  ;;  %v264_v36 = vld [vmem:[#allocation5 + $0x148] sm:$0xff] }
  0xfe   :  { %v727_v39 = vld [vmem:[#allocation5 + $0xfc0] sm:$0xff]  ;;  %v9128_v45 = vcombine.high %v471_v34, %v475_v37  ;;  %6560 = vmatprep.subr.bf16.mxu0 %v9376_v41  ;;  %v9127_v54 = vcombine.low %v471_v34, %v475_v37 }
  0xff   :  { %v731_v40 = vld [vmem:[#allocation5 + $0xfe0] sm:$0xff]  ;;  %6561 = vmatpush1.bf16.msra.mxu0 %v9375_v63 }
 0x100   :  { %v735_v3 = vld [vmem:[#allocation5 + $0x1000] sm:$0xff]  ;;  %v9384_v50 = vcombine.high %v727_v39, %v731_v40  ;;  %6480 = vmatprep.subr.bf16.mxu1 %v9128_v45  ;;  %v9383_v55 = vcombine.low %v727_v39, %v731_v40  ;;  %v268_v39 = vld [vmem:[#allocation5 + $0x168] sm:$0xff]  ;;  %v8913_v40 = vcombine.low %v256_v27, %v260_v29 }
 0x101   :  { %v739_v48 = vld [vmem:[#allocation5 + $0x1020] sm:$0xff]  ;;  %6481 = vmatpush1.bf16.msra.mxu1 %v9127_v54  ;;  %v8922_v43 = vcombine.high %v264_v36, %v268_v39  ;;  %v272_v45 = vld [vmem:[#allocation5 + $0x188] sm:$0xff] }
 0x102   :  { %v743_v57 = vld [vmem:[#allocation5 + $0x1040] sm:$0xff]  ;;  %6562 = vmatprep.subr.bf16.mxu0 %v9384_v50  ;;  %v9392_v61 = vcombine.high %v735_v3, %v739_v48  ;;  %v9391_v6 = vcombine.low %v735_v3, %v739_v48  ;;  %6737 = vmatprep.subr.bf16.mxu1 %v8882_v56  ;;  %v276_v3 = vld [vmem:[#allocation5 + $0x1a8] sm:$0xff]  ;;  %v8921_v50 = vcombine.low %v264_v36, %v268_v39 }
 0x103   :  { %v747_v58 = vld [vmem:[#allocation5 + $0x1060] sm:$0xff]  ;;  %6563 = vmatpush1.bf16.msra.mxu0 %v9383_v55  ;;  %v8930_v54 = vcombine.high %v272_v45, %v276_v3  ;;  %v280_v56 = vld [vmem:[#allocation5 + $0x1c8] sm:$0xff] }
 0x104   :  { %v751_v8 = vld [vmem:[#allocation5 + $0x1080] sm:$0xff]  ;;  %6573 = vmatprep.subr.bf16.mxu0 %v9392_v61  ;;  %v9400_v11 = vcombine.high %v743_v57, %v747_v58  ;;  %6483 = vmatmul.mubr.bf16.vlgmr.msra.gmra.mrb[0].mxu1 %v10823_v2  ;;  %v9399_v26 = vcombine.low %v743_v57, %v747_v58  ;;  %v284_v57 = vld [vmem:[#allocation5 + $0x1e8] sm:$0xff]  ;;  %v8929_v61 = vcombine.low %v272_v45, %v276_v3 }
 0x105   :  { %v755_v9 = vld [vmem:[#allocation5 + $0x10a0] sm:$0xff]  ;;  %6738 = vmatpush1.bf16.msra.mxu1 %v8881_v4  ;;  %6769 = vmatprep.mubr.bf16.mxu1 %v10777_v12  ;;  %v8938_v1 = vcombine.high %v280_v56, %v284_v57  ;;  %v8937_v10 = vcombine.low %v280_v56, %v284_v57 }
 0x106   :  { %6565 = vmatmul.mubr.bf16.vlgmr.msra.gmra.mrb[0].mxu0 %v10827_v5  ;;  %6739 = vmatprep.subr.bf16.mxu1 %v8890_v7  ;;  %v759_v17 = vld [vmem:[#allocation5 + $0x10c0] sm:$0xff]  ;;  %v9408_v20 = vcombine.high %v751_v8, %v755_v9  ;;  %v9407_v23 = vcombine.low %v751_v8, %v755_v9  ;;  %v292_v7 = vld [vmem:[#allocation5 + $0x228] sm:$0xff] }
 0x107   :  { %6574 = vmatpush1.bf16.msra.mxu0 %v9391_v6  ;;  %v763_v18 = vld [vmem:[#allocation5 + $0x10e0] sm:$0xff]  ;;  %6605 = vmatprep.mubr.bf16.mxu0 %v10829_v14  ;;  %v288_v6 = vld [vmem:[#allocation5 + $0x208] sm:$0xff] }
 0x108   :  { %6575 = vmatprep.subr.bf16.mxu0 %v9400_v11  ;;  %v767_v59 = vld [vmem:[#allocation5 + $0x1100] sm:$0xff]  ;;  %v9416_v28 = vcombine.high %v759_v17, %v763_v18  ;;  %v9415_v31 = vcombine.low %v759_v17, %v763_v18  ;;  %v8946_v13 = vcombine.high %v288_v6, %v292_v7  ;;  %v8945_v19 = vcombine.low %v288_v6, %v292_v7 }
 0x109   :  { %6740 = vmatpush1.bf16.msra.mxu1 %v8889_v24  ;;  %v771_v0 = vld [vmem:[#allocation5 + $0x1120] sm:$0xff] }
 0x10a   :  { %6741 = vmatprep.subr.bf16.mxu1 %v8898_v16  ;;  %v775_v34 = vld [vmem:[#allocation5 + $0x1140] sm:$0xff]  ;;  %v9424_v37 = vcombine.high %v767_v59, %v771_v0  ;;  %v9423_v41 = vcombine.low %v767_v59, %v771_v0  ;;  %v300_v16 = vld [vmem:[#allocation5 + $0x268] sm:$0xff] }
 0x10b   :  { %6576 = vmatpush1.bf16.msra.mxu0 %v9399_v26  ;;  %v779_v35 = vld [vmem:[#allocation5 + $0x1160] sm:$0xff]  ;;  %v296_v26 = vld [vmem:[#allocation5 + $0x248] sm:$0xff] }
 0x10c   :  { %6577 = vmatprep.subr.bf16.mxu0 %v9408_v20  ;;  %v9432_v63 = vcombine.high %v775_v34, %v779_v35  ;;  %v783_v48 = vld [vmem:[#allocation5 + $0x1180] sm:$0xff]  ;;  %v9431_v51 = vcombine.low %v775_v34, %v779_v35  ;;  %v8954_v21 = vcombine.high %v296_v26, %v300_v16  ;;  %v8953_v27 = vcombine.low %v296_v26, %v300_v16 }
 0x10d   :  { %6742 = vmatpush1.bf16.msra.mxu1 %v8897_v22  ;;  %v787_v49 = vld [vmem:[#allocation5 + $0x11a0] sm:$0xff] }
 0x10e   :  { %6743 = vmatprep.subr.bf16.mxu1 %v8906_v25  ;;  %v9440_v55 = vcombine.high %v783_v48, %v787_v49  ;;  %v791_v58 = vld [vmem:[#allocation5 + $0x11c0] sm:$0xff]  ;;  %v9439_v62 = vcombine.low %v783_v48, %v787_v49  ;;  %v308_v25 = vld [vmem:[#allocation5 + $0x2a8] sm:$0xff] }
 0x10f   :  { %6578 = vmatpush1.bf16.msra.mxu0 %v9407_v23  ;;  %v795_v60 = vld [vmem:[#allocation5 + $0x11e0] sm:$0xff]  ;;  %v304_v23 = vld [vmem:[#allocation5 + $0x288] sm:$0xff] }
 0x110   :  { %6579 = vmatprep.subr.bf16.mxu0 %v9416_v28  ;;  %v9448_v4 = vcombine.high %v791_v58, %v795_v60  ;;  %v799_v8 = vld [vmem:[#allocation5 + $0x1200] sm:$0xff]  ;;  %v9447_v11 = vcombine.low %v791_v58, %v795_v60  ;;  %v8962_v29 = vcombine.high %v304_v23, %v308_v25  ;;  %v8961_v36 = vcombine.low %v304_v23, %v308_v25 }
 0x111   :  { %6744 = vmatpush1.bf16.msra.mxu1 %v8905_v30  ;;  %v803_v9 = vld [vmem:[#allocation5 + $0x1220] sm:$0xff] }
 0x112   :  { %6745 = vmatprep.subr.bf16.mxu1 %v8914_v32  ;;  %v9456_v24 = vcombine.high %v799_v8, %v803_v9  ;;  %v807_v17 = vld [vmem:[#allocation5 + $0x1240] sm:$0xff]  ;;  %v9455_v20 = vcombine.low %v799_v8, %v803_v9  ;;  %v316_v32 = vld [vmem:[#allocation5 + $0x2e8] sm:$0xff] }
 0x113   :  { %6580 = vmatpush1.bf16.msra.mxu0 %v9415_v31  ;;  %v811_v18 = vld [vmem:[#allocation5 + $0x1260] sm:$0xff]  ;;  %v312_v31 = vld [vmem:[#allocation5 + $0x2c8] sm:$0xff] }
 0x114   :  { %6581 = vmatprep.subr.bf16.mxu0 %v9424_v37  ;;  %v9464_v22 = vcombine.high %v807_v17, %v811_v18  ;;  %v815_v59 = vld [vmem:[#allocation5 + $0x1280] sm:$0xff]  ;;  %v9463_v28 = vcombine.low %v807_v17, %v811_v18  ;;  %v8970_v39 = vcombine.high %v312_v31, %v316_v32  ;;  %v8969_v3 = vcombine.low %v312_v31, %v316_v32 }
 0x115   :  { %6746 = vmatpush1.bf16.msra.mxu1 %v8913_v40  ;;  %v819_v0 = vld [vmem:[#allocation5 + $0x12a0] sm:$0xff] }
 0x116   :  { %6747 = vmatprep.subr.bf16.mxu1 %v8922_v43  ;;  %v9472_v30 = vcombine.high %v815_v59, %v819_v0  ;;  %v823_v34 = vld [vmem:[#allocation5 + $0x12c0] sm:$0xff]  ;;  %v9471_v37 = vcombine.low %v815_v59, %v819_v0  ;;  %v324_v43 = vld [vmem:[#allocation5 + $0x328] sm:$0xff] }
 0x117   :  { %6582 = vmatpush1.bf16.msra.mxu0 %v9423_v41  ;;  %v827_v35 = vld [vmem:[#allocation5 + $0x12e0] sm:$0xff]  ;;  %v320_v41 = vld [vmem:[#allocation5 + $0x308] sm:$0xff] }
 0x118   :  { %6583 = vmatprep.subr.bf16.mxu0 %v9432_v63  ;;  %v9480_v40 = vcombine.high %v823_v34, %v827_v35  ;;  %v831_v63 = vld [vmem:[#allocation5 + $0x1300] sm:$0xff]  ;;  %v9479_v48 = vcombine.low %v823_v34, %v827_v35  ;;  %v8978_v49 = vcombine.high %v320_v41, %v324_v43  ;;  %v8977_v57 = vcombine.low %v320_v41, %v324_v43  ;;  %v368_v41 = vld [vmem:[#allocation5 + $0x488] sm:$0xff] }
 0x119   :  { %6748 = vmatpush1.bf16.msra.mxu1 %v8921_v50  ;;  %v835_v45 = vld [vmem:[#allocation5 + $0x1320] sm:$0xff]  ;;  %v372_v43 = vld [vmem:[#allocation5 + $0x4a8] sm:$0xff] }
 0x11a   :  { %6749 = vmatprep.subr.bf16.mxu1 %v8930_v54  ;;  %v9488_v50 = vcombine.high %v831_v63, %v835_v45  ;;  %v332_v54 = vld [vmem:[#allocation5 + $0x368] sm:$0xff]  ;;  %v843_v56 = vld [vmem:[#allocation5 + $0x1360] sm:$0xff]  ;;  %v9487_v58 = vcombine.low %v831_v63, %v835_v45 }
 0x11b   :  { %6584 = vmatpush1.bf16.msra.mxu0 %v9431_v51  ;;  %v328_v51 = vld [vmem:[#allocation5 + $0x348] sm:$0xff]  ;;  %v851_v6 = vld [vmem:[#allocation5 + $0x13a0] sm:$0xff] }
 0x11c   :  { %6585 = vmatprep.subr.bf16.mxu0 %v9440_v55  ;;  %v839_v55 = vld [vmem:[#allocation5 + $0x1340] sm:$0xff]  ;;  %v8986_v60 = vcombine.high %v328_v51, %v332_v54  ;;  %v8985_v7 = vcombine.low %v328_v51, %v332_v54  ;;  %v376_v51 = vld [vmem:[#allocation5 + $0x4c8] sm:$0xff] }
 0x11d   :  { %6750 = vmatpush1.bf16.msra.mxu1 %v8929_v61  ;;  %v9496_v61 = vcombine.high %v839_v55, %v843_v56  ;;  %v9495_v8 = vcombine.low %v839_v55, %v843_v56  ;;  %v855_v26 = vld [vmem:[#allocation5 + $0x13c0] sm:$0xff]  ;;  %v380_v54 = vld [vmem:[#allocation5 + $0x4e8] sm:$0xff] }
 0x11e   :  { %6751 = vmatprep.subr.bf16.mxu1 %v8938_v1  ;;  %v340_v1 = vld [vmem:[#allocation5 + $0x3a8] sm:$0xff]  ;;  %v859_v16 = vld [vmem:[#allocation5 + $0x13e0] sm:$0xff] }
 0x11f   :  { %6586 = vmatpush1.bf16.msra.mxu0 %v9439_v62  ;;  %v336_v62 = vld [vmem:[#allocation5 + $0x388] sm:$0xff]  ;;  %v863_v25 = vld [vmem:[#allocation5 + $0x1400] sm:$0xff] }
 0x120   :  { %6587 = vmatprep.subr.bf16.mxu0 %v9448_v4  ;;  %v847_v4 = vld [vmem:[#allocation5 + $0x1380] sm:$0xff]  ;;  %v8994_v9 = vcombine.high %v336_v62, %v340_v1  ;;  %v8993_v17 = vcombine.low %v336_v62, %v340_v1  ;;  %v384_v62 = vld [vmem:[#allocation5 + $0x508] sm:$0xff] }
 0x121   :  { %6752 = vmatpush1.bf16.msra.mxu1 %v8937_v10  ;;  %v9504_v10 = vcombine.high %v847_v4, %v851_v6  ;;  %v9503_v18 = vcombine.low %v847_v4, %v851_v6  ;;  %v867_v59 = vld [vmem:[#allocation5 + $0x1420] sm:$0xff]  ;;  %v388_v1 = vld [vmem:[#allocation5 + $0x528] sm:$0xff] }
 0x122   :  { %6753 = vmatprep.subr.bf16.mxu1 %v8946_v13  ;;  %v348_v13 = vld [vmem:[#allocation5 + $0x3e8] sm:$0xff]  ;;  %v871_v32 = vld [vmem:[#allocation5 + $0x1440] sm:$0xff] }
 0x123   :  { %6588 = vmatpush1.bf16.msra.mxu0 %v9447_v11  ;;  %v344_v11 = vld [vmem:[#allocation5 + $0x3c8] sm:$0xff]  ;;  %v875_v34 = vld [vmem:[#allocation5 + $0x1460] sm:$0xff] }
 0x124   :  { %6589 = vmatprep.subr.bf16.mxu0 %v9456_v24  ;;  %v157_v24 = vcombine.high %v10813_v42, %v10813_v42  ;;  %v9001_v0 = vcombine.low %v344_v11, %v348_v13  ;;  %v9511_v42 = vcombine.low %v855_v26, %v859_v16  ;;  %v879_v45 = vld [vmem:[#allocation5 + $0x1480] sm:$0xff] }
 0x125   :  { %6754 = vmatpush1.bf16.msra.mxu1 %v8945_v19  ;;  %v9002_v19 = vcombine.high %v344_v11, %v348_v13  ;;  %v887_v55 = vld [vmem:[#allocation5 + $0x14c0] sm:$0xff]  ;;  %v392_v11 = vld [vmem:[#allocation5 + $0x548] sm:$0xff] }
 0x126   :  { %6755 = vmatprep.subr.bf16.mxu1 %v8954_v21  ;;  %v352_v21 = vld [vmem:[#allocation5 + $0x408] sm:$0xff]  ;;  %v10838_v23 = vrot.slane %v157_v24, %v10759_v53  ;;  %v891_v56 = vld [vmem:[#allocation5 + $0x14e0] sm:$0xff] }
 0x127   :  { %6590 = vmatpush1.bf16.msra.mxu0 %v9455_v20  ;;  %v9512_v20 = vcombine.high %v855_v26, %v859_v16  ;;  %v895_v4 = vld [vmem:[#allocation5 + $0x1500] sm:$0xff]  ;;  %v396_v13 = vld [vmem:[#allocation5 + $0x568] sm:$0xff]  ;;  %v9041_v16 = vcombine.low %v384_v62, %v388_v1 }
 0x128   :  { %6591 = vmatprep.subr.bf16.mxu0 %v9464_v22  ;;  %v356_v22 = vld [vmem:[#allocation5 + $0x428] sm:$0xff]  ;;  %v173_v31 = vcombine.high %v10838_v23, %v10838_v23  ;;  %v899_v6 = vld [vmem:[#allocation5 + $0x1520] sm:$0xff] }
 0x129   :  { %6756 = vmatpush1.bf16.msra.mxu1 %v8953_v27  ;;  %v9010_v27 = vcombine.high %v352_v21, %v356_v22  ;;  %v9009_v35 = vcombine.low %v352_v21, %v356_v22  ;;  %v903_v24 = vld [vmem:[#allocation5 + $0x1540] sm:$0xff]  ;;  %v404_v21 = vld [vmem:[#allocation5 + $0x5a8] sm:$0xff] }
 0x12a   :  { %6757 = vmatprep.subr.bf16.mxu1 %v8962_v29  ;;  %v360_v29 = vld [vmem:[#allocation5 + $0x448] sm:$0xff]  ;;  %v10846_v63 = vpack.c.bf16 %v173_v31, %v173_v31  ;;  %v907_v26 = vld [vmem:[#allocation5 + $0x1560] sm:$0xff] }
 0x12b   :  { %6592 = vmatpush1.bf16.msra.mxu0 %v9463_v28  ;;  %v9520_v28 = vcombine.high %v863_v25, %v867_v59  ;;  %v911_v22 = vld [vmem:[#allocation5 + $0x1580] sm:$0xff] }
 0x12c   :  { %6593 = vmatprep.subr.bf16.mxu0 %v9472_v30  ;;  %v364_v30 = vld [vmem:[#allocation5 + $0x468] sm:$0xff]  ;;  %v923_v31 = vld [vmem:[#allocation5 + $0x15e0] sm:$0xff] }
 0x12d   :  { %6758 = vmatpush1.bf16.msra.mxu1 %v8961_v36  ;;  %v10844_v36 = vpack.c.bf16 %v10817_v52, %v10817_v52  ;;  %v9527_v52 = vcombine.low %v871_v32, %v875_v34 }
 0x12e   :  { %6759 = vmatprep.subr.bf16.mxu1 %v8970_v39  ;;  %v9018_v39 = vcombine.high %v360_v29, %v364_v30 }
 0x12f   :  { %6594 = vmatpush1.bf16.msra.mxu0 %v9471_v37  ;;  %v9519_v37 = vcombine.low %v863_v25, %v867_v59  ;;  %v915_v25 = vld [vmem:[#allocation5 + $0x15a0] sm:$0xff]  ;;  %v9049_v59 = vcombine.low %v392_v11, %v396_v13 }
 0x130   :  { %6595 = vmatprep.subr.bf16.mxu0 %v9480_v40  ;;  %v9528_v40 = vcombine.high %v871_v32, %v875_v34  ;;  %v9567_v34 = vcombine.low %v911_v22, %v915_v25 }
 0x131   :  { %6760 = vmatpush1.bf16.msra.mxu1 %v8969_v3  ;;  %v883_v3 = vld [vmem:[#allocation5 + $0x14a0] sm:$0xff] }
 0x132   :  { %6761 = vmatprep.subr.bf16.mxu1 %v8978_v49  ;;  %v9026_v49 = vcombine.high %v368_v41, %v372_v43 }
 0x133   :  { %6596 = vmatpush1.bf16.msra.mxu0 %v9479_v48  ;;  %v9017_v48 = vcombine.low %v360_v29, %v364_v30  ;;  %v412_v29 = vld [vmem:[#allocation5 + $0x5e8] sm:$0xff]  ;;  %v919_v30 = vld [vmem:[#allocation5 + $0x15c0] sm:$0xff] }
 0x134   :  { %6597 = vmatprep.subr.bf16.mxu0 %v9488_v50  ;;  %v9536_v50 = vcombine.high %v879_v45, %v883_v3 }
 0x135   :  { %6762 = vmatpush1.bf16.msra.mxu1 %v8977_v57  ;;  %v9025_v57 = vcombine.low %v368_v41, %v372_v43  ;;  %v927_v41 = vld [vmem:[#allocation5 + $0x1600] sm:$0xff] }
 0x136   :  { %6763 = vmatprep.subr.bf16.mxu1 %v8986_v60  ;;  %v9034_v60 = vcombine.high %v376_v51, %v380_v54  ;;  %v931_v43 = vld [vmem:[#allocation5 + $0x1620] sm:$0xff] }
 0x137   :  { %6598 = vmatpush1.bf16.msra.mxu0 %v9487_v58  ;;  %v9535_v58 = vcombine.low %v879_v45, %v883_v3  ;;  %v9575_v3 = vcombine.low %v919_v30, %v923_v31 }
 0x138   :  { %6599 = vmatprep.subr.bf16.mxu0 %v9496_v61  ;;  %v9544_v61 = vcombine.high %v887_v55, %v891_v56 }
 0x139   :  { %6764 = vmatpush1.bf16.msra.mxu1 %v8985_v7  ;;  %v9033_v7 = vcombine.low %v376_v51, %v380_v54  ;;  %v935_v51 = vld [vmem:[#allocation5 + $0x1640] sm:$0xff] }
 0x13a   :  { %6765 = vmatprep.subr.bf16.mxu1 %v8994_v9  ;;  %v9042_v9 = vcombine.high %v384_v62, %v388_v1  ;;  %v939_v54 = vld [vmem:[#allocation5 + $0x1660] sm:$0xff] }
 0x13b   :  { %6600 = vmatpush1.bf16.msra.mxu0 %v9495_v8  ;;  %v9543_v8 = vcombine.low %v887_v55, %v891_v56  ;;  %v9583_v56 = vcombine.low %v927_v41, %v931_v43  ;;  %v943_v62 = vld [vmem:[#allocation5 + $0x1680] sm:$0xff] }
 0x13c   :  { %6601 = vmatprep.subr.bf16.mxu0 %v9504_v10  ;;  %v9552_v10 = vcombine.high %v895_v4, %v899_v6  ;;  %v947_v1 = vld [vmem:[#allocation5 + $0x16a0] sm:$0xff] }
 0x13d   :  { %6766 = vmatpush1.bf16.msra.mxu1 %v8993_v17  ;;  %v9551_v17 = vcombine.low %v895_v4, %v899_v6  ;;  %v9591_v6 = vcombine.low %v935_v51, %v939_v54 }
 0x13e   :  { %6767 = vmatprep.subr.bf16.mxu1 %v9002_v19  ;;  %v9560_v19 = vcombine.high %v903_v24, %v907_v26 }
 0x13f   :  { %6602 = vmatpush1.bf16.msra.mxu0 %v9503_v18  ;;  %v9050_v18 = vcombine.high %v392_v11, %v396_v13  ;;  %v951_v11 = vld [vmem:[#allocation5 + $0x16c0] sm:$0xff] }
 0x140   :  { %6603 = vmatprep.subr.bf16.mxu0 %v9512_v20  ;;  %v400_v20 = vld [vmem:[#allocation5 + $0x588] sm:$0xff]  ;;  %v955_v13 = vld [vmem:[#allocation5 + $0x16e0] sm:$0xff] }
 0x141   :  { %6768 = vmatpush1.bf16.msra.mxu1 %v9001_v0  ;;  %v9559_v0 = vcombine.low %v903_v24, %v907_v26  ;;  %v9057_v32 = vcombine.low %v400_v20, %v404_v21  ;;  %v9599_v26 = vcombine.low %v943_v62, %v947_v1 }
 0x142   :  { %6778 = vmatprep.subr.bf16.mxu1 %v9010_v27  ;;  %v9568_v27 = vcombine.high %v911_v22, %v915_v25  ;;  %v9607_v25 = vcombine.low %v951_v11, %v955_v13 }
 0x143   :  { %6604 = vmatpush1.bf16.msra.mxu0 %v9511_v42  ;;  %v9058_v42 = vcombine.high %v400_v20, %v404_v21  ;;  %v959_v20 = vld [vmem:[#allocation5 + $0x1700] sm:$0xff] }
 0x144   :  { %6614 = vmatprep.subr.bf16.mxu0 %v9520_v28  ;;  %6770 = vmatmul.mubr.bf16.vlgmr.msra.gmra.mrb[4].mxu1 %v10797_v33  ;;  %v408_v28 = vld [vmem:[#allocation5 + $0x5c8] sm:$0xff]  ;;  %v963_v21 = vld [vmem:[#allocation5 + $0x1720] sm:$0xff] }
 0x145   :  { %6779 = vmatpush1.bf16.msra.mxu1 %v9009_v35  ;;  %6810 = vmatprep.mubr.bf16.mxu1 %v10805_v46  ;;  %v9066_v35 = vcombine.high %v408_v28, %v412_v29  ;;  %v9065_v45 = vcombine.low %v408_v28, %v412_v29  ;;  %v967_v28 = vld [vmem:[#allocation5 + $0x1740] sm:$0xff] }
 0x146   :  { %6606 = vmatmul.mubr.bf16.vlgmr.msra.gmra.mrb[0].mxu0 %v10844_v36  ;;  %6780 = vmatprep.subr.bf16.mxu1 %v9018_v39  ;;  %v416_v39 = vld [vmem:[#allocation5 + $0x608] sm:$0xff]  ;;  %v971_v29 = vld [vmem:[#allocation5 + $0x1760] sm:$0xff] }
 0x147   :  { %6615 = vmatpush1.bf16.msra.mxu0 %v9519_v37  ;;  %6646 = vmatprep.mubr.bf16.mxu0 %v10846_v63  ;;  %v9576_v37 = vcombine.high %v919_v30, %v923_v31  ;;  %v9615_v31 = vcombine.low %v959_v20, %v963_v21 }
 0x148   :  { %6616 = vmatprep.subr.bf16.mxu0 %v9528_v40  ;;  %v420_v40 = vld [vmem:[#allocation5 + $0x628] sm:$0xff] }
 0x149   :  { %6781 = vmatpush1.bf16.msra.mxu1 %v9017_v48  ;;  %v9074_v48 = vcombine.high %v416_v39, %v420_v40  ;;  %v9073_v55 = vcombine.low %v416_v39, %v420_v40  ;;  %v975_v39 = vld [vmem:[#allocation5 + $0x1780] sm:$0xff] }
 0x14a   :  { %6782 = vmatprep.subr.bf16.mxu1 %v9026_v49  ;;  %v424_v49 = vld [vmem:[#allocation5 + $0x648] sm:$0xff]  ;;  %v979_v40 = vld [vmem:[#allocation5 + $0x17a0] sm:$0xff] }
 0x14b   :  { %6617 = vmatpush1.bf16.msra.mxu0 %v9527_v52  ;;  %v9584_v52 = vcombine.high %v927_v41, %v931_v43  ;;  %v9623_v43 = vcombine.low %v967_v28, %v971_v29 }
 0x14c   :  { %6618 = vmatprep.subr.bf16.mxu0 %v9536_v50  ;;  %v428_v50 = vld [vmem:[#allocation5 + $0x668] sm:$0xff] }
 0x14d   :  { %6783 = vmatpush1.bf16.msra.mxu1 %v9025_v57  ;;  %v9082_v57 = vcombine.high %v424_v49, %v428_v50  ;;  %v9081_v4 = vcombine.low %v424_v49, %v428_v50  ;;  %v983_v49 = vld [vmem:[#allocation5 + $0x17c0] sm:$0xff] }
 0x14e   :  { %6784 = vmatprep.subr.bf16.mxu1 %v9034_v60  ;;  %v432_v60 = vld [vmem:[#allocation5 + $0x688] sm:$0xff]  ;;  %v987_v50 = vld [vmem:[#allocation5 + $0x17e0] sm:$0xff] }
 0x14f   :  { %6619 = vmatpush1.bf16.msra.mxu0 %v9535_v58  ;;  %v9592_v58 = vcombine.high %v935_v51, %v939_v54  ;;  %v10852_v51 = vld [vmem:[#allocation2 + $0x18] sm:$0xff] }
 0x150   :  { %6620 = vmatprep.subr.bf16.mxu0 %v9544_v61  ;;  %v436_v61 = vld [vmem:[#allocation5 + $0x6a8] sm:$0xff] }
 0x151   :  { %6785 = vmatpush1.bf16.msra.mxu1 %v9033_v7  ;;  %v9090_v7 = vcombine.high %v432_v60, %v436_v61  ;;  %v9089_v24 = vcombine.low %v432_v60, %v436_v61  ;;  %v484_v60 = vld [vmem:[#allocation5 + $0x828] sm:$0xff]  ;;  %v10856_v61 = vrot.slane %v10852_v51, %v10759_v53 }
 0x152   :  { %6786 = vmatprep.subr.bf16.mxu1 %v9042_v9  ;;  %v440_v9 = vld [vmem:[#allocation5 + $0x6c8] sm:$0xff] }
 0x153   :  { %6621 = vmatpush1.bf16.msra.mxu0 %v9543_v8  ;;  %v9600_v8 = vcombine.high %v943_v62, %v947_v1  ;;  %v991_v62 = vld [vmem:[#allocation5 + $0x1800] sm:$0xff] }
 0x154   :  { %6622 = vmatprep.subr.bf16.mxu0 %v9552_v10  ;;  %v444_v10 = vld [vmem:[#allocation5 + $0x6e8] sm:$0xff]  ;;  %v995_v1 = vld [vmem:[#allocation5 + $0x1820] sm:$0xff] }
 0x155   :  { %6787 = vmatpush1.bf16.msra.mxu1 %v9041_v16  ;;  %v9098_v16 = vcombine.high %v440_v9, %v444_v10  ;;  %v9097_v22 = vcombine.low %v440_v9, %v444_v10  ;;  %v488_v9 = vld [vmem:[#allocation5 + $0x848] sm:$0xff] }
 0x156   :  { %6788 = vmatprep.subr.bf16.mxu1 %v9050_v18  ;;  %v448_v18 = vld [vmem:[#allocation5 + $0x708] sm:$0xff] }
 0x157   :  { %6623 = vmatpush1.bf16.msra.mxu0 %v9551_v17  ;;  %v9608_v17 = vcombine.high %v951_v11, %v955_v13  ;;  %v492_v10 = vld [vmem:[#allocation5 + $0x868] sm:$0xff]  ;;  %v189_v11 = vcombine.high %v10856_v61, %v10856_v61  ;;  %v999_v13 = vld [vmem:[#allocation5 + $0x1840] sm:$0xff] }
 0x158   :  { %6624 = vmatprep.subr.bf16.mxu0 %v9560_v19  ;;  %v452_v19 = vld [vmem:[#allocation5 + $0x728] sm:$0xff] }
 0x159   :  { %6789 = vmatpush1.bf16.msra.mxu1 %v9049_v59  ;;  %v9106_v59 = vcombine.high %v448_v18, %v452_v19  ;;  %v9105_v30 = vcombine.low %v448_v18, %v452_v19  ;;  %v9146_v18 = vcombine.high %v488_v9, %v492_v10 }
 0x15a   :  { %6790 = vmatprep.subr.bf16.mxu1 %v9058_v42  ;;  %v456_v42 = vld [vmem:[#allocation5 + $0x748] sm:$0xff] }
 0x15b   :  { %6625 = vmatpush1.bf16.msra.mxu0 %v9559_v0  ;;  %v9616_v0 = vcombine.high %v959_v20, %v963_v21  ;;  %v496_v20 = vld [vmem:[#allocation5 + $0x888] sm:$0xff] }
 0x15c   :  { %6626 = vmatprep.subr.bf16.mxu0 %v9568_v27  ;;  %v460_v27 = vld [vmem:[#allocation5 + $0x768] sm:$0xff] }
 0x15d   :  { %6791 = vmatpush1.bf16.msra.mxu1 %v9057_v32  ;;  %v9114_v32 = vcombine.high %v456_v42, %v460_v27  ;;  %v9113_v41 = vcombine.low %v456_v42, %v460_v27  ;;  %v500_v21 = vld [vmem:[#allocation5 + $0x8a8] sm:$0xff] }
 0x15e   :  { %6792 = vmatprep.subr.bf16.mxu1 %v9066_v35  ;;  %v464_v35 = vld [vmem:[#allocation5 + $0x788] sm:$0xff]  ;;  %v9154_v42 = vcombine.high %v496_v20, %v500_v21 }
 0x15f   :  { %6627 = vmatpush1.bf16.msra.mxu0 %v9567_v34  ;;  %v9624_v34 = vcombine.high %v967_v28, %v971_v29  ;;  %v504_v28 = vld [vmem:[#allocation5 + $0x8c8] sm:$0xff] }
 0x160   :  { %6628 = vmatprep.subr.bf16.mxu0 %v9576_v37  ;;  %v468_v37 = vld [vmem:[#allocation5 + $0x7a8] sm:$0xff] }
 0x161   :  { %6793 = vmatpush1.bf16.msra.mxu1 %v9065_v45  ;;  %v9122_v45 = vcombine.high %v464_v35, %v468_v37  ;;  %v9121_v54 = vcombine.low %v464_v35, %v468_v37  ;;  %v508_v29 = vld [vmem:[#allocation5 + $0x8e8] sm:$0xff] }
 0x162   :  { %6794 = vmatprep.subr.bf16.mxu1 %v9074_v48  ;;  %v472_v48 = vld [vmem:[#allocation5 + $0x7c8] sm:$0xff]  ;;  %v9162_v35 = vcombine.high %v504_v28, %v508_v29 }
 0x163   :  { %6629 = vmatpush1.bf16.msra.mxu0 %v9575_v3  ;;  %v9632_v3 = vcombine.high %v975_v39, %v979_v40 }
 0x164   :  { %6630 = vmatprep.subr.bf16.mxu0 %v9584_v52  ;;  %v476_v52 = vld [vmem:[#allocation5 + $0x7e8] sm:$0xff] }
 0x165   :  { %6795 = vmatpush1.bf16.msra.mxu1 %v9073_v55  ;;  %v9631_v55 = vcombine.low %v975_v39, %v979_v40  ;;  %v512_v39 = vld [vmem:[#allocation5 + $0x908] sm:$0xff] }
 0x166   :  { %6796 = vmatprep.subr.bf16.mxu1 %v9082_v57  ;;  %v9640_v57 = vcombine.high %v983_v49, %v987_v50  ;;  %v516_v40 = vld [vmem:[#allocation5 + $0x928] sm:$0xff] }
 0x167   :  { %6631 = vmatpush1.bf16.msra.mxu0 %v9583_v56  ;;  %v9130_v56 = vcombine.high %v472_v48, %v476_v52 }
 0x168   :  { %6632 = vmatprep.subr.bf16.mxu0 %v9592_v58  ;;  %v480_v58 = vld [vmem:[#allocation5 + $0x808] sm:$0xff] }
 0x169   :  { %6797 = vmatpush1.bf16.msra.mxu1 %v9081_v4  ;;  %v9129_v4 = vcombine.low %v472_v48, %v476_v52  ;;  %v9170_v48 = vcombine.high %v512_v39, %v516_v40 }
 0x16a   :  { %6798 = vmatprep.subr.bf16.mxu1 %v9090_v7  ;;  %v9138_v7 = vcombine.high %v480_v58, %v484_v60 }
 0x16b   :  { %6633 = vmatpush1.bf16.msra.mxu0 %v9591_v6  ;;  %v9639_v6 = vcombine.low %v983_v49, %v987_v50  ;;  %v520_v49 = vld [vmem:[#allocation5 + $0x948] sm:$0xff] }
 0x16c   :  { %6634 = vmatprep.subr.bf16.mxu0 %v9600_v8  ;;  %v9648_v8 = vcombine.high %v991_v62, %v995_v1  ;;  %v524_v50 = vld [vmem:[#allocation5 + $0x968] sm:$0xff] }
 0x16d   :  { %6799 = vmatpush1.bf16.msra.mxu1 %v9089_v24  ;;  %v1003_v24 = vld [vmem:[#allocation5 + $0x1860] sm:$0xff] }
 0x16e   :  { %6800 = vmatprep.subr.bf16.mxu1 %v9098_v16  ;;  %v10862_v16 = vpack.c.bf16 %v10838_v23, %v10838_v23  ;;  %v9656_v19 = vcombine.high %v999_v13, %v1003_v24  ;;  %v9655_v23 = vcombine.low %v999_v13, %v1003_v24  ;;  %v540_v13 = vld [vmem:[#allocation5 + $0x9e8] sm:$0xff]  ;;  %v1047_v24 = vld [vmem:[#allocation5 + $0x19c0] sm:$0xff] }
 0x16f   :  { %6635 = vmatpush1.bf16.msra.mxu0 %v9599_v26  ;;  %v9137_v26 = vcombine.low %v480_v58, %v484_v60  ;;  %v9178_v58 = vcombine.high %v520_v49, %v524_v50 }
 0x170   :  { %6636 = vmatprep.subr.bf16.mxu0 %v9608_v17  ;;  %v9647_v17 = vcombine.low %v991_v62, %v995_v1  ;;  %v528_v62 = vld [vmem:[#allocation5 + $0x988] sm:$0xff] }
 0x171   :  { %6801 = vmatpush1.bf16.msra.mxu1 %v9097_v22  ;;  %v10864_v22 = vpack.c.bf16 %v189_v11, %v189_v11  ;;  %v532_v1 = vld [vmem:[#allocation5 + $0x9a8] sm:$0xff] }
 0x172   :  { %6802 = vmatprep.subr.bf16.mxu1 %v9106_v59  ;;  %v1011_v59 = vld [vmem:[#allocation5 + $0x18a0] sm:$0xff]  ;;  %v536_v11 = vld [vmem:[#allocation5 + $0x9c8] sm:$0xff] }
 0x173   :  { %6637 = vmatpush1.bf16.msra.mxu0 %v9607_v25  ;;  %v1007_v25 = vld [vmem:[#allocation5 + $0x1880] sm:$0xff] }
 0x174   :  { %6638 = vmatprep.subr.bf16.mxu0 %v9616_v0  ;;  %v9145_v0 = vcombine.low %v488_v9, %v492_v10  ;;  %v9664_v27 = vcombine.high %v1007_v25, %v1011_v59  ;;  %v9186_v9 = vcombine.high %v528_v62, %v532_v1 }
 0x175   :  { %6803 = vmatpush1.bf16.msra.mxu1 %v9105_v30  ;;  %v1015_v30 = vld [vmem:[#allocation5 + $0x18c0] sm:$0xff] }
 0x176   :  { %6804 = vmatprep.subr.bf16.mxu1 %v9114_v32  ;;  %v9153_v32 = vcombine.low %v496_v20, %v500_v21  ;;  %v544_v21 = vld [vmem:[#allocation5 + $0xa08] sm:$0xff] }
 0x177   :  { %6639 = vmatpush1.bf16.msra.mxu0 %v9615_v31  ;;  %v1019_v31 = vld [vmem:[#allocation5 + $0x18e0] sm:$0xff] }
 0x178   :  { %6640 = vmatprep.subr.bf16.mxu0 %v9624_v34  ;;  %v9663_v34 = vcombine.low %v1007_v25, %v1011_v59  ;;  %v9672_v37 = vcombine.high %v1015_v30, %v1019_v31  ;;  %v548_v25 = vld [vmem:[#allocation5 + $0xa28] sm:$0xff]  ;;  %v1055_v59 = vld [vmem:[#allocation5 + $0x1a00] sm:$0xff] }
 0x179   :  { %6805 = vmatpush1.bf16.msra.mxu1 %v9113_v41  ;;  %v1023_v41 = vld [vmem:[#allocation5 + $0x1900] sm:$0xff] }
 0x17a   :  { %6806 = vmatprep.subr.bf16.mxu1 %v9122_v45  ;;  %v9161_v45 = vcombine.low %v504_v28, %v508_v29  ;;  %v552_v29 = vld [vmem:[#allocation5 + $0xa48] sm:$0xff] }
 0x17b   :  { %6641 = vmatpush1.bf16.msra.mxu0 %v9623_v43  ;;  %v1027_v43 = vld [vmem:[#allocation5 + $0x1920] sm:$0xff] }
 0x17c   :  { %6642 = vmatprep.subr.bf16.mxu0 %v9632_v3  ;;  %v9671_v3 = vcombine.low %v1015_v30, %v1019_v31  ;;  %v9680_v52 = vcombine.high %v1023_v41, %v1027_v43  ;;  %v556_v30 = vld [vmem:[#allocation5 + $0xa68] sm:$0xff]  ;;  %v1063_v31 = vld [vmem:[#allocation5 + $0x1a40] sm:$0xff] }
 0x17d   :  { %6807 = vmatpush1.bf16.msra.mxu1 %v9121_v54  ;;  %v1031_v54 = vld [vmem:[#allocation5 + $0x1940] sm:$0xff] }
 0x17e   :  { %6808 = vmatprep.subr.bf16.mxu1 %v9130_v56  ;;  %v9169_v56 = vcombine.low %v512_v39, %v516_v40  ;;  %v560_v40 = vld [vmem:[#allocation5 + $0xa88] sm:$0xff] }
 0x17f   :  { %6643 = vmatpush1.bf16.msra.mxu0 %v9631_v55  ;;  %v1035_v55 = vld [vmem:[#allocation5 + $0x1960] sm:$0xff] }
 0x180   :  { %6644 = vmatprep.subr.bf16.mxu0 %v9640_v57  ;;  %v9679_v57 = vcombine.low %v1023_v41, %v1027_v43  ;;  %v9688_v60 = vcombine.high %v1031_v54, %v1035_v55  ;;  %v564_v41 = vld [vmem:[#allocation5 + $0xaa8] sm:$0xff]  ;;  %v1071_v43 = vld [vmem:[#allocation5 + $0x1a80] sm:$0xff] }
 0x181   :  { %6809 = vmatpush1.bf16.msra.mxu1 %v9129_v4  ;;  %v1039_v4 = vld [vmem:[#allocation5 + $0x1980] sm:$0xff] }
 0x182   :  { %6819 = vmatprep.subr.bf16.mxu1 %v9138_v7  ;;  %v9177_v7 = vcombine.low %v520_v49, %v524_v50  ;;  %v568_v50 = vld [vmem:[#allocation5 + $0xac8] sm:$0xff] }
 0x183   :  { %6645 = vmatpush1.bf16.msra.mxu0 %v9639_v6  ;;  %v1043_v6 = vld [vmem:[#allocation5 + $0x19a0] sm:$0xff] }
 0x184   :  { %6655 = vmatprep.subr.bf16.mxu0 %v9648_v8  ;;  %6811 = vmatmul.mubr.bf16.vlgmr.msra.gmra.mrb[4].mxu1 %v10823_v2  ;;  %v9687_v8 = vcombine.low %v1031_v54, %v1035_v55  ;;  %v9696_v10 = vcombine.high %v1039_v4, %v1043_v6  ;;  %v572_v54 = vld [vmem:[#allocation5 + $0xae8] sm:$0xff]  ;;  %v1079_v55 = vld [vmem:[#allocation5 + $0x1ac0] sm:$0xff] }
 0x185   :  { %6820 = vmatpush1.bf16.msra.mxu1 %v9137_v26  ;;  %6851 = vmatprep.mubr.bf16.mxu1 %v10779_v15  ;;  %v1051_v26 = vld [vmem:[#allocation5 + $0x19e0] sm:$0xff] }
 0x186   :  { %6647 = vmatmul.mubr.bf16.vlgmr.msra.gmra.mrb[0].mxu0 %v10862_v16  ;;  %6821 = vmatprep.subr.bf16.mxu1 %v9146_v18  ;;  %v9695_v18 = vcombine.low %v1039_v4, %v1043_v6  ;;  %v9704_v20 = vcombine.high %v1047_v24, %v1051_v26  ;;  %v580_v4 = vld [vmem:[#allocation5 + $0xb28] sm:$0xff]  ;;  %v1087_v6 = vld [vmem:[#allocation5 + $0x1b00] sm:$0xff] }
 0x187   :  { %6656 = vmatpush1.bf16.msra.mxu0 %v9647_v17  ;;  %6687 = vmatprep.mubr.bf16.mxu0 %v10864_v22  ;;  %v9185_v17 = vcombine.low %v528_v62, %v532_v1  ;;  %v576_v1 = vld [vmem:[#allocation5 + $0xb08] sm:$0xff] }
 0x188   :  { %6657 = vmatprep.subr.bf16.mxu0 %v9656_v19  ;;  %v9194_v19 = vcombine.high %v536_v11, %v540_v13 }
 0x189   :  { %6822 = vmatpush1.bf16.msra.mxu1 %v9145_v0  ;;  %v1059_v0 = vld [vmem:[#allocation5 + $0x1a20] sm:$0xff] }
 0x18a   :  { %6823 = vmatprep.subr.bf16.mxu1 %v9154_v42  ;;  %v9703_v42 = vcombine.low %v1047_v24, %v1051_v26  ;;  %v9712_v28 = vcombine.high %v1055_v59, %v1059_v0  ;;  %v588_v24 = vld [vmem:[#allocation5 + $0xb68] sm:$0xff]  ;;  %v1095_v26 = vld [vmem:[#allocation5 + $0x1b40] sm:$0xff] }
 0x18b   :  { %6658 = vmatpush1.bf16.msra.mxu0 %v9655_v23  ;;  %v9193_v23 = vcombine.low %v536_v11, %v540_v13  ;;  %v584_v13 = vld [vmem:[#allocation5 + $0xb48] sm:$0xff] }
 0x18c   :  { %6659 = vmatprep.subr.bf16.mxu0 %v9664_v27  ;;  %v9202_v27 = vcombine.high %v544_v21, %v548_v25 }
 0x18d   :  { %6824 = vmatpush1.bf16.msra.mxu1 %v9153_v32  ;;  %v1067_v32 = vld [vmem:[#allocation5 + $0x1a60] sm:$0xff] }
 0x18e   :  { %6825 = vmatprep.subr.bf16.mxu1 %v9162_v35  ;;  %v9711_v35 = vcombine.low %v1055_v59, %v1059_v0  ;;  %v9720_v39 = vcombine.high %v1063_v31, %v1067_v32  ;;  %v596_v59 = vld [vmem:[#allocation5 + $0xba8] sm:$0xff]  ;;  %v1103_v0 = vld [vmem:[#allocation5 + $0x1b80] sm:$0xff] }
 0x18f   :  { %6660 = vmatpush1.bf16.msra.mxu0 %v9663_v34  ;;  %v9201_v34 = vcombine.low %v544_v21, %v548_v25  ;;  %v592_v25 = vld [vmem:[#allocation5 + $0xb88] sm:$0xff] }
 0x190   :  { %6661 = vmatprep.subr.bf16.mxu0 %v9672_v37  ;;  %v9210_v37 = vcombine.high %v552_v29, %v556_v30 }
 0x191   :  { %6826 = vmatpush1.bf16.msra.mxu1 %v9161_v45  ;;  %v1075_v45 = vld [vmem:[#allocation5 + $0x1aa0] sm:$0xff] }
 0x192   :  { %6827 = vmatprep.subr.bf16.mxu1 %v9170_v48  ;;  %v9719_v48 = vcombine.low %v1063_v31, %v1067_v32  ;;  %v9728_v49 = vcombine.high %v1071_v43, %v1075_v45  ;;  %v604_v31 = vld [vmem:[#allocation5 + $0xbe8] sm:$0xff]  ;;  %v174_v32 = vcombine.high %v10852_v51, %v10852_v51 }
 0x193   :  { %6662 = vmatpush1.bf16.msra.mxu0 %v9671_v3  ;;  %v9209_v3 = vcombine.low %v552_v29, %v556_v30  ;;  %v600_v30 = vld [vmem:[#allocation5 + $0xbc8] sm:$0xff] }
 0x194   :  { %6663 = vmatprep.subr.bf16.mxu0 %v9680_v52  ;;  %v9218_v52 = vcombine.high %v560_v40, %v564_v41 }
 0x195   :  { %6828 = vmatpush1.bf16.msra.mxu1 %v9169_v56  ;;  %v1083_v56 = vld [vmem:[#allocation5 + $0x1ae0] sm:$0xff] }
 0x196   :  { %6829 = vmatprep.subr.bf16.mxu1 %v9178_v58  ;;  %v9727_v58 = vcombine.low %v1071_v43, %v1075_v45  ;;  %v9736_v62 = vcombine.high %v1079_v55, %v1083_v56  ;;  %v608_v43 = vld [vmem:[#allocation5 + $0xc08] sm:$0xff] }
 0x197   :  { %6664 = vmatpush1.bf16.msra.mxu0 %v9679_v57  ;;  %v9217_v57 = vcombine.low %v560_v40, %v564_v41  ;;  %v9258_v40 = vcombine.high %v600_v30, %v604_v31  ;;  %v612_v45 = vld [vmem:[#allocation5 + $0xc28] sm:$0xff] }
 0x198   :  { %6665 = vmatprep.subr.bf16.mxu0 %v9688_v60  ;;  %v9226_v60 = vcombine.high %v568_v50, %v572_v54 }
 0x199   :  { %6830 = vmatpush1.bf16.msra.mxu1 %v9177_v7  ;;  %v1091_v7 = vld [vmem:[#allocation5 + $0x1b20] sm:$0xff] }
 0x19a   :  { %6831 = vmatprep.subr.bf16.mxu1 %v9186_v9  ;;  %v9735_v9 = vcombine.low %v1079_v55, %v1083_v56  ;;  %v9744_v11 = vcombine.high %v1087_v6, %v1091_v7  ;;  %v616_v55 = vld [vmem:[#allocation5 + $0xc48] sm:$0xff] }
 0x19b   :  { %6666 = vmatpush1.bf16.msra.mxu0 %v9687_v8  ;;  %v9225_v8 = vcombine.low %v568_v50, %v572_v54  ;;  %v9266_v50 = vcombine.high %v608_v43, %v612_v45  ;;  %v620_v56 = vld [vmem:[#allocation5 + $0xc68] sm:$0xff] }
 0x19c   :  { %6667 = vmatprep.subr.bf16.mxu0 %v9696_v10  ;;  %v9234_v10 = vcombine.high %v576_v1, %v580_v4 }
 0x19d   :  { %6832 = vmatpush1.bf16.msra.mxu1 %v9185_v17  ;;  %v1099_v17 = vld [vmem:[#allocation5 + $0x1b60] sm:$0xff] }
 0x19e   :  { %6833 = vmatprep.subr.bf16.mxu1 %v9194_v19  ;;  %v9743_v19 = vcombine.low %v1087_v6, %v1091_v7  ;;  %v9752_v21 = vcombine.high %v1095_v26, %v1099_v17  ;;  %v624_v7 = vld [vmem:[#allocation5 + $0xc88] sm:$0xff] }
 0x19f   :  { %6668 = vmatpush1.bf16.msra.mxu0 %v9695_v18  ;;  %v9233_v18 = vcombine.low %v576_v1, %v580_v4  ;;  %v9274_v4 = vcombine.high %v616_v55, %v620_v56 }
 0x1a0   :  { %6669 = vmatprep.subr.bf16.mxu0 %v9704_v20  ;;  %v9242_v20 = vcombine.high %v584_v13, %v588_v24 }
 0x1a1   :  { %6834 = vmatpush1.bf16.msra.mxu1 %v9193_v23  ;;  %v1107_v23 = vld [vmem:[#allocation5 + $0x1ba0] sm:$0xff] }
 0x1a2   :  { %6835 = vmatprep.subr.bf16.mxu1 %v9202_v27  ;;  %v9751_v27 = vcombine.low %v1095_v26, %v1099_v17  ;;  %v9760_v29 = vcombine.high %v1103_v0, %v1107_v23  ;;  %v632_v17 = vld [vmem:[#allocation5 + $0xcc8] sm:$0xff] }
 0x1a3   :  { %6670 = vmatpush1.bf16.msra.mxu0 %v9703_v42  ;;  %v9241_v42 = vcombine.low %v584_v13, %v588_v24  ;;  %v9273_v13 = vcombine.low %v616_v55, %v620_v56 }
 0x1a4   :  { %6671 = vmatprep.subr.bf16.mxu0 %v9712_v28  ;;  %v9250_v28 = vcombine.high %v592_v25, %v596_v59 }
 0x1a5   :  { %6836 = vmatpush1.bf16.msra.mxu1 %v9201_v34  ;;  %v1111_v34 = vld [vmem:[#allocation5 + $0x1bc0] sm:$0xff] }
 0x1a6   :  { %6837 = vmatprep.subr.bf16.mxu1 %v9210_v37  ;;  %v9249_v37 = vcombine.low %v592_v25, %v596_v59 }
 0x1a7   :  { %6672 = vmatpush1.bf16.msra.mxu0 %v9711_v35  ;;  %v1115_v35 = vld [vmem:[#allocation5 + $0x1be0] sm:$0xff] }
 0x1a8   :  { %6673 = vmatprep.subr.bf16.mxu0 %v9720_v39  ;;  %v9759_v39 = vcombine.low %v1103_v0, %v1107_v23  ;;  %v9768_v41 = vcombine.high %v1111_v34, %v1115_v35  ;;  %v9767_v51 = vcombine.low %v1111_v34, %v1115_v35  ;;  %v640_v23 = vld [vmem:[#allocation5 + $0xd08] sm:$0xff] }
 0x1a9   :  { %6838 = vmatpush1.bf16.msra.mxu1 %v9209_v3  ;;  %v10873_v3 = vrot.slane %v174_v32, %v10759_v53  ;;  %v9265_v53 = vcombine.low %v608_v43, %v612_v45  ;;  %v648_v34 = vld [vmem:[#allocation5 + $0xd48] sm:$0xff] }
 0x1aa   :  { %6839 = vmatprep.subr.bf16.mxu1 %v9218_v52  ;;  %v1123_v52 = vld [vmem:[#allocation5 + $0x1c20] sm:$0xff]  ;;  %v652_v35 = vld [vmem:[#allocation5 + $0xd68] sm:$0xff] }
 0x1ab   :  { %6674 = vmatpush1.bf16.msra.mxu0 %v9719_v48  ;;  %v1119_v48 = vld [vmem:[#allocation5 + $0x1c00] sm:$0xff]  ;;  %v9306_v43 = vcombine.high %v648_v34, %v652_v35 }
 0x1ac   :  { %6675 = vmatprep.subr.bf16.mxu0 %v9728_v49  ;;  %v9257_v49 = vcombine.low %v600_v30, %v604_v31  ;;  %v9776_v54 = vcombine.high %v1119_v48, %v1123_v52  ;;  %v9775_v1 = vcombine.low %v1119_v48, %v1123_v52  ;;  %v656_v48 = vld [vmem:[#allocation5 + $0xd88] sm:$0xff] }
 0x1ad   :  { %6840 = vmatpush1.bf16.msra.mxu1 %v9217_v57  ;;  %v190_v57 = vcombine.high %v10873_v3, %v10873_v3  ;;  %v660_v52 = vld [vmem:[#allocation5 + $0xda8] sm:$0xff] }
 0x1ae   :  { %6841 = vmatprep.subr.bf16.mxu1 %v9226_v60  ;;  %v1131_v60 = vld [vmem:[#allocation5 + $0x1c60] sm:$0xff]  ;;  %v9314_v55 = vcombine.high %v656_v48, %v660_v52 }
 0x1af   :  { %6676 = vmatpush1.bf16.msra.mxu0 %v9727_v58  ;;  %v1127_v58 = vld [vmem:[#allocation5 + $0x1c40] sm:$0xff] }
 0x1b0   :  { %6677 = vmatprep.subr.bf16.mxu0 %v9736_v62  ;;  %v10879_v62 = vpack.c.bf16 %v10856_v61, %v10856_v61  ;;  %v9784_v6 = vcombine.high %v1127_v58, %v1131_v60  ;;  %v9783_v61 = vcombine.low %v1127_v58, %v1131_v60  ;;  %v664_v58 = vld [vmem:[#allocation5 + $0xdc8] sm:$0xff] }
 0x1b1   :  { %6842 = vmatpush1.bf16.msra.mxu1 %v9225_v8  ;;  %v628_v8 = vld [vmem:[#allocation5 + $0xca8] sm:$0xff] }
 0x1b2   :  { %6843 = vmatprep.subr.bf16.mxu1 %v9234_v10  ;;  %v1135_v10 = vld [vmem:[#allocation5 + $0x1c80] sm:$0xff]  ;;  %v9282_v24 = vcombine.high %v624_v7, %v628_v8  ;;  %v668_v60 = vld [vmem:[#allocation5 + $0xde8] sm:$0xff] }
 0x1b3   :  { %6678 = vmatpush1.bf16.msra.mxu0 %v9735_v9  ;;  %v10881_v9 = vpack.c.bf16 %v190_v57, %v190_v57 }
 0x1b4   :  { %6679 = vmatprep.subr.bf16.mxu0 %v9744_v11  ;;  %v1139_v11 = vld [vmem:[#allocation5 + $0x1ca0] sm:$0xff] }
 0x1b5   :  { %6844 = vmatpush1.bf16.msra.mxu1 %v9233_v18  ;;  %v9792_v26 = vcombine.high %v1135_v10, %v1139_v11  ;;  %v636_v18 = vld [vmem:[#allocation5 + $0xce8] sm:$0xff]  ;;  %v9791_v25 = vcombine.low %v1135_v10, %v1139_v11  ;;  %v9322_v11 = vcombine.high %v664_v58, %v668_v60 }
 0x1b6   :  { %6845 = vmatprep.subr.bf16.mxu1 %v9242_v20  ;;  %v1147_v20 = vld [vmem:[#allocation5 + $0x1ce0] sm:$0xff]  ;;  %v9290_v59 = vcombine.high %v632_v17, %v636_v18 }
 0x1b7   :  { %6680 = vmatpush1.bf16.msra.mxu0 %v9743_v19  ;;  %v1143_v19 = vld [vmem:[#allocation5 + $0x1cc0] sm:$0xff] }
 0x1b8   :  { %6681 = vmatprep.subr.bf16.mxu0 %v9752_v21  ;;  %v9281_v21 = vcombine.low %v624_v7, %v628_v8  ;;  %v9800_v0 = vcombine.high %v1143_v19, %v1147_v20  ;;  %v9799_v30 = vcombine.low %v1143_v19, %v1147_v20  ;;  %v9313_v7 = vcombine.low %v656_v48, %v660_v52  ;;  %v1211_v48 = vld [vmem:[#allocation5 + $0x1ee0] sm:$0xff] }
 0x1b9   :  { %6846 = vmatpush1.bf16.msra.mxu1 %v9241_v42  ;;  %v644_v42 = vld [vmem:[#allocation5 + $0xd28] sm:$0xff] }
 0x1ba   :  { %6847 = vmatprep.subr.bf16.mxu1 %v9250_v28  ;;  %v1155_v28 = vld [vmem:[#allocation5 + $0x1d20] sm:$0xff]  ;;  %v9298_v31 = vcombine.high %v640_v23, %v644_v42 }
 0x1bb   :  { %6682 = vmatpush1.bf16.msra.mxu0 %v9751_v27  ;;  %v1151_v27 = vld [vmem:[#allocation5 + $0x1d00] sm:$0xff] }
 0x1bc   :  { %6683 = vmatprep.subr.bf16.mxu0 %v9760_v29  ;;  %v9289_v29 = vcombine.low %v632_v17, %v636_v18  ;;  %v9808_v32 = vcombine.high %v1151_v27, %v1155_v28  ;;  %v1187_v17 = vld [vmem:[#allocation5 + $0x1e20] sm:$0xff]  ;;  %v9321_v18 = vcombine.low %v664_v58, %v668_v60 }
 0x1bd   :  { %6848 = vmatpush1.bf16.msra.mxu1 %v9249_v37  ;;  %v1159_v37 = vld [vmem:[#allocation5 + $0x1d40] sm:$0xff] }
 0x1be   :  { %6849 = vmatprep.subr.bf16.mxu1 %v9258_v40  ;;  %v9297_v40 = vcombine.low %v640_v23, %v644_v42  ;;  %v1195_v23 = vld [vmem:[#allocation5 + $0x1e60] sm:$0xff] }
 0x1bf   :  { %6684 = vmatpush1.bf16.msra.mxu0 %v9759_v39  ;;  %v1163_v39 = vld [vmem:[#allocation5 + $0x1d60] sm:$0xff] }
 0x1c0   :  { %6685 = vmatprep.subr.bf16.mxu0 %v9768_v41  ;;  %v9807_v41 = vcombine.low %v1151_v27, %v1155_v28  ;;  %v9816_v45 = vcombine.high %v1159_v37, %v1163_v39  ;;  %v1219_v58 = vld [vmem:[#allocation5 + $0x1f20] sm:$0xff] }
 0x1c1   :  { %6850 = vmatpush1.bf16.msra.mxu1 %v9257_v49  ;;  %v1167_v49 = vld [vmem:[#allocation5 + $0x1d80] sm:$0xff] }
 0x1c2   :  { %6860 = vmatprep.subr.bf16.mxu1 %v9266_v50  ;;  %v9305_v50 = vcombine.low %v648_v34, %v652_v35  ;;  %v1203_v34 = vld [vmem:[#allocation5 + $0x1ea0] sm:$0xff] }
 0x1c3   :  { %6686 = vmatpush1.bf16.msra.mxu0 %v9767_v51  ;;  %v1171_v51 = vld [vmem:[#allocation5 + $0x1da0] sm:$0xff] }
 0x1c4   :  { %6696 = vmatprep.subr.bf16.mxu0 %v9776_v54  ;;  %6852 = vmatmul.mubr.bf16.vlgmr.msra.gmra.mrb[4].mxu1 %v10803_v38  ;;  %v9815_v54 = vcombine.low %v1159_v37, %v1163_v39  ;;  %v9824_v57 = vcombine.high %v1167_v49, %v1171_v51  ;;  %v9823_v10 = vcombine.low %v1167_v49, %v1171_v51 }
 0x1c5   :  { %6861 = vmatpush1.bf16.msra.mxu1 %v9265_v53  ;;  %6892 = vmatprep.mubr.bf16.mxu1 %v10808_v47 }
 0x1c6   :  { %6688 = vmatmul.mubr.bf16.vlgmr.msra.gmra.mrb[0].mxu0 %v10879_v62  ;;  %6862 = vmatprep.subr.bf16.mxu1 %v9274_v4  ;;  %v1179_v4 = vld [vmem:[#allocation5 + $0x1de0] sm:$0xff] }
 0x1c7   :  { %6697 = vmatpush1.bf16.msra.mxu0 %v9775_v1  ;;  %6728 = vmatprep.mubr.bf16.mxu0 %v10881_v9  ;;  %v1175_v1 = vld [vmem:[#allocation5 + $0x1dc0] sm:$0xff] }
 0x1c8   :  { %6698 = vmatprep.subr.bf16.mxu0 %v9784_v6  ;;  %v9831_v19 = vcombine.low %v1175_v1, %v1179_v4 }
 0x1c9   :  { %6863 = vmatpush1.bf16.msra.mxu1 %v9273_v13  ;;  %v9832_v13 = vcombine.high %v1175_v1, %v1179_v4 }
 0x1ca   :  { %6864 = vmatprep.subr.bf16.mxu1 %v9282_v24  ;;  %v676_v24 = vld [vmem:[#allocation5 + $0xe28] sm:$0xff] }
 0x1cb   :  { %6699 = vmatpush1.bf16.msra.mxu0 %v9783_v61  ;;  %v672_v61 = vld [vmem:[#allocation5 + $0xe08] sm:$0xff] }
 0x1cc   :  { %6700 = vmatprep.subr.bf16.mxu0 %v9792_v26  ;;  %v1183_v26 = vld [vmem:[#allocation5 + $0x1e00] sm:$0xff]  ;;  %v9330_v20 = vcombine.high %v672_v61, %v676_v24  ;;  %v9329_v42 = vcombine.low %v672_v61, %v676_v24 }
 0x1cd   :  { %6865 = vmatpush1.bf16.msra.mxu1 %v9281_v21  ;;  %v9840_v21 = vcombine.high %v1183_v26, %v1187_v17  ;;  %v9839_v27 = vcombine.low %v1183_v26, %v1187_v17  ;;  %v720_v17 = vld [vmem:[#allocation5 + $0xf88] sm:$0xff] }
 0x1ce   :  { %6866 = vmatprep.subr.bf16.mxu1 %v9290_v59  ;;  %v684_v59 = vld [vmem:[#allocation5 + $0xe68] sm:$0xff] }
 0x1cf   :  { %6701 = vmatpush1.bf16.msra.mxu0 %v9791_v25  ;;  %v680_v25 = vld [vmem:[#allocation5 + $0xe48] sm:$0xff] }
 0x1d0   :  { %6702 = vmatprep.subr.bf16.mxu0 %v9800_v0  ;;  %v1191_v0 = vld [vmem:[#allocation5 + $0x1e40] sm:$0xff]  ;;  %v9338_v28 = vcombine.high %v680_v25, %v684_v59  ;;  %v9337_v35 = vcombine.low %v680_v25, %v684_v59 }
 0x1d1   :  { %6867 = vmatpush1.bf16.msra.mxu1 %v9289_v29  ;;  %v9848_v29 = vcombine.high %v1191_v0, %v1195_v23  ;;  %v9847_v37 = vcombine.low %v1191_v0, %v1195_v23  ;;  %v728_v23 = vld [vmem:[#allocation5 + $0xfc8] sm:$0xff] }
 0x1d2   :  { %6868 = vmatprep.subr.bf16.mxu1 %v9298_v31  ;;  %v692_v31 = vld [vmem:[#allocation5 + $0xea8] sm:$0xff] }
 0x1d3   :  { %6703 = vmatpush1.bf16.msra.mxu0 %v9799_v30  ;;  %v688_v30 = vld [vmem:[#allocation5 + $0xe88] sm:$0xff] }
 0x1d4   :  { %6704 = vmatprep.subr.bf16.mxu0 %v9808_v32  ;;  %v1199_v32 = vld [vmem:[#allocation5 + $0x1e80] sm:$0xff]  ;;  %v9346_v39 = vcombine.high %v688_v30, %v692_v31  ;;  %v9345_v52 = vcombine.low %v688_v30, %v692_v31 }
 0x1d5   :  { %6869 = vmatpush1.bf16.msra.mxu1 %v9297_v40  ;;  %v9856_v40 = vcombine.high %v1199_v32, %v1203_v34  ;;  %v9855_v49 = vcombine.low %v1199_v32, %v1203_v34  ;;  %v736_v34 = vld [vmem:[#allocation5 + $0x1008] sm:$0xff] }
 0x1d6   :  { %6870 = vmatprep.subr.bf16.mxu1 %v9306_v43  ;;  %v700_v43 = vld [vmem:[#allocation5 + $0xee8] sm:$0xff] }
 0x1d7   :  { %6705 = vmatpush1.bf16.msra.mxu0 %v9807_v41  ;;  %v10887_v56 = vpop.f32.mrb[0].mxu1  ;;  %v696_v41 = vld [vmem:[#allocation5 + $0xec8] sm:$0xff] }
 0x1d8   :  { %6706 = vmatprep.subr.bf16.mxu0 %v9816_v45  ;;  %v10889_v53 = vpop.f32.mrb[1].mxu1  ;;  %v1207_v45 = vld [vmem:[#allocation5 + $0x1ec0] sm:$0xff]  ;;  %v9354_v51 = vcombine.high %v696_v41, %v700_v43  ;;  %v9353_v60 = vcombine.low %v696_v41, %v700_v43 }
 0x1d9   :  { %v6488_v6 = vpop.f32.mrb[2].mxu1  ;;  %6871 = vmatpush1.bf16.msra.mxu1 %v9305_v50  ;;  %v9864_v50 = vcombine.high %v1207_v45, %v1211_v48  ;;  %v9863_v1 = vcombine.low %v1207_v45, %v1211_v48  ;;  %v744_v48 = vld [vmem:[#allocation5 + $0x1048] sm:$0xff] }
 0x1da   :  { %v6489_v8 = vpop.f32.mrb[3].mxu1  ;;  %6872 = vmatprep.subr.bf16.mxu1 %v9314_v55  ;;  %v708_v55 = vld [vmem:[#allocation5 + $0xf28] sm:$0xff] }
 0x1db   :  { %6707 = vmatpush1.bf16.msra.mxu0 %v9815_v54  ;;  %v704_v54 = vld [vmem:[#allocation5 + $0xf08] sm:$0xff] }
 0x1dc   :  { %6708 = vmatprep.subr.bf16.mxu0 %v9824_v57  ;;  %v1215_v57 = vld [vmem:[#allocation5 + $0x1f00] sm:$0xff]  ;;  %v9362_v4 = vcombine.high %v704_v54, %v708_v55  ;;  %v716_v8 = vld [vmem:[#allocation5 + $0xf68] sm:$0xff] }
 0x1dd   :  { %6873 = vmatpush1.bf16.msra.mxu1 %v9313_v7  ;;  %v9872_v6 = vcombine.high %v1215_v57, %v1219_v58  ;;  %v712_v7 = vld [vmem:[#allocation5 + $0xf48] sm:$0xff]  ;;  %v9871_v61 = vcombine.low %v1215_v57, %v1219_v58 }
 0x1de   :  { %6874 = vmatprep.subr.bf16.mxu1 %v9322_v11  ;;  %v1227_v11 = vld [vmem:[#allocation5 + $0x1f60] sm:$0xff]  ;;  %v9370_v24 = vcombine.high %v712_v7, %v716_v8 }
 0x1df   :  { %6709 = vmatpush1.bf16.msra.mxu0 %v9823_v10  ;;  %v1223_v10 = vld [vmem:[#allocation5 + $0x1f40] sm:$0xff] }
 0x1e0   :  { %6710 = vmatprep.subr.bf16.mxu0 %v9832_v13  ;;  %v9361_v13 = vcombine.low %v704_v54, %v708_v55  ;;  %v9880_v26 = vcombine.high %v1223_v10, %v1227_v11  ;;  %v9879_v25 = vcombine.low %v1223_v10, %v1227_v11  ;;  %v760_v11 = vld [vmem:[#allocation5 + $0x10c8] sm:$0xff] }
 0x1e1   :  { %6875 = vmatpush1.bf16.msra.mxu1 %v9321_v18  ;;  %v724_v18 = vld [vmem:[#allocation5 + $0xfa8] sm:$0xff] }
 0x1e2   :  { %6876 = vmatprep.subr.bf16.mxu1 %v9330_v20  ;;  %v1235_v20 = vld [vmem:[#allocation5 + $0x1fa0] sm:$0xff]  ;;  %v9378_v59 = vcombine.high %v720_v17, %v724_v18 }
 0x1e3   :  { %6711 = vmatpush1.bf16.msra.mxu0 %v9831_v19  ;;  %v1231_v19 = vld [vmem:[#allocation5 + $0x1f80] sm:$0xff] }
 0x1e4   :  { %6712 = vmatprep.subr.bf16.mxu0 %v9840_v21  ;;  %v9369_v21 = vcombine.low %v712_v7, %v716_v8  ;;  %v9888_v0 = vcombine.high %v1231_v19, %v1235_v20  ;;  %v9887_v30 = vcombine.low %v1231_v19, %v1235_v20  ;;  %v768_v20 = vld [vmem:[#allocation5 + $0x1108] sm:$0xff] }
 0x1e5   :  { %6877 = vmatpush1.bf16.msra.mxu1 %v9329_v42  ;;  %v732_v42 = vld [vmem:[#allocation5 + $0xfe8] sm:$0xff] }
 0x1e6   :  { %6878 = vmatprep.subr.bf16.mxu1 %v9338_v28  ;;  %v1243_v28 = vld [vmem:[#allocation5 + $0x1fe0] sm:$0xff]  ;;  %v9386_v31 = vcombine.high %v728_v23, %v732_v42 }
 0x1e7   :  { %6713 = vmatpush1.bf16.msra.mxu0 %v9839_v27  ;;  %v1239_v27 = vld [vmem:[#allocation5 + $0x1fc0] sm:$0xff] }
 0x1e8   :  { %6714 = vmatprep.subr.bf16.mxu0 %v9848_v29  ;;  %v9377_v29 = vcombine.low %v720_v17, %v724_v18  ;;  %v9896_v32 = vcombine.high %v1239_v27, %v1243_v28  ;;  %v9895_v41 = vcombine.low %v1239_v27, %v1243_v28  ;;  %v776_v28 = vld [vmem:[#allocation5 + $0x1148] sm:$0xff] }
 0x1e9   :  { %6879 = vmatpush1.bf16.msra.mxu1 %v9337_v35  ;;  %v740_v35 = vld [vmem:[#allocation5 + $0x1028] sm:$0xff] }
 0x1ea   :  { %6880 = vmatprep.subr.bf16.mxu1 %v9346_v39  ;;  %v229_v39 = vld [vmem:[#allocation5 + $0x30] sm:$0xff]  ;;  %v9394_v43 = vcombine.high %v736_v34, %v740_v35  ;;  %v9393_v54 = vcombine.low %v736_v34, %v740_v35 }
 0x1eb   :  { %6715 = vmatpush1.bf16.msra.mxu0 %v9847_v37  ;;  %v225_v37 = vld [vmem:[#allocation5 + $0x10] sm:$0xff] }
 0x1ec   :  { %6716 = vmatprep.subr.bf16.mxu0 %v9856_v40  ;;  %v9385_v40 = vcombine.low %v728_v23, %v732_v42  ;;  %v8884_v45 = vcombine.high %v225_v37, %v229_v39  ;;  %v8883_v55 = vcombine.low %v225_v37, %v229_v39  ;;  %v784_v39 = vld [vmem:[#allocation5 + $0x1188] sm:$0xff] }
 0x1ed   :  { %6881 = vmatpush1.bf16.msra.mxu1 %v9345_v52  ;;  %v748_v52 = vld [vmem:[#allocation5 + $0x1068] sm:$0xff] }
 0x1ee   :  { %6882 = vmatprep.subr.bf16.mxu1 %v9354_v51  ;;  %v237_v51 = vld [vmem:[#allocation5 + $0x70] sm:$0xff]  ;;  %v9402_v57 = vcombine.high %v744_v48, %v748_v52  ;;  %v9401_v7 = vcombine.low %v744_v48, %v748_v52 }
 0x1ef   :  { %6717 = vmatpush1.bf16.msra.mxu0 %v9855_v49  ;;  %v233_v49 = vld [vmem:[#allocation5 + $0x50] sm:$0xff] }
 0x1f0   :  { %6718 = vmatprep.subr.bf16.mxu0 %v9864_v50  ;;  %v10893_v50 = vpack.c.bf16 %v10873_v3, %v10873_v3  ;;  %v8892_v58 = vcombine.high %v233_v49, %v237_v51  ;;  %v8891_v3 = vcombine.low %v233_v49, %v237_v51  ;;  %v792_v51 = vld [vmem:[#allocation5 + $0x11c8] sm:$0xff] }
 0x1f1   :  { %6883 = vmatpush1.bf16.msra.mxu1 %v9353_v60  ;;  %v752_v60 = vld [vmem:[#allocation5 + $0x1088] sm:$0xff] }
 0x1f2   :  { %6884 = vmatprep.subr.bf16.mxu1 %v9362_v4  ;;  %v241_v4 = vld [vmem:[#allocation5 + $0x90] sm:$0xff] }
 0x1f3   :  { %6719 = vmatpush1.bf16.msra.mxu0 %v9863_v1  ;;  %v756_v1 = vld [vmem:[#allocation5 + $0x10a8] sm:$0xff] }
 0x1f4   :  { %6720 = vmatprep.subr.bf16.mxu0 %v9872_v6  ;;  %v245_v6 = vld [vmem:[#allocation5 + $0xb0] sm:$0xff]  ;;  %v9410_v8 = vcombine.high %v752_v60, %v756_v1 }
 0x1f5   :  { %6885 = vmatpush1.bf16.msra.mxu1 %v9361_v13  ;;  %v8900_v10 = vcombine.high %v241_v4, %v245_v6  ;;  %v764_v13 = vld [vmem:[#allocation5 + $0x10e8] sm:$0xff]  ;;  %v8899_v17 = vcombine.low %v241_v4, %v245_v6 }
 0x1f6   :  { %6886 = vmatprep.subr.bf16.mxu1 %v9370_v24  ;;  %v253_v24 = vld [vmem:[#allocation5 + $0xf0] sm:$0xff]  ;;  %v9418_v18 = vcombine.high %v760_v11, %v764_v13  ;;  %v800_v6 = vld [vmem:[#allocation5 + $0x1208] sm:$0xff] }
 0x1f7   :  { %6721 = vmatpush1.bf16.msra.mxu0 %v9871_v61  ;;  %v249_v61 = vld [vmem:[#allocation5 + $0xd0] sm:$0xff] }
 0x1f8   :  { %6722 = vmatprep.subr.bf16.mxu0 %v9880_v26  ;;  %v9409_v26 = vcombine.low %v752_v60, %v756_v1  ;;  %v8908_v19 = vcombine.high %v249_v61, %v253_v24  ;;  %v8907_v23 = vcombine.low %v249_v61, %v253_v24  ;;  %v808_v24 = vld [vmem:[#allocation5 + $0x1248] sm:$0xff] }
 0x1f9   :  { %6887 = vmatpush1.bf16.msra.mxu1 %v9369_v21  ;;  %v772_v21 = vld [vmem:[#allocation5 + $0x1128] sm:$0xff] }
 0x1fa   :  { %6888 = vmatprep.subr.bf16.mxu1 %v9378_v59  ;;  %v261_v59 = vld [vmem:[#allocation5 + $0x130] sm:$0xff]  ;;  %v9426_v42 = vcombine.high %v768_v20, %v772_v21 }
 0x1fb   :  { %6723 = vmatpush1.bf16.msra.mxu0 %v9879_v25  ;;  %v257_v25 = vld [vmem:[#allocation5 + $0x110] sm:$0xff] }
 0x1fc   :  { %6724 = vmatprep.subr.bf16.mxu0 %v9888_v0  ;;  %v9417_v0 = vcombine.low %v760_v11, %v764_v13  ;;  %v8916_v27 = vcombine.high %v257_v25, %v261_v59  ;;  %v8915_v34 = vcombine.low %v257_v25, %v261_v59  ;;  %v816_v59 = vld [vmem:[#allocation5 + $0x1288] sm:$0xff] }
 0x1fd   :  { %6889 = vmatpush1.bf16.msra.mxu1 %v9377_v29  ;;  %v780_v29 = vld [vmem:[#allocation5 + $0x1168] sm:$0xff] }
 0x1fe   :  { %6890 = vmatprep.subr.bf16.mxu1 %v9386_v31  ;;  %v269_v31 = vld [vmem:[#allocation5 + $0x170] sm:$0xff]  ;;  %v9434_v35 = vcombine.high %v776_v28, %v780_v29 }
 0x1ff   :  { %6725 = vmatpush1.bf16.msra.mxu0 %v9887_v30  ;;  %v265_v30 = vld [vmem:[#allocation5 + $0x150] sm:$0xff] }
 0x200   :  { %6726 = vmatprep.subr.bf16.mxu0 %v9896_v32  ;;  %v9425_v32 = vcombine.low %v768_v20, %v772_v21  ;;  %v8924_v37 = vcombine.high %v265_v30, %v269_v31  ;;  %v8923_v48 = vcombine.low %v265_v30, %v269_v31  ;;  %v824_v31 = vld [vmem:[#allocation5 + $0x12c8] sm:$0xff] }
 0x201   :  { %6891 = vmatpush1.bf16.msra.mxu1 %v9385_v40  ;;  %v788_v40 = vld [vmem:[#allocation5 + $0x11a8] sm:$0xff] }
 0x202   :  { %6901 = vmatprep.subr.bf16.mxu1 %v9394_v43  ;;  %v277_v43 = vld [vmem:[#allocation5 + $0x1b0] sm:$0xff]  ;;  %v9442_v52 = vcombine.high %v784_v39, %v788_v40 }
 0x203   :  { %6727 = vmatpush1.bf16.msra.mxu0 %v9895_v41  ;;  %v273_v41 = vld [vmem:[#allocation5 + $0x190] sm:$0xff] }
 0x204   :  { %7065 = vmatprep.subr.bf16.mxu0 %v8884_v45  ;;  %6893 = vmatmul.mubr.bf16.vlgmr.msra.gmra.mrb[4].mxu1 %v10827_v5  ;;  %v9433_v45 = vcombine.low %v776_v28, %v780_v29  ;;  %v8932_v49 = vcombine.high %v273_v41, %v277_v43  ;;  %v8931_v60 = vcombine.low %v273_v41, %v277_v43  ;;  %v832_v43 = vld [vmem:[#allocation5 + $0x1308] sm:$0xff] }
 0x205   :  { %6902 = vmatpush1.bf16.msra.mxu1 %v9393_v54  ;;  %6933 = vmatprep.mubr.bf16.mxu1 %v10829_v14  ;;  %v796_v54 = vld [vmem:[#allocation5 + $0x11e8] sm:$0xff] }
 0x206   :  { %6729 = vmatmul.mubr.bf16.vlgmr.msra.gmra.mrb[0].mxu0 %v10893_v50  ;;  %6903 = vmatprep.subr.bf16.mxu1 %v9402_v57  ;;  %v285_v57 = vld [vmem:[#allocation5 + $0x1f0] sm:$0xff]  ;;  %v9450_v1 = vcombine.high %v792_v51, %v796_v54 }
 0x207   :  { %7066 = vmatpush1.bf16.msra.mxu0 %v8883_v55  ;;  %7097 = vmatprep.mubr.bf16.mxu0 %v10777_v12  ;;  %v281_v55 = vld [vmem:[#allocation5 + $0x1d0] sm:$0xff] }
 0x208   :  { %7067 = vmatprep.subr.bf16.mxu0 %v8892_v58  ;;  %v9441_v58 = vcombine.low %v784_v39, %v788_v40  ;;  %v8940_v4 = vcombine.high %v281_v55, %v285_v57  ;;  %v8939_v11 = vcombine.low %v281_v55, %v285_v57  ;;  %v840_v57 = vld [vmem:[#allocation5 + $0x1348] sm:$0xff] }
 0x209   :  { %6904 = vmatpush1.bf16.msra.mxu1 %v9401_v7  ;;  %v804_v7 = vld [vmem:[#allocation5 + $0x1228] sm:$0xff] }
 0x20a   :  { %6905 = vmatprep.subr.bf16.mxu1 %v9410_v8  ;;  %v293_v8 = vld [vmem:[#allocation5 + $0x230] sm:$0xff]  ;;  %v9458_v13 = vcombine.high %v800_v6, %v804_v7 }
 0x20b   :  { %7068 = vmatpush1.bf16.msra.mxu0 %v8891_v3  ;;  %v289_v3 = vld [vmem:[#allocation5 + $0x210] sm:$0xff] }
 0x20c   :  { %7069 = vmatprep.subr.bf16.mxu0 %v8900_v10  ;;  %v9449_v10 = vcombine.low %v792_v51, %v796_v54  ;;  %v8948_v61 = vcombine.high %v289_v3, %v293_v8  ;;  %v8947_v20 = vcombine.low %v289_v3, %v293_v8  ;;  %v848_v8 = vld [vmem:[#allocation5 + $0x1388] sm:$0xff] }
 0x20d   :  { %6906 = vmatpush1.bf16.msra.mxu1 %v9409_v26  ;;  %v812_v26 = vld [vmem:[#allocation5 + $0x1268] sm:$0xff] }
 0x20e   :  { %6907 = vmatprep.subr.bf16.mxu1 %v9418_v18  ;;  %v301_v18 = vld [vmem:[#allocation5 + $0x270] sm:$0xff]  ;;  %v9466_v21 = vcombine.high %v808_v24, %v812_v26 }
 0x20f   :  { %7070 = vmatpush1.bf16.msra.mxu0 %v8899_v17  ;;  %v297_v17 = vld [vmem:[#allocation5 + $0x250] sm:$0xff] }
 0x210   :  { %7071 = vmatprep.subr.bf16.mxu0 %v8908_v19  ;;  %v9457_v19 = vcombine.low %v800_v6, %v804_v7  ;;  %v8956_v25 = vcombine.high %v297_v17, %v301_v18  ;;  %v8955_v28 = vcombine.low %v297_v17, %v301_v18  ;;  %v856_v18 = vld [vmem:[#allocation5 + $0x13c8] sm:$0xff] }
 0x211   :  { %6908 = vmatpush1.bf16.msra.mxu1 %v9417_v0  ;;  %v820_v0 = vld [vmem:[#allocation5 + $0x12a8] sm:$0xff] }
 0x212   :  { %6909 = vmatprep.subr.bf16.mxu1 %v9426_v42  ;;  %v309_v42 = vld [vmem:[#allocation5 + $0x2b0] sm:$0xff]  ;;  %v9474_v29 = vcombine.high %v816_v59, %v820_v0 }
 0x213   :  { %7072 = vmatpush1.bf16.msra.mxu0 %v8907_v23  ;;  %v305_v23 = vld [vmem:[#allocation5 + $0x290] sm:$0xff] }
 0x214   :  { %7073 = vmatprep.subr.bf16.mxu0 %v8916_v27  ;;  %v9465_v27 = vcombine.low %v808_v24, %v812_v26  ;;  %v8964_v30 = vcombine.high %v305_v23, %v309_v42  ;;  %v8963_v39 = vcombine.low %v305_v23, %v309_v42  ;;  %v864_v42 = vld [vmem:[#allocation5 + $0x1408] sm:$0xff] }
 0x215   :  { %6910 = vmatpush1.bf16.msra.mxu1 %v9425_v32  ;;  %v828_v32 = vld [vmem:[#allocation5 + $0x12e8] sm:$0xff] }
 0x216   :  { %6911 = vmatprep.subr.bf16.mxu1 %v9434_v35  ;;  %v317_v35 = vld [vmem:[#allocation5 + $0x2f0] sm:$0xff]  ;;  %v9482_v40 = vcombine.high %v824_v31, %v828_v32 }
 0x217   :  { %7074 = vmatpush1.bf16.msra.mxu0 %v8915_v34  ;;  %v313_v34 = vld [vmem:[#allocation5 + $0x2d0] sm:$0xff] }
 0x218   :  { %7075 = vmatprep.subr.bf16.mxu0 %v8924_v37  ;;  %v9473_v37 = vcombine.low %v816_v59, %v820_v0  ;;  %v8972_v41 = vcombine.high %v313_v34, %v317_v35  ;;  %v8971_v51 = vcombine.low %v313_v34, %v317_v35  ;;  %v872_v35 = vld [vmem:[#allocation5 + $0x1448] sm:$0xff] }
 0x219   :  { %6912 = vmatpush1.bf16.msra.mxu1 %v9433_v45  ;;  %v836_v45 = vld [vmem:[#allocation5 + $0x1328] sm:$0xff] }
 0x21a   :  { %6913 = vmatprep.subr.bf16.mxu1 %v9442_v52  ;;  %v325_v52 = vld [vmem:[#allocation5 + $0x330] sm:$0xff]  ;;  %v9490_v54 = vcombine.high %v832_v43, %v836_v45 }
 0x21b   :  { %7076 = vmatpush1.bf16.msra.mxu0 %v8923_v48  ;;  %v321_v48 = vld [vmem:[#allocation5 + $0x310] sm:$0xff] }
 0x21c   :  { %7077 = vmatprep.subr.bf16.mxu0 %v8932_v49  ;;  %v9481_v49 = vcombine.low %v824_v31, %v828_v32  ;;  %v8980_v55 = vcombine.high %v321_v48, %v325_v52  ;;  %v8979_v6 = vcombine.low %v321_v48, %v325_v52  ;;  %v880_v52 = vld [vmem:[#allocation5 + $0x1488] sm:$0xff] }
 0x21d   :  { %6914 = vmatpush1.bf16.msra.mxu1 %v9441_v58  ;;  %v844_v58 = vld [vmem:[#allocation5 + $0x1368] sm:$0xff] }
 0x21e   :  { %6915 = vmatprep.subr.bf16.mxu1 %v9450_v1  ;;  %v333_v1 = vld [vmem:[#allocation5 + $0x370] sm:$0xff]  ;;  %v9498_v7 = vcombine.high %v840_v57, %v844_v58 }
 0x21f   :  { %7078 = vmatpush1.bf16.msra.mxu0 %v8931_v60  ;;  %v329_v60 = vld [vmem:[#allocation5 + $0x350] sm:$0xff] }
 0x220   :  { %7079 = vmatprep.subr.bf16.mxu0 %v8940_v4  ;;  %v9489_v4 = vcombine.low %v832_v43, %v836_v45  ;;  %v8988_v3 = vcombine.high %v329_v60, %v333_v1  ;;  %v8987_v24 = vcombine.low %v329_v60, %v333_v1  ;;  %v888_v1 = vld [vmem:[#allocation5 + $0x14c8] sm:$0xff] }
 0x221   :  { %6916 = vmatpush1.bf16.msra.mxu1 %v9449_v10  ;;  %v852_v10 = vld [vmem:[#allocation5 + $0x13a8] sm:$0xff] }
 0x222   :  { %6917 = vmatprep.subr.bf16.mxu1 %v9458_v13  ;;  %v341_v13 = vld [vmem:[#allocation5 + $0x3b0] sm:$0xff]  ;;  %v9506_v26 = vcombine.high %v848_v8, %v852_v10 }
 0x223   :  { %7080 = vmatpush1.bf16.msra.mxu0 %v8939_v11  ;;  %v337_v11 = vld [vmem:[#allocation5 + $0x390] sm:$0xff] }
 0x224   :  { %7081 = vmatprep.subr.bf16.mxu0 %v8948_v61  ;;  %v9497_v61 = vcombine.low %v840_v57, %v844_v58  ;;  %v8996_v17 = vcombine.high %v337_v11, %v341_v13  ;;  %v8995_v59 = vcombine.low %v337_v11, %v341_v13  ;;  %v896_v13 = vld [vmem:[#allocation5 + $0x1508] sm:$0xff] }
 0x225   :  { %6918 = vmatpush1.bf16.msra.mxu1 %v9457_v19  ;;  %v860_v19 = vld [vmem:[#allocation5 + $0x13e8] sm:$0xff] }
 0x226   :  { %6919 = vmatprep.subr.bf16.mxu1 %v9466_v21  ;;  %v349_v21 = vld [vmem:[#allocation5 + $0x3f0] sm:$0xff]  ;;  %v9514_v0 = vcombine.high %v856_v18, %v860_v19 }
 0x227   :  { %7082 = vmatpush1.bf16.msra.mxu0 %v8947_v20  ;;  %v345_v20 = vld [vmem:[#allocation5 + $0x3d0] sm:$0xff] }
 0x228   :  { %7083 = vmatprep.subr.bf16.mxu0 %v8956_v25  ;;  %v9505_v25 = vcombine.low %v848_v8, %v852_v10  ;;  %v9004_v23 = vcombine.high %v345_v20, %v349_v21  ;;  %v9003_v31 = vcombine.low %v345_v20, %v349_v21  ;;  %v904_v21 = vld [vmem:[#allocation5 + $0x1548] sm:$0xff] }
 0x229   :  { %6920 = vmatpush1.bf16.msra.mxu1 %v9465_v27  ;;  %v868_v27 = vld [vmem:[#allocation5 + $0x1428] sm:$0xff] }
 0x22a   :  { %6921 = vmatprep.subr.bf16.mxu1 %v9474_v29  ;;  %v357_v29 = vld [vmem:[#allocation5 + $0x430] sm:$0xff]  ;;  %v9522_v32 = vcombine.high %v864_v42, %v868_v27 }
 0x22b   :  { %7084 = vmatpush1.bf16.msra.mxu0 %v8955_v28  ;;  %v353_v28 = vld [vmem:[#allocation5 + $0x410] sm:$0xff] }
 0x22c   :  { %7085 = vmatprep.subr.bf16.mxu0 %v8964_v30  ;;  %v9513_v30 = vcombine.low %v856_v18, %v860_v19  ;;  %v9012_v34 = vcombine.high %v353_v28, %v357_v29  ;;  %v9011_v43 = vcombine.low %v353_v28, %v357_v29  ;;  %v912_v29 = vld [vmem:[#allocation5 + $0x1588] sm:$0xff] }
 0x22d   :  { %6922 = vmatpush1.bf16.msra.mxu1 %v9473_v37  ;;  %v876_v37 = vld [vmem:[#allocation5 + $0x1468] sm:$0xff] }
 0x22e   :  { %6923 = vmatprep.subr.bf16.mxu1 %v9482_v40  ;;  %v365_v40 = vld [vmem:[#allocation5 + $0x470] sm:$0xff]  ;;  %v9530_v45 = vcombine.high %v872_v35, %v876_v37 }
 0x22f   :  { %7086 = vmatpush1.bf16.msra.mxu0 %v8963_v39  ;;  %v361_v39 = vld [vmem:[#allocation5 + $0x450] sm:$0xff] }
 0x230   :  { %7087 = vmatprep.subr.bf16.mxu0 %v8972_v41  ;;  %v9521_v41 = vcombine.low %v864_v42, %v868_v27  ;;  %v9020_v48 = vcombine.high %v361_v39, %v365_v40  ;;  %v9019_v57 = vcombine.low %v361_v39, %v365_v40  ;;  %v920_v40 = vld [vmem:[#allocation5 + $0x15c8] sm:$0xff] }
 0x231   :  { %6924 = vmatpush1.bf16.msra.mxu1 %v9481_v49  ;;  %v884_v49 = vld [vmem:[#allocation5 + $0x14a8] sm:$0xff] }
 0x232   :  { %6925 = vmatprep.subr.bf16.mxu1 %v9490_v54  ;;  %v373_v54 = vld [vmem:[#allocation5 + $0x4b0] sm:$0xff]  ;;  %v9538_v58 = vcombine.high %v880_v52, %v884_v49 }
 0x233   :  { %7088 = vmatpush1.bf16.msra.mxu0 %v8971_v51  ;;  %v369_v51 = vld [vmem:[#allocation5 + $0x490] sm:$0xff] }
 0x234   :  { %7089 = vmatprep.subr.bf16.mxu0 %v8980_v55  ;;  %v9529_v55 = vcombine.low %v872_v35, %v876_v37  ;;  %v9028_v60 = vcombine.high %v369_v51, %v373_v54  ;;  %v9027_v8 = vcombine.low %v369_v51, %v373_v54  ;;  %v928_v54 = vld [vmem:[#allocation5 + $0x1608] sm:$0xff] }
 0x235   :  { %6926 = vmatpush1.bf16.msra.mxu1 %v9489_v4  ;;  %v892_v4 = vld [vmem:[#allocation5 + $0x14e8] sm:$0xff] }
 0x236   :  { %6927 = vmatprep.subr.bf16.mxu1 %v9498_v7  ;;  %v381_v7 = vld [vmem:[#allocation5 + $0x4f0] sm:$0xff]  ;;  %v9546_v10 = vcombine.high %v888_v1, %v892_v4 }
 0x237   :  { %7090 = vmatpush1.bf16.msra.mxu0 %v8979_v6  ;;  %v377_v6 = vld [vmem:[#allocation5 + $0x4d0] sm:$0xff] }
 0x238   :  { %7091 = vmatprep.subr.bf16.mxu0 %v8988_v3  ;;  %v9537_v3 = vcombine.low %v880_v52, %v884_v49  ;;  %v9036_v11 = vcombine.high %v377_v6, %v381_v7  ;;  %v9035_v18 = vcombine.low %v377_v6, %v381_v7  ;;  %v936_v7 = vld [vmem:[#allocation5 + $0x1648] sm:$0xff] }
 0x239   :  { %6928 = vmatpush1.bf16.msra.mxu1 %v9497_v61  ;;  %v900_v61 = vld [vmem:[#allocation5 + $0x1528] sm:$0xff] }
 0x23a   :  { %6929 = vmatprep.subr.bf16.mxu1 %v9506_v26  ;;  %v389_v26 = vld [vmem:[#allocation5 + $0x530] sm:$0xff]  ;;  %v9554_v19 = vcombine.high %v896_v13, %v900_v61 }
 0x23b   :  { %7092 = vmatpush1.bf16.msra.mxu0 %v8987_v24  ;;  %v385_v24 = vld [vmem:[#allocation5 + $0x510] sm:$0xff] }
 0x23c   :  { %7093 = vmatprep.subr.bf16.mxu0 %v8996_v17  ;;  %v9545_v17 = vcombine.low %v888_v1, %v892_v4  ;;  %v9044_v20 = vcombine.high %v385_v24, %v389_v26  ;;  %v9043_v42 = vcombine.low %v385_v24, %v389_v26  ;;  %v944_v26 = vld [vmem:[#allocation5 + $0x1688] sm:$0xff] }
 0x23d   :  { %6930 = vmatpush1.bf16.msra.mxu1 %v9505_v25  ;;  %v908_v25 = vld [vmem:[#allocation5 + $0x1568] sm:$0xff] }
 0x23e   :  { %6931 = vmatprep.subr.bf16.mxu1 %v9514_v0  ;;  %v397_v0 = vld [vmem:[#allocation5 + $0x570] sm:$0xff]  ;;  %v9562_v27 = vcombine.high %v904_v21, %v908_v25 }
 0x23f   :  { %7094 = vmatpush1.bf16.msra.mxu0 %v8995_v59  ;;  %v393_v59 = vld [vmem:[#allocation5 + $0x550] sm:$0xff] }
 0x240   :  { %7095 = vmatprep.subr.bf16.mxu0 %v9004_v23  ;;  %v9553_v23 = vcombine.low %v896_v13, %v900_v61  ;;  %v9052_v28 = vcombine.high %v393_v59, %v397_v0  ;;  %v9051_v35 = vcombine.low %v393_v59, %v397_v0  ;;  %v952_v0 = vld [vmem:[#allocation5 + $0x16c8] sm:$0xff] }
 0x241   :  { %6932 = vmatpush1.bf16.msra.mxu1 %v9513_v30  ;;  %v916_v30 = vld [vmem:[#allocation5 + $0x15a8] sm:$0xff] }
 0x242   :  { %6942 = vmatprep.subr.bf16.mxu1 %v9522_v32  ;;  %v405_v32 = vld [vmem:[#allocation5 + $0x5b0] sm:$0xff]  ;;  %v9570_v37 = vcombine.high %v912_v29, %v916_v30 }
 0x243   :  { %7096 = vmatpush1.bf16.msra.mxu0 %v9003_v31  ;;  %v401_v31 = vld [vmem:[#allocation5 + $0x590] sm:$0xff] }
 0x244   :  { %7106 = vmatprep.subr.bf16.mxu0 %v9012_v34  ;;  %6934 = vmatmul.mubr.bf16.vlgmr.msra.gmra.mrb[4].mxu1 %v10844_v36  ;;  %v9561_v34 = vcombine.low %v904_v21, %v908_v25  ;;  %v9060_v39 = vcombine.high %v401_v31, %v405_v32  ;;  %v9059_v52 = vcombine.low %v401_v31, %v405_v32  ;;  %v960_v32 = vld [vmem:[#allocation5 + $0x1708] sm:$0xff] }
 0x245   :  { %6943 = vmatpush1.bf16.msra.mxu1 %v9521_v41  ;;  %6974 = vmatprep.mubr.bf16.mxu1 %v10846_v63  ;;  %v924_v41 = vld [vmem:[#allocation5 + $0x15e8] sm:$0xff] }
 0x246   :  { %7098 = vmatmul.mubr.bf16.vlgmr.msra.gmra.mrb[4].mxu0 %v10797_v33  ;;  %6944 = vmatprep.subr.bf16.mxu1 %v9530_v45  ;;  %v413_v45 = vld [vmem:[#allocation5 + $0x5f0] sm:$0xff]  ;;  %v9578_v49 = vcombine.high %v920_v40, %v924_v41 }
 0x247   :  { %7107 = vmatpush1.bf16.msra.mxu0 %v9011_v43  ;;  %7138 = vmatprep.mubr.bf16.mxu0 %v10805_v46  ;;  %v409_v43 = vld [vmem:[#allocation5 + $0x5d0] sm:$0xff] }
 0x248   :  { %7108 = vmatprep.subr.bf16.mxu0 %v9020_v48  ;;  %v9569_v48 = vcombine.low %v912_v29, %v916_v30  ;;  %v9068_v51 = vcombine.high %v409_v43, %v413_v45  ;;  %v9067_v1 = vcombine.low %v409_v43, %v413_v45  ;;  %v968_v45 = vld [vmem:[#allocation5 + $0x1748] sm:$0xff] }
 0x249   :  { %6945 = vmatpush1.bf16.msra.mxu1 %v9529_v55  ;;  %v932_v55 = vld [vmem:[#allocation5 + $0x1628] sm:$0xff] }
 0x24a   :  { %6946 = vmatprep.subr.bf16.mxu1 %v9538_v58  ;;  %v421_v58 = vld [vmem:[#allocation5 + $0x630] sm:$0xff]  ;;  %v9586_v4 = vcombine.high %v928_v54, %v932_v55 }
 0x24b   :  { %7109 = vmatpush1.bf16.msra.mxu0 %v9019_v57  ;;  %v417_v57 = vld [vmem:[#allocation5 + $0x610] sm:$0xff] }
 0x24c   :  { %7110 = vmatprep.subr.bf16.mxu0 %v9028_v60  ;;  %v9577_v60 = vcombine.low %v920_v40, %v924_v41  ;;  %v9076_v6 = vcombine.high %v417_v57, %v421_v58  ;;  %v9075_v13 = vcombine.low %v417_v57, %v421_v58  ;;  %v976_v58 = vld [vmem:[#allocation5 + $0x1788] sm:$0xff] }
 0x24d   :  { %6947 = vmatpush1.bf16.msra.mxu1 %v9537_v3  ;;  %v940_v3 = vld [vmem:[#allocation5 + $0x1668] sm:$0xff] }
 0x24e   :  { %6948 = vmatprep.subr.bf16.mxu1 %v9546_v10  ;;  %v429_v10 = vld [vmem:[#allocation5 + $0x670] sm:$0xff]  ;;  %v9594_v61 = vcombine.high %v936_v7, %v940_v3 }
 0x24f   :  { %7111 = vmatpush1.bf16.msra.mxu0 %v9027_v8  ;;  %v425_v8 = vld [vmem:[#allocation5 + $0x650] sm:$0xff] }
 0x250   :  { %7112 = vmatprep.subr.bf16.mxu0 %v9036_v11  ;;  %v9585_v11 = vcombine.low %v928_v54, %v932_v55  ;;  %v9084_v24 = vcombine.high %v425_v8, %v429_v10  ;;  %v9083_v21 = vcombine.low %v425_v8, %v429_v10  ;;  %v984_v10 = vld [vmem:[#allocation5 + $0x17c8] sm:$0xff] }
 0x251   :  { %6949 = vmatpush1.bf16.msra.mxu1 %v9545_v17  ;;  %v948_v17 = vld [vmem:[#allocation5 + $0x16a8] sm:$0xff] }
 0x252   :  { %6950 = vmatprep.subr.bf16.mxu1 %v9554_v19  ;;  %v437_v19 = vld [vmem:[#allocation5 + $0x6b0] sm:$0xff]  ;;  %v9602_v25 = vcombine.high %v944_v26, %v948_v17 }
 0x253   :  { %7113 = vmatpush1.bf16.msra.mxu0 %v9035_v18  ;;  %v433_v18 = vld [vmem:[#allocation5 + $0x690] sm:$0xff] }
 0x254   :  { %7114 = vmatprep.subr.bf16.mxu0 %v9044_v20  ;;  %v9593_v20 = vcombine.low %v936_v7, %v940_v3  ;;  %v9092_v59 = vcombine.high %v433_v18, %v437_v19  ;;  %v9091_v29 = vcombine.low %v433_v18, %v437_v19  ;;  %v992_v19 = vld [vmem:[#allocation5 + $0x1808] sm:$0xff] }
 0x255   :  { %6951 = vmatpush1.bf16.msra.mxu1 %v9553_v23  ;;  %v956_v23 = vld [vmem:[#allocation5 + $0x16e8] sm:$0xff] }
 0x256   :  { %6952 = vmatprep.subr.bf16.mxu1 %v9562_v27  ;;  %v445_v27 = vld [vmem:[#allocation5 + $0x6f0] sm:$0xff]  ;;  %v9610_v30 = vcombine.high %v952_v0, %v956_v23 }
 0x257   :  { %7115 = vmatpush1.bf16.msra.mxu0 %v9043_v42  ;;  %v441_v42 = vld [vmem:[#allocation5 + $0x6d0] sm:$0xff] }
 0x258   :  { %7116 = vmatprep.subr.bf16.mxu0 %v9052_v28  ;;  %v9601_v28 = vcombine.low %v944_v26, %v948_v17  ;;  %v9100_v31 = vcombine.high %v441_v42, %v445_v27  ;;  %v9099_v40 = vcombine.low %v441_v42, %v445_v27  ;;  %v1000_v27 = vld [vmem:[#allocation5 + $0x1848] sm:$0xff] }
 0x259   :  { %6953 = vmatpush1.bf16.msra.mxu1 %v9561_v34  ;;  %v964_v34 = vld [vmem:[#allocation5 + $0x1728] sm:$0xff] }
 0x25a   :  { %6954 = vmatprep.subr.bf16.mxu1 %v9570_v37  ;;  %v453_v37 = vld [vmem:[#allocation5 + $0x730] sm:$0xff]  ;;  %v9618_v41 = vcombine.high %v960_v32, %v964_v34 }
 0x25b   :  { %7117 = vmatpush1.bf16.msra.mxu0 %v9051_v35  ;;  %v449_v35 = vld [vmem:[#allocation5 + $0x710] sm:$0xff] }
 0x25c   :  { %7118 = vmatprep.subr.bf16.mxu0 %v9060_v39  ;;  %v9609_v39 = vcombine.low %v952_v0, %v956_v23  ;;  %v9108_v43 = vcombine.high %v449_v35, %v453_v37  ;;  %v9107_v54 = vcombine.low %v449_v35, %v453_v37  ;;  %v1008_v37 = vld [vmem:[#allocation5 + $0x1888] sm:$0xff] }
 0x25d   :  { %6955 = vmatpush1.bf16.msra.mxu1 %v9569_v48  ;;  %v972_v48 = vld [vmem:[#allocation5 + $0x1768] sm:$0xff] }
 0x25e   :  { %6956 = vmatprep.subr.bf16.mxu1 %v9578_v49  ;;  %v461_v49 = vld [vmem:[#allocation5 + $0x770] sm:$0xff]  ;;  %v9626_v55 = vcombine.high %v968_v45, %v972_v48 }
 0x25f   :  { %7119 = vmatpush1.bf16.msra.mxu0 %v9059_v52  ;;  %v457_v52 = vld [vmem:[#allocation5 + $0x750] sm:$0xff] }
 0x260   :  { %7120 = vmatprep.subr.bf16.mxu0 %v9068_v51  ;;  %v9617_v51 = vcombine.low %v960_v32, %v964_v34  ;;  %v9116_v57 = vcombine.high %v457_v52, %v461_v49  ;;  %v9115_v7 = vcombine.low %v457_v52, %v461_v49  ;;  %v1016_v49 = vld [vmem:[#allocation5 + $0x18c8] sm:$0xff] }
 0x261   :  { %6957 = vmatpush1.bf16.msra.mxu1 %v9577_v60  ;;  %v980_v60 = vld [vmem:[#allocation5 + $0x17a8] sm:$0xff] }
 0x262   :  { %6958 = vmatprep.subr.bf16.mxu1 %v9586_v4  ;;  %v469_v4 = vld [vmem:[#allocation5 + $0x7b0] sm:$0xff]  ;;  %v9634_v3 = vcombine.high %v976_v58, %v980_v60 }
 0x263   :  { %7121 = vmatpush1.bf16.msra.mxu0 %v9067_v1  ;;  %v465_v1 = vld [vmem:[#allocation5 + $0x790] sm:$0xff] }
 0x264   :  { %7122 = vmatprep.subr.bf16.mxu0 %v9076_v6  ;;  %v9625_v6 = vcombine.low %v968_v45, %v972_v48  ;;  %v9124_v8 = vcombine.high %v465_v1, %v469_v4  ;;  %v9123_v26 = vcombine.low %v465_v1, %v469_v4  ;;  %v1024_v4 = vld [vmem:[#allocation5 + $0x1908] sm:$0xff] }
 0x265   :  { %6959 = vmatpush1.bf16.msra.mxu1 %v9585_v11  ;;  %v988_v11 = vld [vmem:[#allocation5 + $0x17e8] sm:$0xff] }
 0x266   :  { %6960 = vmatprep.subr.bf16.mxu1 %v9594_v61  ;;  %v477_v61 = vld [vmem:[#allocation5 + $0x7f0] sm:$0xff]  ;;  %v9642_v17 = vcombine.high %v984_v10, %v988_v11 }
 0x267   :  { %7123 = vmatpush1.bf16.msra.mxu0 %v9075_v13  ;;  %v473_v13 = vld [vmem:[#allocation5 + $0x7d0] sm:$0xff] }
 0x268   :  { %7124 = vmatprep.subr.bf16.mxu0 %v9084_v24  ;;  %v9633_v24 = vcombine.low %v976_v58, %v980_v60  ;;  %v9132_v18 = vcombine.high %v473_v13, %v477_v61  ;;  %v9131_v0 = vcombine.low %v473_v13, %v477_v61  ;;  %v1032_v61 = vld [vmem:[#allocation5 + $0x1948] sm:$0xff] }
 0x269   :  { %6961 = vmatpush1.bf16.msra.mxu1 %v9593_v20  ;;  %v996_v20 = vld [vmem:[#allocation5 + $0x1828] sm:$0xff] }
 0x26a   :  { %6962 = vmatprep.subr.bf16.mxu1 %v9602_v25  ;;  %v485_v25 = vld [vmem:[#allocation5 + $0x830] sm:$0xff]  ;;  %v9650_v23 = vcombine.high %v992_v19, %v996_v20 }
 0x26b   :  { %7125 = vmatpush1.bf16.msra.mxu0 %v9083_v21  ;;  %v481_v21 = vld [vmem:[#allocation5 + $0x810] sm:$0xff] }
 0x26c   :  { %7126 = vmatprep.subr.bf16.mxu0 %v9092_v59  ;;  %v9641_v59 = vcombine.low %v984_v10, %v988_v11  ;;  %v9140_v42 = vcombine.high %v481_v21, %v485_v25  ;;  %v9139_v32 = vcombine.low %v481_v21, %v485_v25  ;;  %v1040_v25 = vld [vmem:[#allocation5 + $0x1988] sm:$0xff] }
 0x26d   :  { %6963 = vmatpush1.bf16.msra.mxu1 %v9601_v28  ;;  %v1004_v28 = vld [vmem:[#allocation5 + $0x1868] sm:$0xff] }
 0x26e   :  { %6964 = vmatprep.subr.bf16.mxu1 %v9610_v30  ;;  %v493_v30 = vld [vmem:[#allocation5 + $0x870] sm:$0xff]  ;;  %v9658_v34 = vcombine.high %v1000_v27, %v1004_v28 }
 0x26f   :  { %7127 = vmatpush1.bf16.msra.mxu0 %v9091_v29  ;;  %v489_v29 = vld [vmem:[#allocation5 + $0x850] sm:$0xff] }
 0x270   :  { %7128 = vmatprep.subr.bf16.mxu0 %v9100_v31  ;;  %v9649_v31 = vcombine.low %v992_v19, %v996_v20  ;;  %v9148_v35 = vcombine.high %v489_v29, %v493_v30  ;;  %v9147_v45 = vcombine.low %v489_v29, %v493_v30  ;;  %v1048_v30 = vld [vmem:[#allocation5 + $0x19c8] sm:$0xff] }
 0x271   :  { %6965 = vmatpush1.bf16.msra.mxu1 %v9609_v39  ;;  %v1012_v39 = vld [vmem:[#allocation5 + $0x18a8] sm:$0xff] }
 0x272   :  { %6966 = vmatprep.subr.bf16.mxu1 %v9618_v41  ;;  %v501_v41 = vld [vmem:[#allocation5 + $0x8b0] sm:$0xff]  ;;  %v9666_v48 = vcombine.high %v1008_v37, %v1012_v39 }
 0x273   :  { %7129 = vmatpush1.bf16.msra.mxu0 %v9099_v40  ;;  %v497_v40 = vld [vmem:[#allocation5 + $0x890] sm:$0xff] }
 0x274   :  { %7130 = vmatprep.subr.bf16.mxu0 %v9108_v43  ;;  %v9657_v43 = vcombine.low %v1000_v27, %v1004_v28  ;;  %v9156_v52 = vcombine.high %v497_v40, %v501_v41  ;;  %v9155_v58 = vcombine.low %v497_v40, %v501_v41  ;;  %v1056_v41 = vld [vmem:[#allocation5 + $0x1a08] sm:$0xff] }
 0x275   :  { %6967 = vmatpush1.bf16.msra.mxu1 %v9617_v51  ;;  %v1020_v51 = vld [vmem:[#allocation5 + $0x18e8] sm:$0xff] }
 0x276   :  { %6968 = vmatprep.subr.bf16.mxu1 %v9626_v55  ;;  %v509_v55 = vld [vmem:[#allocation5 + $0x8f0] sm:$0xff]  ;;  %v9674_v60 = vcombine.high %v1016_v49, %v1020_v51 }
 0x277   :  { %7131 = vmatpush1.bf16.msra.mxu0 %v9107_v54  ;;  %v505_v54 = vld [vmem:[#allocation5 + $0x8d0] sm:$0xff] }
 0x278   :  { %7132 = vmatprep.subr.bf16.mxu0 %v9116_v57  ;;  %v9665_v57 = vcombine.low %v1008_v37, %v1012_v39  ;;  %v9164_v1 = vcombine.high %v505_v54, %v509_v55  ;;  %v9163_v10 = vcombine.low %v505_v54, %v509_v55  ;;  %v1064_v55 = vld [vmem:[#allocation5 + $0x1a48] sm:$0xff] }
 0x279   :  { %6969 = vmatpush1.bf16.msra.mxu1 %v9625_v6  ;;  %v1028_v6 = vld [vmem:[#allocation5 + $0x1928] sm:$0xff] }
 0x27a   :  { %6970 = vmatprep.subr.bf16.mxu1 %v9634_v3  ;;  %v517_v3 = vld [vmem:[#allocation5 + $0x930] sm:$0xff]  ;;  %v9682_v11 = vcombine.high %v1024_v4, %v1028_v6 }
 0x27b   :  { %7133 = vmatpush1.bf16.msra.mxu0 %v9115_v7  ;;  %v513_v7 = vld [vmem:[#allocation5 + $0x910] sm:$0xff] }
 0x27c   :  { %7134 = vmatprep.subr.bf16.mxu0 %v9124_v8  ;;  %v9673_v8 = vcombine.low %v1016_v49, %v1020_v51  ;;  %v9172_v13 = vcombine.high %v513_v7, %v517_v3  ;;  %v9171_v19 = vcombine.low %v513_v7, %v517_v3  ;;  %v1072_v3 = vld [vmem:[#allocation5 + $0x1a88] sm:$0xff] }
 0x27d   :  { %6971 = vmatpush1.bf16.msra.mxu1 %v9633_v24  ;;  %v1036_v24 = vld [vmem:[#allocation5 + $0x1968] sm:$0xff] }
 0x27e   :  { %6972 = vmatprep.subr.bf16.mxu1 %v9642_v17  ;;  %v525_v17 = vld [vmem:[#allocation5 + $0x970] sm:$0xff]  ;;  %v9690_v20 = vcombine.high %v1032_v61, %v1036_v24 }
 0x27f   :  { %7135 = vmatpush1.bf16.msra.mxu0 %v9123_v26  ;;  %v521_v26 = vld [vmem:[#allocation5 + $0x950] sm:$0xff] }
 0x280   :  { %7136 = vmatprep.subr.bf16.mxu0 %v9132_v18  ;;  %v9681_v18 = vcombine.low %v1024_v4, %v1028_v6  ;;  %v9180_v21 = vcombine.high %v521_v26, %v525_v17  ;;  %v9179_v27 = vcombine.low %v521_v26, %v525_v17  ;;  %v1080_v17 = vld [vmem:[#allocation5 + $0x1ac8] sm:$0xff] }
 0x281   :  { %6973 = vmatpush1.bf16.msra.mxu1 %v9641_v59  ;;  %v1044_v59 = vld [vmem:[#allocation5 + $0x19a8] sm:$0xff] }
 0x282   :  { %6983 = vmatprep.subr.bf16.mxu1 %v9650_v23  ;;  %v533_v23 = vld [vmem:[#allocation5 + $0x9b0] sm:$0xff]  ;;  %v9698_v28 = vcombine.high %v1040_v25, %v1044_v59 }
 0x283   :  { %7137 = vmatpush1.bf16.msra.mxu0 %v9131_v0  ;;  %v529_v0 = vld [vmem:[#allocation5 + $0x990] sm:$0xff] }
 0x284   :  { %7147 = vmatprep.subr.bf16.mxu0 %v9140_v42  ;;  %6975 = vmatmul.mubr.bf16.vlgmr.msra.gmra.mrb[4].mxu1 %v10862_v16  ;;  %v9689_v42 = vcombine.low %v1032_v61, %v1036_v24  ;;  %v9188_v29 = vcombine.high %v529_v0, %v533_v23  ;;  %v9187_v37 = vcombine.low %v529_v0, %v533_v23  ;;  %v1088_v23 = vld [vmem:[#allocation5 + $0x1b08] sm:$0xff] }
 0x285   :  { %6984 = vmatpush1.bf16.msra.mxu1 %v9649_v31  ;;  %7015 = vmatprep.mubr.bf16.mxu1 %v10864_v22  ;;  %v1052_v31 = vld [vmem:[#allocation5 + $0x19e8] sm:$0xff] }
 0x286   :  { %7139 = vmatmul.mubr.bf16.vlgmr.msra.gmra.mrb[4].mxu0 %v10823_v2  ;;  %6985 = vmatprep.subr.bf16.mxu1 %v9658_v34  ;;  %v541_v34 = vld [vmem:[#allocation5 + $0x9f0] sm:$0xff]  ;;  %v9706_v39 = vcombine.high %v1048_v30, %v1052_v31 }
 0x287   :  { %7148 = vmatpush1.bf16.msra.mxu0 %v9139_v32  ;;  %7179 = vmatprep.mubr.bf16.mxu0 %v10779_v15  ;;  %v537_v32 = vld [vmem:[#allocation5 + $0x9d0] sm:$0xff] }
 0x288   :  { %7149 = vmatprep.subr.bf16.mxu0 %v9148_v35  ;;  %v9697_v35 = vcombine.low %v1040_v25, %v1044_v59  ;;  %v9196_v40 = vcombine.high %v537_v32, %v541_v34  ;;  %v9195_v49 = vcombine.low %v537_v32, %v541_v34  ;;  %v1096_v34 = vld [vmem:[#allocation5 + $0x1b48] sm:$0xff] }
 0x289   :  { %6986 = vmatpush1.bf16.msra.mxu1 %v9657_v43  ;;  %v1060_v43 = vld [vmem:[#allocation5 + $0x1a28] sm:$0xff] }
 0x28a   :  { %6987 = vmatprep.subr.bf16.mxu1 %v9666_v48  ;;  %v549_v48 = vld [vmem:[#allocation5 + $0xa30] sm:$0xff]  ;;  %v9714_v51 = vcombine.high %v1056_v41, %v1060_v43 }
 0x28b   :  { %7150 = vmatpush1.bf16.msra.mxu0 %v9147_v45  ;;  %v545_v45 = vld [vmem:[#allocation5 + $0xa10] sm:$0xff] }
 0x28c   :  { %7151 = vmatprep.subr.bf16.mxu0 %v9156_v52  ;;  %v9705_v52 = vcombine.low %v1048_v30, %v1052_v31  ;;  %v9204_v54 = vcombine.high %v545_v45, %v549_v48  ;;  %v9203_v4 = vcombine.low %v545_v45, %v549_v48  ;;  %v1104_v48 = vld [vmem:[#allocation5 + $0x1b88] sm:$0xff] }
 0x28d   :  { %6988 = vmatpush1.bf16.msra.mxu1 %v9665_v57  ;;  %v1068_v57 = vld [vmem:[#allocation5 + $0x1a68] sm:$0xff] }
 0x28e   :  { %6989 = vmatprep.subr.bf16.mxu1 %v9674_v60  ;;  %v557_v60 = vld [vmem:[#allocation5 + $0xa70] sm:$0xff]  ;;  %v9722_v6 = vcombine.high %v1064_v55, %v1068_v57 }
 0x28f   :  { %7152 = vmatpush1.bf16.msra.mxu0 %v9155_v58  ;;  %v553_v58 = vld [vmem:[#allocation5 + $0xa50] sm:$0xff] }
 0x290   :  { %7153 = vmatprep.subr.bf16.mxu0 %v9164_v1  ;;  %v9713_v1 = vcombine.low %v1056_v41, %v1060_v43  ;;  %v9212_v7 = vcombine.high %v553_v58, %v557_v60  ;;  %v9211_v61 = vcombine.low %v553_v58, %v557_v60  ;;  %v1112_v60 = vld [vmem:[#allocation5 + $0x1bc8] sm:$0xff] }
 0x291   :  { %6990 = vmatpush1.bf16.msra.mxu1 %v9673_v8  ;;  %v1076_v8 = vld [vmem:[#allocation5 + $0x1aa8] sm:$0xff] }
 0x292   :  { %6991 = vmatprep.subr.bf16.mxu1 %v9682_v11  ;;  %v565_v11 = vld [vmem:[#allocation5 + $0xab0] sm:$0xff]  ;;  %v9730_v24 = vcombine.high %v1072_v3, %v1076_v8 }
 0x293   :  { %7154 = vmatpush1.bf16.msra.mxu0 %v9163_v10  ;;  %v561_v10 = vld [vmem:[#allocation5 + $0xa90] sm:$0xff] }
 0x294   :  { %7155 = vmatprep.subr.bf16.mxu0 %v9172_v13  ;;  %v9721_v13 = vcombine.low %v1064_v55, %v1068_v57  ;;  %v9220_v26 = vcombine.high %v561_v10, %v565_v11  ;;  %v9219_v25 = vcombine.low %v561_v10, %v565_v11  ;;  %v1120_v11 = vld [vmem:[#allocation5 + $0x1c08] sm:$0xff] }
 0x295   :  { %6992 = vmatpush1.bf16.msra.mxu1 %v9681_v18  ;;  %v1084_v18 = vld [vmem:[#allocation5 + $0x1ae8] sm:$0xff] }
 0x296   :  { %6993 = vmatprep.subr.bf16.mxu1 %v9690_v20  ;;  %v573_v20 = vld [vmem:[#allocation5 + $0xaf0] sm:$0xff]  ;;  %v9738_v59 = vcombine.high %v1080_v17, %v1084_v18 }
 0x297   :  { %7156 = vmatpush1.bf16.msra.mxu0 %v9171_v19  ;;  %v569_v19 = vld [vmem:[#allocation5 + $0xad0] sm:$0xff] }
 0x298   :  { %7157 = vmatprep.subr.bf16.mxu0 %v9180_v21  ;;  %v9729_v21 = vcombine.low %v1072_v3, %v1076_v8  ;;  %v9228_v0 = vcombine.high %v569_v19, %v573_v20  ;;  %v9227_v30 = vcombine.low %v569_v19, %v573_v20  ;;  %v1128_v20 = vld [vmem:[#allocation5 + $0x1c48] sm:$0xff] }
 0x299   :  { %6994 = vmatpush1.bf16.msra.mxu1 %v9689_v42  ;;  %v1092_v42 = vld [vmem:[#allocation5 + $0x1b28] sm:$0xff] }
 0x29a   :  { %6995 = vmatprep.subr.bf16.mxu1 %v9698_v28  ;;  %v581_v28 = vld [vmem:[#allocation5 + $0xb30] sm:$0xff]  ;;  %v9746_v31 = vcombine.high %v1088_v23, %v1092_v42 }
 0x29b   :  { %7158 = vmatpush1.bf16.msra.mxu0 %v9179_v27  ;;  %v577_v27 = vld [vmem:[#allocation5 + $0xb10] sm:$0xff] }
 0x29c   :  { %7159 = vmatprep.subr.bf16.mxu0 %v9188_v29  ;;  %v9737_v29 = vcombine.low %v1080_v17, %v1084_v18  ;;  %v9236_v32 = vcombine.high %v577_v27, %v581_v28  ;;  %v9235_v41 = vcombine.low %v577_v27, %v581_v28  ;;  %v1136_v28 = vld [vmem:[#allocation5 + $0x1c88] sm:$0xff] }
 0x29d   :  { %6996 = vmatpush1.bf16.msra.mxu1 %v9697_v35  ;;  %v1100_v35 = vld [vmem:[#allocation5 + $0x1b68] sm:$0xff] }
 0x29e   :  { %6997 = vmatprep.subr.bf16.mxu1 %v9706_v39  ;;  %v589_v39 = vld [vmem:[#allocation5 + $0xb70] sm:$0xff]  ;;  %v9754_v43 = vcombine.high %v1096_v34, %v1100_v35 }
 0x29f   :  { %7160 = vmatpush1.bf16.msra.mxu0 %v9187_v37  ;;  %v585_v37 = vld [vmem:[#allocation5 + $0xb50] sm:$0xff] }
 0x2a0   :  { %7161 = vmatprep.subr.bf16.mxu0 %v9196_v40  ;;  %v9745_v40 = vcombine.low %v1088_v23, %v1092_v42  ;;  %v9244_v45 = vcombine.high %v585_v37, %v589_v39  ;;  %v9243_v55 = vcombine.low %v585_v37, %v589_v39  ;;  %v1144_v39 = vld [vmem:[#allocation5 + $0x1cc8] sm:$0xff] }
 0x2a1   :  { %6998 = vmatpush1.bf16.msra.mxu1 %v9705_v52  ;;  %v1108_v52 = vld [vmem:[#allocation5 + $0x1ba8] sm:$0xff] }
 0x2a2   :  { %6999 = vmatprep.subr.bf16.mxu1 %v9714_v51  ;;  %v597_v51 = vld [vmem:[#allocation5 + $0xbb0] sm:$0xff]  ;;  %v9762_v57 = vcombine.high %v1104_v48, %v1108_v52 }
 0x2a3   :  { %7162 = vmatpush1.bf16.msra.mxu0 %v9195_v49  ;;  %v593_v49 = vld [vmem:[#allocation5 + $0xb90] sm:$0xff] }
 0x2a4   :  { %7163 = vmatprep.subr.bf16.mxu0 %v9204_v54  ;;  %v9753_v54 = vcombine.low %v1096_v34, %v1100_v35  ;;  %v9252_v58 = vcombine.high %v593_v49, %v597_v51  ;;  %v9251_v3 = vcombine.low %v593_v49, %v597_v51  ;;  %v1152_v51 = vld [vmem:[#allocation5 + $0x1d08] sm:$0xff] }
 0x2a5   :  { %7000 = vmatpush1.bf16.msra.mxu1 %v9713_v1  ;;  %v1116_v1 = vld [vmem:[#allocation5 + $0x1be8] sm:$0xff] }
 0x2a6   :  { %7001 = vmatprep.subr.bf16.mxu1 %v9722_v6  ;;  %v605_v6 = vld [vmem:[#allocation5 + $0xbf0] sm:$0xff]  ;;  %v9770_v8 = vcombine.high %v1112_v60, %v1116_v1 }
 0x2a7   :  { %7164 = vmatpush1.bf16.msra.mxu0 %v9203_v4  ;;  %v601_v4 = vld [vmem:[#allocation5 + $0xbd0] sm:$0xff] }
 0x2a8   :  { %7165 = vmatprep.subr.bf16.mxu0 %v9212_v7  ;;  %v9761_v7 = vcombine.low %v1104_v48, %v1108_v52  ;;  %v9260_v10 = vcombine.high %v601_v4, %v605_v6  ;;  %v9259_v17 = vcombine.low %v601_v4, %v605_v6  ;;  %v1251_v4 = vsub.s32 0, %v10756_v44 }
 0x2a9   :  { %7002 = vmatpush1.bf16.msra.mxu1 %v9721_v13  ;;  %v1124_v13 = vld [vmem:[#allocation5 + $0x1c28] sm:$0xff] }
 0x2aa   :  { %7003 = vmatprep.subr.bf16.mxu1 %v9730_v24  ;;  %v613_v24 = vld [vmem:[#allocation5 + $0xc30] sm:$0xff]  ;;  %v9778_v18 = vcombine.high %v1120_v11, %v1124_v13 }
 0x2ab   :  { %7166 = vmatpush1.bf16.msra.mxu0 %v9211_v61  ;;  %v609_v61 = vld [vmem:[#allocation5 + $0xc10] sm:$0xff] }
 0x2ac   :  { %7167 = vmatprep.subr.bf16.mxu0 %v9220_v26  ;;  %v9769_v26 = vcombine.low %v1112_v60, %v1116_v1  ;;  %v9268_v19 = vcombine.high %v609_v61, %v613_v24  ;;  %v9267_v23 = vcombine.low %v609_v61, %v613_v24 }
 0x2ad   :  { %7004 = vmatpush1.bf16.msra.mxu1 %v9729_v21  ;;  %v1132_v21 = vld [vmem:[#allocation5 + $0x1c68] sm:$0xff] }
 0x2ae   :  { %7005 = vmatprep.subr.bf16.mxu1 %v9738_v59  ;;  %v621_v59 = vld [vmem:[#allocation5 + $0xc70] sm:$0xff]  ;;  %v9786_v42 = vcombine.high %v1128_v20, %v1132_v21 }
 0x2af   :  { %7168 = vmatpush1.bf16.msra.mxu0 %v9219_v25  ;;  %v617_v25 = vld [vmem:[#allocation5 + $0xc50] sm:$0xff] }
 0x2b0   :  { %7169 = vmatprep.subr.bf16.mxu0 %v9228_v0  ;;  %v9777_v0 = vcombine.low %v1120_v11, %v1124_v13  ;;  %v9276_v27 = vcombine.high %v617_v25, %v621_v59  ;;  %v9275_v34 = vcombine.low %v617_v25, %v621_v59  ;;  %v649_v11 = vld [vmem:[#allocation5 + $0xd50] sm:$0xff] }
 0x2b1   :  { %7006 = vmatpush1.bf16.msra.mxu1 %v9737_v29  ;;  %v1140_v29 = vld [vmem:[#allocation5 + $0x1ca8] sm:$0xff]  ;;  %v653_v13 = vld [vmem:[#allocation5 + $0xd70] sm:$0xff] }
 0x2b2   :  { %7007 = vmatprep.subr.bf16.mxu1 %v9746_v31  ;;  %v629_v31 = vld [vmem:[#allocation5 + $0xcb0] sm:$0xff]  ;;  %v9794_v35 = vcombine.high %v1136_v28, %v1140_v29 }
 0x2b3   :  { %7170 = vmatpush1.bf16.msra.mxu0 %v9227_v30  ;;  %v625_v30 = vld [vmem:[#allocation5 + $0xc90] sm:$0xff] }
 0x2b4   :  { %7171 = vmatprep.subr.bf16.mxu0 %v9236_v32  ;;  %v9785_v32 = vcombine.low %v1128_v20, %v1132_v21  ;;  %v9284_v37 = vcombine.high %v625_v30, %v629_v31  ;;  %v9283_v48 = vcombine.low %v625_v30, %v629_v31  ;;  %v1172_v20 = vld [vmem:[#allocation5 + $0x1da8] sm:$0xff]  ;;  %v657_v25 = vld [vmem:[#allocation5 + $0xd90] sm:$0xff] }
 0x2b5   :  { %7008 = vmatpush1.bf16.msra.mxu1 %v9745_v40  ;;  %v1148_v40 = vld [vmem:[#allocation5 + $0x1ce8] sm:$0xff]  ;;  %v661_v59 = vld [vmem:[#allocation5 + $0xdb0] sm:$0xff] }
 0x2b6   :  { %7009 = vmatprep.subr.bf16.mxu1 %v9754_v43  ;;  %v637_v43 = vld [vmem:[#allocation5 + $0xcf0] sm:$0xff]  ;;  %v9802_v52 = vcombine.high %v1144_v39, %v1148_v40  ;;  %v1180_v30 = vld [vmem:[#allocation5 + $0x1de8] sm:$0xff] }
 0x2b7   :  { %7172 = vmatpush1.bf16.msra.mxu0 %v9235_v41  ;;  %v633_v41 = vld [vmem:[#allocation5 + $0xcd0] sm:$0xff] }
 0x2b8   :  { %7173 = vmatprep.subr.bf16.mxu0 %v9244_v45  ;;  %v9793_v45 = vcombine.low %v1136_v28, %v1140_v29  ;;  %v9292_v49 = vcombine.high %v633_v41, %v637_v43  ;;  %v9291_v60 = vcombine.low %v633_v41, %v637_v43  ;;  %v9316_v28 = vcombine.high %v657_v25, %v661_v59  ;;  %v1176_v29 = vld [vmem:[#allocation5 + $0x1dc8] sm:$0xff] }
 0x2b9   :  { %7010 = vmatpush1.bf16.msra.mxu1 %v9753_v54  ;;  %v1156_v54 = vld [vmem:[#allocation5 + $0x1d28] sm:$0xff] }
 0x2ba   :  { %7011 = vmatprep.subr.bf16.mxu1 %v9762_v57  ;;  %v645_v57 = vld [vmem:[#allocation5 + $0xd30] sm:$0xff]  ;;  %v9810_v1 = vcombine.high %v1152_v51, %v1156_v54  ;;  %v9809_v61 = vcombine.low %v1152_v51, %v1156_v54 }
 0x2bb   :  { %7174 = vmatpush1.bf16.msra.mxu0 %v9243_v55  ;;  %v641_v55 = vld [vmem:[#allocation5 + $0xd10] sm:$0xff] }
 0x2bc   :  { %7175 = vmatprep.subr.bf16.mxu0 %v9252_v58  ;;  %v9801_v58 = vcombine.low %v1144_v39, %v1148_v40  ;;  %v9300_v6 = vcombine.high %v641_v55, %v645_v57  ;;  %v9299_v24 = vcombine.low %v641_v55, %v645_v57  ;;  %v673_v51 = vld [vmem:[#allocation5 + $0xe10] sm:$0xff]  ;;  %v9833_v55 = vcombine.low %v1176_v29, %v1180_v30 }
 0x2bd   :  { %7012 = vmatpush1.bf16.msra.mxu1 %v9761_v7  ;;  %v1160_v7 = vld [vmem:[#allocation5 + $0x1d48] sm:$0xff]  ;;  %v677_v54 = vld [vmem:[#allocation5 + $0xe30] sm:$0xff] }
 0x2be   :  { %7013 = vmatprep.subr.bf16.mxu1 %v9770_v8  ;;  %v1247_v8 = vld [vmem:[#allocation7] sm:$0xff] }
 0x2bf   :  { %7176 = vmatpush1.bf16.msra.mxu0 %v9251_v3  ;;  %v1164_v3 = vld [vmem:[#allocation5 + $0x1d68] sm:$0xff] }
 0x2c0   :  { %7177 = vmatprep.subr.bf16.mxu0 %v9260_v10  ;;  %v1255_v10 = vsub.s32 1, %v10756_v44 }
 0x2c1   :  { %7014 = vmatpush1.bf16.msra.mxu1 %v9769_v26  ;;  %v9818_v26 = vcombine.high %v1160_v7, %v1164_v3 }
 0x2c2   :  { %7024 = vmatprep.subr.bf16.mxu1 %v9778_v18  ;;  %v9308_v18 = vcombine.high %v649_v11, %v653_v13  ;;  %v1256_v21 = vrot.slane %v1247_v8, %v1255_v10 }
 0x2c3   :  { %7178 = vmatpush1.bf16.msra.mxu0 %v9259_v17  ;;  %v1252_v17 = vrot.slane %v1247_v8, %v1251_v4 }
 0x2c4   :  { %7188 = vmatprep.subr.bf16.mxu0 %v9268_v19  ;;  %7016 = vmatmul.mubr.bf16.vlgmr.msra.gmra.mrb[4].mxu1 %v10879_v62  ;;  %v1168_v19 = vld [vmem:[#allocation5 + $0x1d88] sm:$0xff]  ;;  %v10072_v31 = vadd.f32 %v10889_v53, %v1256_v21 }
 0x2c5   :  { %7025 = vmatpush1.bf16.msra.mxu1 %v9777_v0  ;;  %7056 = vmatprep.mubr.bf16.mxu1 %v10881_v9  ;;  %v9817_v0 = vcombine.low %v1160_v7, %v1164_v3  ;;  %v9825_v40 = vcombine.low %v1168_v19, %v1172_v20  ;;  %v1188_v53 = vld [vmem:[#allocation5 + $0x1e28] sm:$0xff]  ;;  %v681_v7 = vld [vmem:[#allocation5 + $0xe50] sm:$0xff] }
 0x2c6   :  { %7180 = vmatmul.mubr.bf16.vlgmr.msra.gmra.mrb[4].mxu0 %v10803_v38  ;;  %7026 = vmatprep.subr.bf16.mxu1 %v9786_v42  ;;  %v9826_v42 = vcombine.high %v1168_v19, %v1172_v20  ;;  %v685_v3 = vld [vmem:[#allocation5 + $0xe70] sm:$0xff] }
 0x2c7   :  { %7189 = vmatpush1.bf16.msra.mxu0 %v9267_v23  ;;  %7220 = vmatprep.mubr.bf16.mxu0 %v10808_v47  ;;  %v9307_v23 = vcombine.low %v649_v11, %v653_v13  ;;  %v9331_v11 = vcombine.low %v673_v51, %v677_v54  ;;  %v9339_v20 = vcombine.low %v681_v7, %v685_v3 }
 0x2c8   :  { %7190 = vmatprep.subr.bf16.mxu0 %v9276_v27  ;;  %v10070_v27 = vadd.f32 %v10887_v56, %v1252_v17  ;;  %v9315_v56 = vcombine.low %v657_v25, %v661_v59  ;;  %v689_v17 = vld [vmem:[#allocation5 + $0xe90] sm:$0xff]  ;;  %v1208_v59 = vld [vmem:[#allocation5 + $0x1ec8] sm:$0xff] }
 0x2c9   :  { %7027 = vmatpush1.bf16.msra.mxu1 %v9785_v32 }
 0x2ca   :  { %7028 = vmatprep.subr.bf16.mxu1 %v9794_v35  ;;  %v669_v35 = vld [vmem:[#allocation5 + $0xdf0] sm:$0xff] }
 0x2cb   :  { %7191 = vmatpush1.bf16.msra.mxu0 %v9275_v34  ;;  %v665_v34 = vld [vmem:[#allocation5 + $0xdd0] sm:$0xff] }
 0x2cc   :  { %7192 = vmatprep.subr.bf16.mxu0 %v9284_v37  ;;  %v9323_v57 = vcombine.low %v665_v34, %v669_v35 }
 0x2cd   :  { %7029 = vmatpush1.bf16.msra.mxu1 %v9793_v45  ;;  %v9834_v45 = vcombine.high %v1176_v29, %v1180_v30 }
 0x2ce   :  { %7030 = vmatprep.subr.bf16.mxu1 %v9802_v52  ;;  %v9324_v52 = vcombine.high %v665_v34, %v669_v35  ;;  %v705_v34 = vld [vmem:[#allocation5 + $0xf10] sm:$0xff] }
 0x2cf   :  { %7193 = vmatpush1.bf16.msra.mxu0 %v9283_v48  ;;  %v709_v35 = vld [vmem:[#allocation5 + $0xf30] sm:$0xff] }
 0x2d0   :  { %7194 = vmatprep.subr.bf16.mxu0 %v9292_v49  ;;  %v1184_v49 = vld [vmem:[#allocation5 + $0x1e08] sm:$0xff] }
 0x2d1   :  { %7031 = vmatpush1.bf16.msra.mxu1 %v9801_v58  ;;  %v9842_v58 = vcombine.high %v1184_v49, %v1188_v53  ;;  %v9841_v8 = vcombine.low %v1184_v49, %v1188_v53  ;;  %v717_v49 = vld [vmem:[#allocation5 + $0xf70] sm:$0xff] }
 0x2d2   :  { %7032 = vmatprep.subr.bf16.mxu1 %v9810_v1  ;;  %v1192_v1 = vld [vmem:[#allocation5 + $0x1e48] sm:$0xff] }
 0x2d3   :  { %7195 = vmatpush1.bf16.msra.mxu0 %v9291_v60  ;;  %v9332_v60 = vcombine.high %v673_v51, %v677_v54  ;;  %v9363_v51 = vcombine.low %v705_v34, %v709_v35 }
 0x2d4   :  { %7196 = vmatprep.subr.bf16.mxu0 %v9300_v6  ;;  %v1196_v6 = vld [vmem:[#allocation5 + $0x1e68] sm:$0xff] }
 0x2d5   :  { %7033 = vmatpush1.bf16.msra.mxu1 %v9809_v61  ;;  %v9850_v13 = vcombine.high %v1192_v1, %v1196_v6  ;;  %v9340_v61 = vcombine.high %v681_v7, %v685_v3  ;;  %v9849_v19 = vcombine.low %v1192_v1, %v1196_v6  ;;  %v725_v1 = vld [vmem:[#allocation5 + $0xfb0] sm:$0xff] }
 0x2d6   :  { %7034 = vmatprep.subr.bf16.mxu1 %v9818_v26  ;;  %v1204_v26 = vld [vmem:[#allocation5 + $0x1ea8] sm:$0xff] }
 0x2d7   :  { %7197 = vmatpush1.bf16.msra.mxu0 %v9299_v24  ;;  %v1200_v24 = vld [vmem:[#allocation5 + $0x1e88] sm:$0xff] }
 0x2d8   :  { %7198 = vmatprep.subr.bf16.mxu0 %v9308_v18  ;;  %v693_v18 = vld [vmem:[#allocation5 + $0xeb0] sm:$0xff]  ;;  %v9858_v21 = vcombine.high %v1200_v24, %v1204_v26 }
 0x2d9   :  { %v6730_v32 = vpop.f32.mrb[0].mxu0  ;;  %7035 = vmatpush1.bf16.msra.mxu1 %v9817_v0  ;;  %v9348_v25 = vcombine.high %v689_v17, %v693_v18  ;;  %v1212_v0 = vld [vmem:[#allocation5 + $0x1ee8] sm:$0xff] }
 0x2da   :  { %v10919_v37 = vadd.f32 %v10070_v27, %v6730_v32  ;;  %v6732_v39 = vpop.f32.mrb[1].mxu0  ;;  %7036 = vmatprep.subr.bf16.mxu1 %v9826_v42  ;;  %v701_v42 = vld [vmem:[#allocation5 + $0xef0] sm:$0xff]  ;;  %v9857_v27 = vcombine.low %v1200_v24, %v1204_v26  ;;  %v9866_v29 = vcombine.high %v1208_v59, %v1212_v0  ;;  %v1220_v32 = vld [vmem:[#allocation5 + $0x1f28] sm:$0xff] }
 0x2db   :  { %v10921_v41 = vadd.f32 %v10072_v31, %v6732_v39  ;;  %v6734_v43 = vpop.f32.mrb[2].mxu0  ;;  %7199 = vmatpush1.bf16.msra.mxu0 %v9307_v23  ;;  %v697_v23 = vld [vmem:[#allocation5 + $0xed0] sm:$0xff]  ;;  %v1216_v31 = vld [vmem:[#allocation5 + $0x1f08] sm:$0xff]  ;;  %v9865_v39 = vcombine.low %v1208_v59, %v1212_v0 }
 0x2dc   :  { %v6735_v48 = vpop.f32.mrb[3].mxu0  ;;  %7200 = vmatprep.subr.bf16.mxu0 %v9316_v28  ;;  %v9347_v28 = vcombine.low %v689_v17, %v693_v18  ;;  %v9356_v30 = vcombine.high %v697_v23, %v701_v42  ;;  %v9874_v43 = vcombine.high %v1216_v31, %v1220_v32  ;;  %v9873_v53 = vcombine.low %v1216_v31, %v1220_v32  ;;  %v733_v24 = vld [vmem:[#allocation5 + $0xff0] sm:$0xff] }
 0x2dd   :  { %7037 = vmatpush1.bf16.msra.mxu1 %v9825_v40  ;;  %v9355_v40 = vcombine.low %v697_v23, %v701_v42  ;;  %v1228_v48 = vld [vmem:[#allocation5 + $0x1f68] sm:$0xff]  ;;  %v741_v59 = vld [vmem:[#allocation5 + $0x1030] sm:$0xff] }
 0x2de   :  { %7038 = vmatprep.subr.bf16.mxu1 %v9834_v45  ;;  %v1224_v45 = vld [vmem:[#allocation5 + $0x1f48] sm:$0xff]  ;;  %v749_v31 = vld [vmem:[#allocation5 + $0x1070] sm:$0xff] }
 0x2df   :  { %7201 = vmatpush1.bf16.msra.mxu0 %v9315_v56  ;;  %v9364_v56 = vcombine.high %v705_v34, %v709_v35  ;;  %v9882_v54 = vcombine.high %v1224_v45, %v1228_v48  ;;  %v9881_v6 = vcombine.low %v1224_v45, %v1228_v48  ;;  %v757_v45 = vld [vmem:[#allocation5 + $0x10b0] sm:$0xff] }
 0x2e0   :  { %7202 = vmatprep.subr.bf16.mxu0 %v9324_v52  ;;  %v713_v52 = vld [vmem:[#allocation5 + $0xf50] sm:$0xff] }
 0x2e1   :  { %7039 = vmatpush1.bf16.msra.mxu1 %v9833_v55  ;;  %v9372_v55 = vcombine.high %v713_v52, %v717_v49  ;;  %v9371_v7 = vcombine.low %v713_v52, %v717_v49 }
 0x2e2   :  { %7040 = vmatprep.subr.bf16.mxu1 %v9842_v58  ;;  %v1236_v58 = vld [vmem:[#allocation5 + $0x1fa8] sm:$0xff] }
 0x2e3   :  { %7203 = vmatpush1.bf16.msra.mxu0 %v9323_v57  ;;  %v1232_v57 = vld [vmem:[#allocation5 + $0x1f88] sm:$0xff] }
 0x2e4   :  { %7204 = vmatprep.subr.bf16.mxu0 %v9332_v60  ;;  %v721_v60 = vld [vmem:[#allocation5 + $0xf90] sm:$0xff]  ;;  %v9890_v3 = vcombine.high %v1232_v57, %v1236_v58  ;;  %v9889_v26 = vcombine.low %v1232_v57, %v1236_v58 }
 0x2e5   :  { %7041 = vmatpush1.bf16.msra.mxu1 %v9841_v8  ;;  %v9380_v8 = vcombine.high %v721_v60, %v725_v1  ;;  %v9379_v17 = vcombine.low %v721_v60, %v725_v1  ;;  %v765_v57 = vld [vmem:[#allocation5 + $0x10f0] sm:$0xff] }
 0x2e6   :  { %7042 = vmatprep.subr.bf16.mxu1 %v9850_v13  ;;  %v1244_v13 = vld [vmem:[#allocation5 + $0x1fe8] sm:$0xff] }
 0x2e7   :  { %7205 = vmatpush1.bf16.msra.mxu0 %v9331_v11  ;;  %v1240_v11 = vld [vmem:[#allocation5 + $0x1fc8] sm:$0xff] }
 0x2e8   :  { %7206 = vmatprep.subr.bf16.mxu0 %v9340_v61  ;;  %v729_v61 = vld [vmem:[#allocation5 + $0xfd0] sm:$0xff]  ;;  %v9898_v18 = vcombine.high %v1240_v11, %v1244_v13  ;;  %v9897_v0 = vcombine.low %v1240_v11, %v1244_v13 }
 0x2e9   :  { %7043 = vmatpush1.bf16.msra.mxu1 %v9849_v19  ;;  %v9388_v19 = vcombine.high %v729_v61, %v733_v24  ;;  %v9387_v23 = vcombine.low %v729_v61, %v733_v24  ;;  %v773_v11 = vld [vmem:[#allocation5 + $0x1130] sm:$0xff] }
 0x2ea   :  { %7044 = vmatprep.subr.bf16.mxu1 %v9858_v21  ;;  %v230_v21 = vld [vmem:[#allocation5 + $0x38] sm:$0xff] }
 0x2eb   :  { %7207 = vmatpush1.bf16.msra.mxu0 %v9339_v20  ;;  %v226_v20 = vld [vmem:[#allocation5 + $0x18] sm:$0xff] }
 0x2ec   :  { %7208 = vmatprep.subr.bf16.mxu0 %v9348_v25  ;;  %v737_v25 = vld [vmem:[#allocation5 + $0x1010] sm:$0xff]  ;;  %v8886_v42 = vcombine.high %v226_v20, %v230_v21  ;;  %v8885_v32 = vcombine.low %v226_v20, %v230_v21 }
 0x2ed   :  { %7045 = vmatpush1.bf16.msra.mxu1 %v9857_v27  ;;  %v9396_v27 = vcombine.high %v737_v25, %v741_v59  ;;  %v9395_v34 = vcombine.low %v737_v25, %v741_v59 }
 0x2ee   :  { %7046 = vmatprep.subr.bf16.mxu1 %v9866_v29  ;;  %v238_v29 = vld [vmem:[#allocation5 + $0x78] sm:$0xff] }
 0x2ef   :  { %7209 = vmatpush1.bf16.msra.mxu0 %v9347_v28  ;;  %v234_v28 = vld [vmem:[#allocation5 + $0x58] sm:$0xff] }
 0x2f0   :  { %7210 = vmatprep.subr.bf16.mxu0 %v9356_v30  ;;  %v745_v30 = vld [vmem:[#allocation5 + $0x1050] sm:$0xff]  ;;  %v8894_v35 = vcombine.high %v234_v28, %v238_v29  ;;  %v8893_v48 = vcombine.low %v234_v28, %v238_v29 }
 0x2f1   :  { %7047 = vmatpush1.bf16.msra.mxu1 %v9865_v39  ;;  %v9404_v39 = vcombine.high %v745_v30, %v749_v31  ;;  %v9403_v52 = vcombine.low %v745_v30, %v749_v31 }
 0x2f2   :  { %7048 = vmatprep.subr.bf16.mxu1 %v9874_v43  ;;  %v246_v43 = vld [vmem:[#allocation5 + $0xb8] sm:$0xff] }
 0x2f3   :  { %7211 = vmatpush1.bf16.msra.mxu0 %v9355_v40  ;;  %v242_v40 = vld [vmem:[#allocation5 + $0x98] sm:$0xff] }
 0x2f4   :  { %7212 = vmatprep.subr.bf16.mxu0 %v9364_v56  ;;  %v753_v56 = vld [vmem:[#allocation5 + $0x1090] sm:$0xff]  ;;  %v8902_v49 = vcombine.high %v242_v40, %v246_v43  ;;  %v8901_v58 = vcombine.low %v242_v40, %v246_v43 }
 0x2f5   :  { %7049 = vmatpush1.bf16.msra.mxu1 %v9873_v53  ;;  %v9412_v53 = vcombine.high %v753_v56, %v757_v45  ;;  %v9411_v60 = vcombine.low %v753_v56, %v757_v45 }
 0x2f6   :  { %7050 = vmatprep.subr.bf16.mxu1 %v9882_v54  ;;  %v254_v54 = vld [vmem:[#allocation5 + $0xf8] sm:$0xff] }
 0x2f7   :  { %7213 = vmatpush1.bf16.msra.mxu0 %v9363_v51  ;;  %v250_v51 = vld [vmem:[#allocation5 + $0xd8] sm:$0xff] }
 0x2f8   :  { %7214 = vmatprep.subr.bf16.mxu0 %v9372_v55  ;;  %v761_v55 = vld [vmem:[#allocation5 + $0x10d0] sm:$0xff]  ;;  %v8910_v1 = vcombine.high %v250_v51, %v254_v54  ;;  %v8909_v13 = vcombine.low %v250_v51, %v254_v54 }
 0x2f9   :  { %7051 = vmatpush1.bf16.msra.mxu1 %v9881_v6  ;;  %v9420_v6 = vcombine.high %v761_v55, %v765_v57  ;;  %v9419_v61 = vcombine.low %v761_v55, %v765_v57 }
 0x2fa   :  { %7052 = vmatprep.subr.bf16.mxu1 %v9890_v3  ;;  %v262_v3 = vld [vmem:[#allocation5 + $0x138] sm:$0xff] }
 0x2fb   :  { %7215 = vmatpush1.bf16.msra.mxu0 %v9371_v7  ;;  %v258_v7 = vld [vmem:[#allocation5 + $0x118] sm:$0xff] }
 0x2fc   :  { %7216 = vmatprep.subr.bf16.mxu0 %v9380_v8  ;;  %v769_v8 = vld [vmem:[#allocation5 + $0x1110] sm:$0xff]  ;;  %v8918_v24 = vcombine.high %v258_v7, %v262_v3  ;;  %v8917_v20 = vcombine.low %v258_v7, %v262_v3 }
 0x2fd   :  { %7053 = vmatpush1.bf16.msra.mxu1 %v9889_v26  ;;  %v266_v26 = vld [vmem:[#allocation5 + $0x158] sm:$0xff]  ;;  %v9427_v21 = vcombine.low %v769_v8, %v773_v11 }
 0x2fe   :  { %7054 = vmatprep.subr.bf16.mxu1 %v9898_v18  ;;  %v777_v18 = vld [vmem:[#allocation5 + $0x1150] sm:$0xff] }
 0x2ff   :  { %7217 = vmatpush1.bf16.msra.mxu0 %v9379_v17  ;;  %v270_v17 = vld [vmem:[#allocation5 + $0x178] sm:$0xff] }
 0x300   :  { %7218 = vmatprep.subr.bf16.mxu0 %v9388_v19  ;;  %v781_v19 = vld [vmem:[#allocation5 + $0x1170] sm:$0xff]  ;;  %v8926_v25 = vcombine.high %v266_v26, %v270_v17  ;;  %v8925_v28 = vcombine.low %v266_v26, %v270_v17 }
 0x301   :  { %7055 = vmatpush1.bf16.msra.mxu1 %v9897_v0  ;;  %v9436_v59 = vcombine.high %v777_v18, %v781_v19  ;;  %v274_v0 = vld [vmem:[#allocation5 + $0x198] sm:$0xff]  ;;  %v9435_v29 = vcombine.low %v777_v18, %v781_v19 }
 0x302   :  { %7393 = vmatprep.subr.bf16.mxu1 %v8886_v42  ;;  %v785_v42 = vld [vmem:[#allocation5 + $0x1190] sm:$0xff] }
 0x303   :  { %7219 = vmatpush1.bf16.msra.mxu0 %v9387_v23  ;;  %v278_v23 = vld [vmem:[#allocation5 + $0x1b8] sm:$0xff] }
 0x304   :  { %7229 = vmatprep.subr.bf16.mxu0 %v9396_v27  ;;  %7057 = vmatmul.mubr.bf16.vlgmr.msra.gmra.mrb[4].mxu1 %v10893_v50  ;;  %v789_v27 = vld [vmem:[#allocation5 + $0x11b0] sm:$0xff]  ;;  %v8934_v30 = vcombine.high %v274_v0, %v278_v23  ;;  %v8933_v40 = vcombine.low %v274_v0, %v278_v23 }
 0x305   :  { %7394 = vmatpush1.bf16.msra.mxu1 %v8885_v32  ;;  %7425 = vmatprep.mubr.bf16.mxu1 %v10777_v12  ;;  %v9428_v12 = vcombine.high %v769_v8, %v773_v11  ;;  %v9444_v31 = vcombine.high %v785_v42, %v789_v27  ;;  %v282_v32 = vld [vmem:[#allocation5 + $0x1d8] sm:$0xff]  ;;  %v9443_v43 = vcombine.low %v785_v42, %v789_v27 }
 0x306   :  { %7221 = vmatmul.mubr.bf16.vlgmr.msra.gmra.mrb[4].mxu0 %v10827_v5  ;;  %7395 = vmatprep.subr.bf16.mxu1 %v8894_v35  ;;  %v793_v35 = vld [vmem:[#allocation5 + $0x11d0] sm:$0xff] }
 0x307   :  { %7230 = vmatpush1.bf16.msra.mxu0 %v9395_v34  ;;  %7261 = vmatprep.mubr.bf16.mxu0 %v10829_v14  ;;  %v286_v34 = vld [vmem:[#allocation5 + $0x1f8] sm:$0xff] }
 0x308   :  { %7231 = vmatprep.subr.bf16.mxu0 %v9404_v39  ;;  %v797_v39 = vld [vmem:[#allocation5 + $0x11f0] sm:$0xff]  ;;  %v8942_v56 = vcombine.high %v282_v32, %v286_v34  ;;  %v8941_v51 = vcombine.low %v282_v32, %v286_v34 }
 0x309   :  { %7396 = vmatpush1.bf16.msra.mxu1 %v8893_v48  ;;  %v9452_v45 = vcombine.high %v793_v35, %v797_v39  ;;  %v290_v48 = vld [vmem:[#allocation5 + $0x218] sm:$0xff]  ;;  %v9451_v54 = vcombine.low %v793_v35, %v797_v39 }
 0x30a   :  { %7397 = vmatprep.subr.bf16.mxu1 %v8902_v49  ;;  %v801_v49 = vld [vmem:[#allocation5 + $0x1210] sm:$0xff] }
 0x30b   :  { %7232 = vmatpush1.bf16.msra.mxu0 %v9403_v52  ;;  %v294_v52 = vld [vmem:[#allocation5 + $0x238] sm:$0xff] }
 0x30c   :  { %7233 = vmatprep.subr.bf16.mxu0 %v9412_v53  ;;  %v805_v53 = vld [vmem:[#allocation5 + $0x1230] sm:$0xff]  ;;  %v8950_v55 = vcombine.high %v290_v48, %v294_v52  ;;  %v8949_v7 = vcombine.low %v290_v48, %v294_v52 }
 0x30d   :  { %7398 = vmatpush1.bf16.msra.mxu1 %v8901_v58  ;;  %v9460_v57 = vcombine.high %v801_v49, %v805_v53  ;;  %v298_v58 = vld [vmem:[#allocation5 + $0x258] sm:$0xff]  ;;  %v9459_v3 = vcombine.low %v801_v49, %v805_v53 }
 0x30e   :  { %7399 = vmatprep.subr.bf16.mxu1 %v8910_v1  ;;  %v809_v1 = vld [vmem:[#allocation5 + $0x1250] sm:$0xff] }
 0x30f   :  { %7234 = vmatpush1.bf16.msra.mxu0 %v9411_v60  ;;  %v302_v60 = vld [vmem:[#allocation5 + $0x278] sm:$0xff] }
 0x310   :  { %7235 = vmatprep.subr.bf16.mxu0 %v9420_v6  ;;  %v813_v6 = vld [vmem:[#allocation5 + $0x1270] sm:$0xff]  ;;  %v8958_v8 = vcombine.high %v298_v58, %v302_v60  ;;  %v8957_v26 = vcombine.low %v298_v58, %v302_v60 }
 0x311   :  { %7400 = vmatpush1.bf16.msra.mxu1 %v8909_v13  ;;  %v9468_v11 = vcombine.high %v809_v1, %v813_v6  ;;  %v306_v13 = vld [vmem:[#allocation5 + $0x298] sm:$0xff]  ;;  %v9467_v17 = vcombine.low %v809_v1, %v813_v6 }
 0x312   :  { %7401 = vmatprep.subr.bf16.mxu1 %v8918_v24  ;;  %v817_v24 = vld [vmem:[#allocation5 + $0x1290] sm:$0xff] }
 0x313   :  { %7236 = vmatpush1.bf16.msra.mxu0 %v9419_v61  ;;  %v310_v61 = vld [vmem:[#allocation5 + $0x2b8] sm:$0xff] }
 0x314   :  { %7237 = vmatprep.subr.bf16.mxu0 %v9428_v12  ;;  %v821_v12 = vld [vmem:[#allocation5 + $0x12b0] sm:$0xff]  ;;  %v8966_v18 = vcombine.high %v306_v13, %v310_v61  ;;  %v8965_v0 = vcombine.low %v306_v13, %v310_v61 }
 0x315   :  { %7402 = vmatpush1.bf16.msra.mxu1 %v8917_v20  ;;  %v9476_v19 = vcombine.high %v817_v24, %v821_v12  ;;  %v314_v20 = vld [vmem:[#allocation5 + $0x2d8] sm:$0xff]  ;;  %v9475_v23 = vcombine.low %v817_v24, %v821_v12 }
 0x316   :  { %7403 = vmatprep.subr.bf16.mxu1 %v8926_v25  ;;  %v825_v25 = vld [vmem:[#allocation5 + $0x12d0] sm:$0xff] }
 0x317   :  { %7238 = vmatpush1.bf16.msra.mxu0 %v9427_v21  ;;  %v318_v21 = vld [vmem:[#allocation5 + $0x2f8] sm:$0xff] }
 0x318   :  { %7239 = vmatprep.subr.bf16.mxu0 %v9436_v59  ;;  %v829_v59 = vld [vmem:[#allocation5 + $0x12f0] sm:$0xff]  ;;  %v8974_v42 = vcombine.high %v314_v20, %v318_v21  ;;  %v8973_v32 = vcombine.low %v314_v20, %v318_v21 }
 0x319   :  { %7404 = vmatpush1.bf16.msra.mxu1 %v8925_v28  ;;  %v9484_v27 = vcombine.high %v825_v25, %v829_v59  ;;  %v322_v28 = vld [vmem:[#allocation5 + $0x318] sm:$0xff]  ;;  %v9483_v34 = vcombine.low %v825_v25, %v829_v59 }
 0x31a   :  { %7405 = vmatprep.subr.bf16.mxu1 %v8934_v30  ;;  %v833_v30 = vld [vmem:[#allocation5 + $0x1310] sm:$0xff] }
 0x31b   :  { %7240 = vmatpush1.bf16.msra.mxu0 %v9435_v29  ;;  %v326_v29 = vld [vmem:[#allocation5 + $0x338] sm:$0xff] }
 0x31c   :  { %7241 = vmatprep.subr.bf16.mxu0 %v9444_v31  ;;  %v837_v31 = vld [vmem:[#allocation5 + $0x1330] sm:$0xff]  ;;  %v8982_v35 = vcombine.high %v322_v28, %v326_v29  ;;  %v8981_v48 = vcombine.low %v322_v28, %v326_v29 }
 0x31d   :  { %7406 = vmatpush1.bf16.msra.mxu1 %v8933_v40  ;;  %v9492_v39 = vcombine.high %v833_v30, %v837_v31  ;;  %v330_v40 = vld [vmem:[#allocation5 + $0x358] sm:$0xff]  ;;  %v9491_v52 = vcombine.low %v833_v30, %v837_v31 }
 0x31e   :  { %7407 = vmatprep.subr.bf16.mxu1 %v8942_v56  ;;  %v841_v56 = vld [vmem:[#allocation5 + $0x1350] sm:$0xff] }
 0x31f   :  { %7242 = vmatpush1.bf16.msra.mxu0 %v9443_v43  ;;  %v334_v43 = vld [vmem:[#allocation5 + $0x378] sm:$0xff] }
 0x320   :  { %7243 = vmatprep.subr.bf16.mxu0 %v9452_v45  ;;  %v845_v45 = vld [vmem:[#allocation5 + $0x1370] sm:$0xff]  ;;  %v8990_v49 = vcombine.high %v330_v40, %v334_v43  ;;  %v8989_v58 = vcombine.low %v330_v40, %v334_v43 }
 0x321   :  { %7408 = vmatpush1.bf16.msra.mxu1 %v8941_v51  ;;  %v9500_v53 = vcombine.high %v841_v56, %v845_v45  ;;  %v338_v51 = vld [vmem:[#allocation5 + $0x398] sm:$0xff]  ;;  %v9499_v60 = vcombine.low %v841_v56, %v845_v45 }
 0x322   :  { %7409 = vmatprep.subr.bf16.mxu1 %v8950_v55  ;;  %v849_v55 = vld [vmem:[#allocation5 + $0x1390] sm:$0xff] }
 0x323   :  { %7244 = vmatpush1.bf16.msra.mxu0 %v9451_v54  ;;  %v342_v54 = vld [vmem:[#allocation5 + $0x3b8] sm:$0xff] }
 0x324   :  { %7245 = vmatprep.subr.bf16.mxu0 %v9460_v57  ;;  %v853_v57 = vld [vmem:[#allocation5 + $0x13b0] sm:$0xff]  ;;  %v8998_v1 = vcombine.high %v338_v51, %v342_v54  ;;  %v8997_v13 = vcombine.low %v338_v51, %v342_v54 }
 0x325   :  { %7410 = vmatpush1.bf16.msra.mxu1 %v8949_v7  ;;  %v9508_v6 = vcombine.high %v849_v55, %v853_v57  ;;  %v346_v7 = vld [vmem:[#allocation5 + $0x3d8] sm:$0xff]  ;;  %v9507_v61 = vcombine.low %v849_v55, %v853_v57 }
 0x326   :  { %7411 = vmatprep.subr.bf16.mxu1 %v8958_v8  ;;  %v857_v8 = vld [vmem:[#allocation5 + $0x13d0] sm:$0xff]  ;;  %v386_v57 = vld [vmem:[#allocation5 + $0x518] sm:$0xff] }
 0x327   :  { %7246 = vmatpush1.bf16.msra.mxu0 %v9459_v3  ;;  %v350_v3 = vld [vmem:[#allocation5 + $0x3f8] sm:$0xff] }
 0x328   :  { %7247 = vmatprep.subr.bf16.mxu0 %v9468_v11  ;;  %v861_v11 = vld [vmem:[#allocation5 + $0x13f0] sm:$0xff]  ;;  %v9006_v24 = vcombine.high %v346_v7, %v350_v3  ;;  %v9005_v20 = vcombine.low %v346_v7, %v350_v3 }
 0x329   :  { %7412 = vmatpush1.bf16.msra.mxu1 %v8957_v26  ;;  %v9516_v12 = vcombine.high %v857_v8, %v861_v11  ;;  %v354_v26 = vld [vmem:[#allocation5 + $0x418] sm:$0xff]  ;;  %v9515_v21 = vcombine.low %v857_v8, %v861_v11 }
 0x32a   :  { %7413 = vmatprep.subr.bf16.mxu1 %v8966_v18  ;;  %v865_v18 = vld [vmem:[#allocation5 + $0x1410] sm:$0xff]  ;;  %v394_v8 = vld [vmem:[#allocation5 + $0x558] sm:$0xff] }
 0x32b   :  { %7248 = vmatpush1.bf16.msra.mxu0 %v9467_v17  ;;  %v358_v17 = vld [vmem:[#allocation5 + $0x438] sm:$0xff] }
 0x32c   :  { %7249 = vmatprep.subr.bf16.mxu0 %v9476_v19  ;;  %v869_v19 = vld [vmem:[#allocation5 + $0x1430] sm:$0xff]  ;;  %v9014_v25 = vcombine.high %v354_v26, %v358_v17  ;;  %v9013_v28 = vcombine.low %v354_v26, %v358_v17  ;;  %v398_v11 = vld [vmem:[#allocation5 + $0x578] sm:$0xff] }
 0x32d   :  { %7414 = vmatpush1.bf16.msra.mxu1 %v8965_v0  ;;  %v9524_v59 = vcombine.high %v865_v18, %v869_v19  ;;  %v362_v0 = vld [vmem:[#allocation5 + $0x458] sm:$0xff]  ;;  %v9523_v29 = vcombine.low %v865_v18, %v869_v19  ;;  %v9054_v26 = vcombine.high %v394_v8, %v398_v11 }
 0x32e   :  { %7415 = vmatprep.subr.bf16.mxu1 %v8974_v42  ;;  %v873_v42 = vld [vmem:[#allocation5 + $0x1450] sm:$0xff]  ;;  %v402_v18 = vld [vmem:[#allocation5 + $0x598] sm:$0xff] }
 0x32f   :  { %7250 = vmatpush1.bf16.msra.mxu0 %v9475_v23  ;;  %v366_v23 = vld [vmem:[#allocation5 + $0x478] sm:$0xff] }
 0x330   :  { %7251 = vmatprep.subr.bf16.mxu0 %v9484_v27  ;;  %v877_v27 = vld [vmem:[#allocation5 + $0x1470] sm:$0xff]  ;;  %v9022_v30 = vcombine.high %v362_v0, %v366_v23  ;;  %v9021_v40 = vcombine.low %v362_v0, %v366_v23  ;;  %v406_v19 = vld [vmem:[#allocation5 + $0x5b8] sm:$0xff] }
 0x331   :  { %7416 = vmatpush1.bf16.msra.mxu1 %v8973_v32  ;;  %v9532_v31 = vcombine.high %v873_v42, %v877_v27  ;;  %v370_v32 = vld [vmem:[#allocation5 + $0x498] sm:$0xff]  ;;  %v9531_v43 = vcombine.low %v873_v42, %v877_v27  ;;  %v9062_v0 = vcombine.high %v402_v18, %v406_v19 }
 0x332   :  { %7417 = vmatprep.subr.bf16.mxu1 %v8982_v35  ;;  %v881_v35 = vld [vmem:[#allocation5 + $0x1490] sm:$0xff]  ;;  %v410_v42 = vld [vmem:[#allocation5 + $0x5d8] sm:$0xff] }
 0x333   :  { %7252 = vmatpush1.bf16.msra.mxu0 %v9483_v34  ;;  %v374_v34 = vld [vmem:[#allocation5 + $0x4b8] sm:$0xff] }
 0x334   :  { %7253 = vmatprep.subr.bf16.mxu0 %v9492_v39  ;;  %v885_v39 = vld [vmem:[#allocation5 + $0x14b0] sm:$0xff]  ;;  %v9030_v56 = vcombine.high %v370_v32, %v374_v34  ;;  %v414_v27 = vld [vmem:[#allocation5 + $0x5f8] sm:$0xff] }
 0x335   :  { %7418 = vmatpush1.bf16.msra.mxu1 %v8981_v48  ;;  %v9540_v45 = vcombine.high %v881_v35, %v885_v39  ;;  %v378_v48 = vld [vmem:[#allocation5 + $0x4d8] sm:$0xff]  ;;  %v9539_v51 = vcombine.low %v881_v35, %v885_v39 }
 0x336   :  { %7419 = vmatprep.subr.bf16.mxu1 %v8990_v49  ;;  %v889_v49 = vld [vmem:[#allocation5 + $0x14d0] sm:$0xff]  ;;  %v418_v35 = vld [vmem:[#allocation5 + $0x618] sm:$0xff] }
 0x337   :  { %7254 = vmatpush1.bf16.msra.mxu0 %v9491_v52  ;;  %v382_v52 = vld [vmem:[#allocation5 + $0x4f8] sm:$0xff] }
 0x338   :  { %7255 = vmatprep.subr.bf16.mxu0 %v9500_v53  ;;  %v893_v53 = vld [vmem:[#allocation5 + $0x14f0] sm:$0xff]  ;;  %v9038_v54 = vcombine.high %v378_v48, %v382_v52  ;;  %v422_v39 = vld [vmem:[#allocation5 + $0x638] sm:$0xff] }
 0x339   :  { %7420 = vmatpush1.bf16.msra.mxu1 %v8989_v58  ;;  %v9548_v55 = vcombine.high %v889_v49, %v893_v53  ;;  %v390_v58 = vld [vmem:[#allocation5 + $0x538] sm:$0xff]  ;;  %v9547_v7 = vcombine.low %v889_v49, %v893_v53 }
 0x33a   :  { %7421 = vmatprep.subr.bf16.mxu1 %v8998_v1  ;;  %v901_v1 = vld [vmem:[#allocation5 + $0x1530] sm:$0xff]  ;;  %v9046_v3 = vcombine.high %v386_v57, %v390_v58  ;;  %v426_v49 = vld [vmem:[#allocation5 + $0x658] sm:$0xff] }
 0x33b   :  { %7256 = vmatpush1.bf16.msra.mxu0 %v9499_v60  ;;  %v897_v60 = vld [vmem:[#allocation5 + $0x1510] sm:$0xff]  ;;  %v430_v53 = vld [vmem:[#allocation5 + $0x678] sm:$0xff] }
 0x33c   :  { %7257 = vmatprep.subr.bf16.mxu0 %v9508_v6  ;;  %v9037_v6 = vcombine.low %v378_v48, %v382_v52  ;;  %v9078_v48 = vcombine.high %v418_v35, %v422_v39 }
 0x33d   :  { %7422 = vmatpush1.bf16.msra.mxu1 %v8997_v13  ;;  %v905_v13 = vld [vmem:[#allocation5 + $0x1550] sm:$0xff] }
 0x33e   :  { %7423 = vmatprep.subr.bf16.mxu1 %v9006_v24  ;;  %v9045_v24 = vcombine.low %v386_v57, %v390_v58  ;;  %v9086_v57 = vcombine.high %v426_v49, %v430_v53 }
 0x33f   :  { %7258 = vmatpush1.bf16.msra.mxu0 %v9507_v61  ;;  %v909_v61 = vld [vmem:[#allocation5 + $0x1570] sm:$0xff] }
 0x340   :  { %7259 = vmatprep.subr.bf16.mxu0 %v9516_v12  ;;  %v9555_v12 = vcombine.low %v897_v60, %v901_v1  ;;  %v9564_v17 = vcombine.high %v905_v13, %v909_v61 }
 0x341   :  { %7424 = vmatpush1.bf16.msra.mxu1 %v9005_v20  ;;  %v913_v20 = vld [vmem:[#allocation5 + $0x1590] sm:$0xff] }
 0x342   :  { %7434 = vmatprep.subr.bf16.mxu1 %v9014_v25  ;;  %v9053_v25 = vcombine.low %v394_v8, %v398_v11 }
 0x343   :  { %7260 = vmatpush1.bf16.msra.mxu0 %v9515_v21  ;;  %v917_v21 = vld [vmem:[#allocation5 + $0x15b0] sm:$0xff] }
 0x344   :  { %7270 = vmatprep.subr.bf16.mxu0 %v9524_v59  ;;  %7426 = vmatmul.mubr.bf16.vlgmr.msra.gmra.mrb[8].mxu1 %v10797_v33  ;;  %v9029_v33 = vcombine.low %v370_v32, %v374_v34  ;;  %v9563_v59 = vcombine.low %v905_v13, %v909_v61  ;;  %v9572_v23 = vcombine.high %v913_v20, %v917_v21  ;;  %v442_v13 = vld [vmem:[#allocation5 + $0x6d8] sm:$0xff] }
 0x345   :  { %7435 = vmatpush1.bf16.msra.mxu1 %v9013_v28  ;;  %7466 = vmatprep.mubr.bf16.mxu1 %v10805_v46  ;;  %v9556_v46 = vcombine.high %v897_v60, %v901_v1  ;;  %v921_v28 = vld [vmem:[#allocation5 + $0x15d0] sm:$0xff]  ;;  %v9070_v32 = vcombine.high %v410_v42, %v414_v27  ;;  %v434_v60 = vld [vmem:[#allocation5 + $0x698] sm:$0xff] }
 0x346   :  { %7262 = vmatmul.mubr.bf16.vlgmr.msra.gmra.mrb[4].mxu0 %v10844_v36  ;;  %7436 = vmatprep.subr.bf16.mxu1 %v9022_v30  ;;  %v9061_v30 = vcombine.low %v402_v18, %v406_v19  ;;  %v438_v1 = vld [vmem:[#allocation5 + $0x6b8] sm:$0xff] }
 0x347   :  { %7271 = vmatpush1.bf16.msra.mxu0 %v9523_v29  ;;  %7302 = vmatprep.mubr.bf16.mxu0 %v10846_v63  ;;  %v925_v29 = vld [vmem:[#allocation5 + $0x15f0] sm:$0xff]  ;;  %v9094_v8 = vcombine.high %v434_v60, %v438_v1  ;;  %v446_v61 = vld [vmem:[#allocation5 + $0x6f8] sm:$0xff] }
 0x348   :  { %7272 = vmatprep.subr.bf16.mxu0 %v9532_v31  ;;  %v9571_v31 = vcombine.low %v913_v20, %v917_v21  ;;  %v9580_v34 = vcombine.high %v921_v28, %v925_v29  ;;  %v9102_v18 = vcombine.high %v442_v13, %v446_v61  ;;  %v450_v20 = vld [vmem:[#allocation5 + $0x718] sm:$0xff] }
 0x349   :  { %7437 = vmatpush1.bf16.msra.mxu1 %v9021_v40  ;;  %v929_v40 = vld [vmem:[#allocation5 + $0x1610] sm:$0xff]  ;;  %v454_v21 = vld [vmem:[#allocation5 + $0x738] sm:$0xff] }
 0x34a   :  { %7438 = vmatprep.subr.bf16.mxu1 %v9030_v56  ;;  %v9069_v56 = vcombine.low %v410_v42, %v414_v27  ;;  %v9110_v42 = vcombine.high %v450_v20, %v454_v21 }
 0x34b   :  { %7273 = vmatpush1.bf16.msra.mxu0 %v9531_v43  ;;  %v933_v43 = vld [vmem:[#allocation5 + $0x1630] sm:$0xff] }
 0x34c   :  { %7274 = vmatprep.subr.bf16.mxu0 %v9540_v45  ;;  %v9579_v45 = vcombine.low %v921_v28, %v925_v29  ;;  %v9588_v52 = vcombine.high %v929_v40, %v933_v43  ;;  %v458_v28 = vld [vmem:[#allocation5 + $0x758] sm:$0xff] }
 0x34d   :  { %7439 = vmatpush1.bf16.msra.mxu1 %v9029_v33  ;;  %v937_v33 = vld [vmem:[#allocation5 + $0x1650] sm:$0xff]  ;;  %v462_v29 = vld [vmem:[#allocation5 + $0x778] sm:$0xff] }
 0x34e   :  { %7440 = vmatprep.subr.bf16.mxu1 %v9038_v54  ;;  %v9077_v54 = vcombine.low %v418_v35, %v422_v39  ;;  %v9118_v35 = vcombine.high %v458_v28, %v462_v29 }
 0x34f   :  { %7275 = vmatpush1.bf16.msra.mxu0 %v9539_v51  ;;  %v941_v51 = vld [vmem:[#allocation5 + $0x1670] sm:$0xff] }
 0x350   :  { %7276 = vmatprep.subr.bf16.mxu0 %v9548_v55  ;;  %v9587_v55 = vcombine.low %v929_v40, %v933_v43  ;;  %v9596_v58 = vcombine.high %v937_v33, %v941_v51  ;;  %v466_v40 = vld [vmem:[#allocation5 + $0x798] sm:$0xff] }
 0x351   :  { %7441 = vmatpush1.bf16.msra.mxu1 %v9037_v6  ;;  %v945_v6 = vld [vmem:[#allocation5 + $0x1690] sm:$0xff]  ;;  %v470_v43 = vld [vmem:[#allocation5 + $0x7b8] sm:$0xff] }
 0x352   :  { %7442 = vmatprep.subr.bf16.mxu1 %v9046_v3  ;;  %v9085_v3 = vcombine.low %v426_v49, %v430_v53  ;;  %v9126_v49 = vcombine.high %v466_v40, %v470_v43 }
 0x353   :  { %7277 = vmatpush1.bf16.msra.mxu0 %v9547_v7  ;;  %v949_v7 = vld [vmem:[#allocation5 + $0x16b0] sm:$0xff] }
 0x354   :  { %7278 = vmatprep.subr.bf16.mxu0 %v9556_v46  ;;  %v9595_v46 = vcombine.low %v937_v33, %v941_v51  ;;  %v9604_v11 = vcombine.high %v945_v6, %v949_v7  ;;  %v474_v33 = vld [vmem:[#allocation5 + $0x7d8] sm:$0xff] }
 0x355   :  { %7443 = vmatpush1.bf16.msra.mxu1 %v9045_v24  ;;  %v953_v24 = vld [vmem:[#allocation5 + $0x16d0] sm:$0xff]  ;;  %v478_v51 = vld [vmem:[#allocation5 + $0x7f8] sm:$0xff] }
 0x356   :  { %7444 = vmatprep.subr.bf16.mxu1 %v9054_v26  ;;  %v9093_v26 = vcombine.low %v434_v60, %v438_v1  ;;  %v9134_v60 = vcombine.high %v474_v33, %v478_v51 }
 0x357   :  { %7279 = vmatpush1.bf16.msra.mxu0 %v9555_v12  ;;  %v957_v12 = vld [vmem:[#allocation5 + $0x16f0] sm:$0xff] }
 0x358   :  { %7280 = vmatprep.subr.bf16.mxu0 %v9564_v17  ;;  %v9603_v17 = vcombine.low %v945_v6, %v949_v7  ;;  %v9612_v19 = vcombine.high %v953_v24, %v957_v12  ;;  %v482_v6 = vld [vmem:[#allocation5 + $0x818] sm:$0xff] }
 0x359   :  { %7445 = vmatpush1.bf16.msra.mxu1 %v9053_v25  ;;  %v961_v25 = vld [vmem:[#allocation5 + $0x1710] sm:$0xff]  ;;  %v486_v7 = vld [vmem:[#allocation5 + $0x838] sm:$0xff] }
 0x35a   :  { %7446 = vmatprep.subr.bf16.mxu1 %v9062_v0  ;;  %v9101_v0 = vcombine.low %v442_v13, %v446_v61  ;;  %v9142_v13 = vcombine.high %v482_v6, %v486_v7 }
 0x35b   :  { %7281 = vmatpush1.bf16.msra.mxu0 %v9563_v59  ;;  %v965_v59 = vld [vmem:[#allocation5 + $0x1730] sm:$0xff] }
 0x35c   :  { %7282 = vmatprep.subr.bf16.mxu0 %v9572_v23  ;;  %v9611_v23 = vcombine.low %v953_v24, %v957_v12  ;;  %v9620_v27 = vcombine.high %v961_v25, %v965_v59  ;;  %v490_v24 = vld [vmem:[#allocation5 + $0x858] sm:$0xff] }
 0x35d   :  { %7447 = vmatpush1.bf16.msra.mxu1 %v9061_v30  ;;  %v969_v30 = vld [vmem:[#allocation5 + $0x1750] sm:$0xff]  ;;  %v494_v12 = vld [vmem:[#allocation5 + $0x878] sm:$0xff] }
 0x35e   :  { %7448 = vmatprep.subr.bf16.mxu1 %v9070_v32  ;;  %v9109_v32 = vcombine.low %v450_v20, %v454_v21  ;;  %v9150_v20 = vcombine.high %v490_v24, %v494_v12 }
 0x35f   :  { %7283 = vmatpush1.bf16.msra.mxu0 %v9571_v31  ;;  %v973_v31 = vld [vmem:[#allocation5 + $0x1770] sm:$0xff] }
 0x360   :  { %7284 = vmatprep.subr.bf16.mxu0 %v9580_v34  ;;  %v9619_v34 = vcombine.low %v961_v25, %v965_v59  ;;  %v9628_v39 = vcombine.high %v969_v30, %v973_v31  ;;  %v498_v25 = vld [vmem:[#allocation5 + $0x898] sm:$0xff] }
 0x361   :  { %7449 = vmatpush1.bf16.msra.mxu1 %v9069_v56  ;;  %v977_v56 = vld [vmem:[#allocation5 + $0x1790] sm:$0xff]  ;;  %v502_v59 = vld [vmem:[#allocation5 + $0x8b8] sm:$0xff] }
 0x362   :  { %7450 = vmatprep.subr.bf16.mxu1 %v9078_v48  ;;  %v9117_v48 = vcombine.low %v458_v28, %v462_v29  ;;  %v9158_v28 = vcombine.high %v498_v25, %v502_v59 }
 0x363   :  { %7285 = vmatpush1.bf16.msra.mxu0 %v9579_v45  ;;  %v981_v45 = vld [vmem:[#allocation5 + $0x17b0] sm:$0xff] }
 0x364   :  { %7286 = vmatprep.subr.bf16.mxu0 %v9588_v52  ;;  %v9627_v52 = vcombine.low %v969_v30, %v973_v31  ;;  %v9636_v53 = vcombine.high %v977_v56, %v981_v45  ;;  %v506_v30 = vld [vmem:[#allocation5 + $0x8d8] sm:$0xff] }
 0x365   :  { %7451 = vmatpush1.bf16.msra.mxu1 %v9077_v54  ;;  %v985_v54 = vld [vmem:[#allocation5 + $0x17d0] sm:$0xff]  ;;  %v510_v31 = vld [vmem:[#allocation5 + $0x8f8] sm:$0xff] }
 0x366   :  { %7452 = vmatprep.subr.bf16.mxu1 %v9086_v57  ;;  %v9125_v57 = vcombine.low %v466_v40, %v470_v43  ;;  %v514_v43 = vld [vmem:[#allocation5 + $0x918] sm:$0xff] }
 0x367   :  { %7287 = vmatpush1.bf16.msra.mxu0 %v9587_v55  ;;  %v989_v55 = vld [vmem:[#allocation5 + $0x17f0] sm:$0xff] }
 0x368   :  { %7288 = vmatprep.subr.bf16.mxu0 %v9596_v58  ;;  %v9635_v58 = vcombine.low %v977_v56, %v981_v45  ;;  %v9644_v1 = vcombine.high %v985_v54, %v989_v55  ;;  %v518_v56 = vld [vmem:[#allocation5 + $0x938] sm:$0xff]  ;;  %v1025_v45 = vld [vmem:[#allocation5 + $0x1910] sm:$0xff] }
 0x369   :  { %7453 = vmatpush1.bf16.msra.mxu1 %v9085_v3  ;;  %v993_v3 = vld [vmem:[#allocation5 + $0x1810] sm:$0xff] }
 0x36a   :  { %7454 = vmatprep.subr.bf16.mxu1 %v9094_v8  ;;  %v9133_v8 = vcombine.low %v474_v33, %v478_v51  ;;  %v522_v33 = vld [vmem:[#allocation5 + $0x958] sm:$0xff] }
 0x36b   :  { %7289 = vmatpush1.bf16.msra.mxu0 %v9595_v46  ;;  %v997_v46 = vld [vmem:[#allocation5 + $0x1830] sm:$0xff]  ;;  %v526_v51 = vld [vmem:[#allocation5 + $0x978] sm:$0xff] }
 0x36c   :  { %7290 = vmatprep.subr.bf16.mxu0 %v9604_v11  ;;  %v9643_v11 = vcombine.low %v985_v54, %v989_v55  ;;  %v9652_v61 = vcombine.high %v993_v3, %v997_v46  ;;  %v1033_v54 = vld [vmem:[#allocation5 + $0x1950] sm:$0xff] }
 0x36d   :  { %7455 = vmatpush1.bf16.msra.mxu1 %v9093_v26  ;;  %v1001_v26 = vld [vmem:[#allocation5 + $0x1850] sm:$0xff] }
 0x36e   :  { %7456 = vmatprep.subr.bf16.mxu1 %v9102_v18  ;;  %v9141_v18 = vcombine.low %v482_v6, %v486_v7  ;;  %v1037_v55 = vld [vmem:[#allocation5 + $0x1970] sm:$0xff]  ;;  %v530_v6 = vld [vmem:[#allocation5 + $0x998] sm:$0xff] }
 0x36f   :  { %7291 = vmatpush1.bf16.msra.mxu0 %v9603_v17  ;;  %v1005_v17 = vld [vmem:[#allocation5 + $0x1870] sm:$0xff]  ;;  %v534_v7 = vld [vmem:[#allocation5 + $0x9b8] sm:$0xff] }
 0x370   :  { %7292 = vmatprep.subr.bf16.mxu0 %v9612_v19  ;;  %v9651_v19 = vcombine.low %v993_v3, %v997_v46  ;;  %v9660_v21 = vcombine.high %v1001_v26, %v1005_v17  ;;  %v1041_v3 = vld [vmem:[#allocation5 + $0x1990] sm:$0xff] }
 0x371   :  { %7457 = vmatpush1.bf16.msra.mxu1 %v9101_v0  ;;  %v1009_v0 = vld [vmem:[#allocation5 + $0x1890] sm:$0xff] }
 0x372   :  { %7458 = vmatprep.subr.bf16.mxu1 %v9110_v42  ;;  %v9149_v42 = vcombine.low %v490_v24, %v494_v12  ;;  %v1045_v46 = vld [vmem:[#allocation5 + $0x19b0] sm:$0xff]  ;;  %v538_v24 = vld [vmem:[#allocation5 + $0x9d8] sm:$0xff] }
 0x373   :  { %7293 = vmatpush1.bf16.msra.mxu0 %v9611_v23  ;;  %v1013_v23 = vld [vmem:[#allocation5 + $0x18b0] sm:$0xff]  ;;  %v542_v12 = vld [vmem:[#allocation5 + $0x9f8] sm:$0xff] }
 0x374   :  { %7294 = vmatprep.subr.bf16.mxu0 %v9620_v27  ;;  %v9659_v27 = vcombine.low %v1001_v26, %v1005_v17  ;;  %v9668_v29 = vcombine.high %v1009_v0, %v1013_v23  ;;  %v1049_v26 = vld [vmem:[#allocation5 + $0x19d0] sm:$0xff] }
 0x375   :  { %7459 = vmatpush1.bf16.msra.mxu1 %v9109_v32  ;;  %v1017_v32 = vld [vmem:[#allocation5 + $0x18d0] sm:$0xff] }
 0x376   :  { %7460 = vmatprep.subr.bf16.mxu1 %v9118_v35  ;;  %v9667_v35 = vcombine.low %v1009_v0, %v1013_v23  ;;  %v1053_v17 = vld [vmem:[#allocation5 + $0x19f0] sm:$0xff] }
 0x377   :  { %7295 = vmatpush1.bf16.msra.mxu0 %v9619_v34  ;;  %v1021_v34 = vld [vmem:[#allocation5 + $0x18f0] sm:$0xff] }
 0x378   :  { %7296 = vmatprep.subr.bf16.mxu0 %v9628_v39  ;;  %v9166_v39 = vcombine.high %v506_v30, %v510_v31  ;;  %v9676_v40 = vcombine.high %v1017_v32, %v1021_v34  ;;  %v1057_v0 = vld [vmem:[#allocation5 + $0x1a10] sm:$0xff] }
 0x379   :  { %7461 = vmatpush1.bf16.msra.mxu1 %v9117_v48  ;;  %v1029_v48 = vld [vmem:[#allocation5 + $0x1930] sm:$0xff] }
 0x37a   :  { %7462 = vmatprep.subr.bf16.mxu1 %v9126_v49  ;;  %v9675_v49 = vcombine.low %v1017_v32, %v1021_v34  ;;  %v1061_v23 = vld [vmem:[#allocation5 + $0x1a30] sm:$0xff] }
 0x37b   :  { %7297 = vmatpush1.bf16.msra.mxu0 %v9627_v52  ;;  %v9165_v52 = vcombine.low %v506_v30, %v510_v31  ;;  %v554_v30 = vld [vmem:[#allocation5 + $0xa58] sm:$0xff]  ;;  %v1065_v32 = vld [vmem:[#allocation5 + $0x1a50] sm:$0xff] }
 0x37c   :  { %7298 = vmatprep.subr.bf16.mxu0 %v9636_v53  ;;  %v9174_v53 = vcombine.high %v514_v43, %v518_v56  ;;  %v558_v31 = vld [vmem:[#allocation5 + $0xa78] sm:$0xff]  ;;  %v1069_v34 = vld [vmem:[#allocation5 + $0x1a70] sm:$0xff] }
 0x37d   :  { %7463 = vmatpush1.bf16.msra.mxu1 %v9125_v57  ;;  %v9173_v57 = vcombine.low %v514_v43, %v518_v56  ;;  %v562_v43 = vld [vmem:[#allocation5 + $0xa98] sm:$0xff] }
 0x37e   :  { %7464 = vmatprep.subr.bf16.mxu1 %v9134_v60  ;;  %v9182_v60 = vcombine.high %v522_v33, %v526_v51  ;;  %v566_v56 = vld [vmem:[#allocation5 + $0xab8] sm:$0xff] }
 0x37f   :  { %7299 = vmatpush1.bf16.msra.mxu0 %v9635_v58  ;;  %v9683_v58 = vcombine.low %v1025_v45, %v1029_v48 }
 0x380   :  { %7300 = vmatprep.subr.bf16.mxu0 %v9644_v1  ;;  %v9692_v1 = vcombine.high %v1033_v54, %v1037_v55 }
 0x381   :  { %7465 = vmatpush1.bf16.msra.mxu1 %v9133_v8  ;;  %v9181_v8 = vcombine.low %v522_v33, %v526_v51  ;;  %v570_v33 = vld [vmem:[#allocation5 + $0xad8] sm:$0xff] }
 0x382   :  { %7475 = vmatprep.subr.bf16.mxu1 %v9142_v13  ;;  %v9190_v13 = vcombine.high %v530_v6, %v534_v7  ;;  %v574_v51 = vld [vmem:[#allocation5 + $0xaf8] sm:$0xff] }
 0x383   :  { %7301 = vmatpush1.bf16.msra.mxu0 %v9643_v11  ;;  %v9691_v11 = vcombine.low %v1033_v54, %v1037_v55  ;;  %v1081_v54 = vld [vmem:[#allocation5 + $0x1ad0] sm:$0xff] }
 0x384   :  { %7311 = vmatprep.subr.bf16.mxu0 %v9652_v61  ;;  %7467 = vmatmul.mubr.bf16.vlgmr.msra.gmra.mrb[8].mxu1 %v10823_v2  ;;  %v9157_v2 = vcombine.low %v498_v25, %v502_v59  ;;  %v9700_v61 = vcombine.high %v1041_v3, %v1045_v46  ;;  %v546_v25 = vld [vmem:[#allocation5 + $0xa18] sm:$0xff]  ;;  %v1085_v55 = vld [vmem:[#allocation5 + $0x1af0] sm:$0xff] }
 0x385   :  { %7476 = vmatpush1.bf16.msra.mxu1 %v9141_v18  ;;  %7507 = vmatprep.mubr.bf16.mxu1 %v10779_v15  ;;  %v9684_v15 = vcombine.high %v1025_v45, %v1029_v48  ;;  %v9189_v18 = vcombine.low %v530_v6, %v534_v7  ;;  %v550_v59 = vld [vmem:[#allocation5 + $0xa38] sm:$0xff]  ;;  %v1073_v45 = vld [vmem:[#allocation5 + $0x1a90] sm:$0xff] }
 0x386   :  { %7303 = vmatmul.mubr.bf16.vlgmr.msra.gmra.mrb[4].mxu0 %v10862_v16  ;;  %7477 = vmatprep.subr.bf16.mxu1 %v9150_v20  ;;  %v9198_v20 = vcombine.high %v538_v24, %v542_v12  ;;  %v1077_v48 = vld [vmem:[#allocation5 + $0x1ab0] sm:$0xff]  ;;  %v578_v6 = vld [vmem:[#allocation5 + $0xb18] sm:$0xff] }
 0x387   :  { %7312 = vmatpush1.bf16.msra.mxu0 %v9651_v19  ;;  %7343 = vmatprep.mubr.bf16.mxu0 %v10864_v22  ;;  %v9699_v19 = vcombine.low %v1041_v3, %v1045_v46  ;;  %v582_v7 = vld [vmem:[#allocation5 + $0xb38] sm:$0xff]  ;;  %v1089_v3 = vld [vmem:[#allocation5 + $0x1b10] sm:$0xff] }
 0x388   :  { %7313 = vmatprep.subr.bf16.mxu0 %v9660_v21  ;;  %v9708_v21 = vcombine.high %v1049_v26, %v1053_v17  ;;  %v1093_v46 = vld [vmem:[#allocation5 + $0x1b30] sm:$0xff] }
 0x389   :  { %7478 = vmatpush1.bf16.msra.mxu1 %v9149_v42  ;;  %v9197_v42 = vcombine.low %v538_v24, %v542_v12  ;;  %v586_v24 = vld [vmem:[#allocation5 + $0xb58] sm:$0xff] }
 0x38a   :  { %7479 = vmatprep.subr.bf16.mxu1 %v9158_v28  ;;  %v9206_v28 = vcombine.high %v546_v25, %v550_v59  ;;  %v590_v12 = vld [vmem:[#allocation5 + $0xb78] sm:$0xff] }
 0x38b   :  { %7314 = vmatpush1.bf16.msra.mxu0 %v9659_v27  ;;  %v9707_v27 = vcombine.low %v1049_v26, %v1053_v17  ;;  %v1097_v26 = vld [vmem:[#allocation5 + $0x1b50] sm:$0xff] }
 0x38c   :  { %7315 = vmatprep.subr.bf16.mxu0 %v9668_v29  ;;  %v9716_v29 = vcombine.high %v1057_v0, %v1061_v23  ;;  %v1101_v17 = vld [vmem:[#allocation5 + $0x1b70] sm:$0xff] }
 0x38d   :  { %7480 = vmatpush1.bf16.msra.mxu1 %v9157_v2  ;;  %v9205_v2 = vcombine.low %v546_v25, %v550_v59  ;;  %v594_v25 = vld [vmem:[#allocation5 + $0xb98] sm:$0xff] }
 0x38e   :  { %7481 = vmatprep.subr.bf16.mxu1 %v9166_v39  ;;  %v9214_v39 = vcombine.high %v554_v30, %v558_v31  ;;  %v598_v59 = vld [vmem:[#allocation5 + $0xbb8] sm:$0xff] }
 0x38f   :  { %7316 = vmatpush1.bf16.msra.mxu0 %v9667_v35  ;;  %v9715_v35 = vcombine.low %v1057_v0, %v1061_v23  ;;  %v1105_v0 = vld [vmem:[#allocation5 + $0x1b90] sm:$0xff] }
 0x390   :  { %7317 = vmatprep.subr.bf16.mxu0 %v9676_v40  ;;  %v9724_v40 = vcombine.high %v1065_v32, %v1069_v34  ;;  %v1109_v23 = vld [vmem:[#allocation5 + $0x1bb0] sm:$0xff] }
 0x391   :  { %7482 = vmatpush1.bf16.msra.mxu1 %v9165_v52  ;;  %v9213_v52 = vcombine.low %v554_v30, %v558_v31  ;;  %v602_v30 = vld [vmem:[#allocation5 + $0xbd8] sm:$0xff] }
 0x392   :  { %7483 = vmatprep.subr.bf16.mxu1 %v9174_v53  ;;  %v9222_v53 = vcombine.high %v562_v43, %v566_v56  ;;  %v606_v31 = vld [vmem:[#allocation5 + $0xbf8] sm:$0xff] }
 0x393   :  { %7318 = vmatpush1.bf16.msra.mxu0 %v9675_v49  ;;  %v9723_v49 = vcombine.low %v1065_v32, %v1069_v34  ;;  %v1113_v32 = vld [vmem:[#allocation5 + $0x1bd0] sm:$0xff] }
 0x394   :  { %7319 = vmatprep.subr.bf16.mxu0 %v9684_v15  ;;  %v9732_v15 = vcombine.high %v1073_v45, %v1077_v48  ;;  %v1117_v34 = vld [vmem:[#allocation5 + $0x1bf0] sm:$0xff] }
 0x395   :  { %7484 = vmatpush1.bf16.msra.mxu1 %v9173_v57  ;;  %v9221_v57 = vcombine.low %v562_v43, %v566_v56  ;;  %v610_v43 = vld [vmem:[#allocation5 + $0xc18] sm:$0xff] }
 0x396   :  { %7485 = vmatprep.subr.bf16.mxu1 %v9182_v60  ;;  %v9230_v60 = vcombine.high %v570_v33, %v574_v51  ;;  %v614_v56 = vld [vmem:[#allocation5 + $0xc38] sm:$0xff] }
 0x397   :  { %7320 = vmatpush1.bf16.msra.mxu0 %v9683_v58  ;;  %v9731_v58 = vcombine.low %v1073_v45, %v1077_v48  ;;  %v1121_v45 = vld [vmem:[#allocation5 + $0x1c10] sm:$0xff] }
 0x398   :  { %7321 = vmatprep.subr.bf16.mxu0 %v9692_v1  ;;  %v9740_v1 = vcombine.high %v1081_v54, %v1085_v55  ;;  %v1125_v48 = vld [vmem:[#allocation5 + $0x1c30] sm:$0xff] }
 0x399   :  { %7486 = vmatpush1.bf16.msra.mxu1 %v9181_v8  ;;  %v9229_v8 = vcombine.low %v570_v33, %v574_v51  ;;  %v618_v33 = vld [vmem:[#allocation5 + $0xc58] sm:$0xff] }
 0x39a   :  { %7487 = vmatprep.subr.bf16.mxu1 %v9190_v13  ;;  %v9238_v13 = vcombine.high %v578_v6, %v582_v7  ;;  %v622_v51 = vld [vmem:[#allocation5 + $0xc78] sm:$0xff] }
 0x39b   :  { %7322 = vmatpush1.bf16.msra.mxu0 %v9691_v11  ;;  %v9739_v11 = vcombine.low %v1081_v54, %v1085_v55  ;;  %v1129_v54 = vld [vmem:[#allocation5 + $0x1c50] sm:$0xff] }
 0x39c   :  { %7323 = vmatprep.subr.bf16.mxu0 %v9700_v61  ;;  %v9748_v61 = vcombine.high %v1089_v3, %v1093_v46  ;;  %v1133_v55 = vld [vmem:[#allocation5 + $0x1c70] sm:$0xff] }
 0x39d   :  { %7488 = vmatpush1.bf16.msra.mxu1 %v9189_v18  ;;  %v9237_v18 = vcombine.low %v578_v6, %v582_v7  ;;  %v626_v6 = vld [vmem:[#allocation5 + $0xc98] sm:$0xff] }
 0x39e   :  { %7489 = vmatprep.subr.bf16.mxu1 %v9198_v20  ;;  %v9246_v20 = vcombine.high %v586_v24, %v590_v12  ;;  %v630_v7 = vld [vmem:[#allocation5 + $0xcb8] sm:$0xff] }
 0x39f   :  { %7324 = vmatpush1.bf16.msra.mxu0 %v9699_v19  ;;  %v9747_v19 = vcombine.low %v1089_v3, %v1093_v46  ;;  %v1137_v3 = vld [vmem:[#allocation5 + $0x1c90] sm:$0xff] }
 0x3a0   :  { %7325 = vmatprep.subr.bf16.mxu0 %v9708_v21  ;;  %v9756_v21 = vcombine.high %v1097_v26, %v1101_v17  ;;  %v1141_v46 = vld [vmem:[#allocation5 + $0x1cb0] sm:$0xff] }
 0x3a1   :  { %7490 = vmatpush1.bf16.msra.mxu1 %v9197_v42  ;;  %v9245_v42 = vcombine.low %v586_v24, %v590_v12  ;;  %v634_v24 = vld [vmem:[#allocation5 + $0xcd8] sm:$0xff] }
 0x3a2   :  { %7491 = vmatprep.subr.bf16.mxu1 %v9206_v28  ;;  %v9254_v28 = vcombine.high %v594_v25, %v598_v59  ;;  %v638_v12 = vld [vmem:[#allocation5 + $0xcf8] sm:$0xff] }
 0x3a3   :  { %7326 = vmatpush1.bf16.msra.mxu0 %v9707_v27  ;;  %v9755_v27 = vcombine.low %v1097_v26, %v1101_v17  ;;  %v1145_v26 = vld [vmem:[#allocation5 + $0x1cd0] sm:$0xff] }
 0x3a4   :  { %7327 = vmatprep.subr.bf16.mxu0 %v9716_v29  ;;  %v9764_v29 = vcombine.high %v1105_v0, %v1109_v23  ;;  %v1149_v17 = vld [vmem:[#allocation5 + $0x1cf0] sm:$0xff] }
 0x3a5   :  { %7492 = vmatpush1.bf16.msra.mxu1 %v9205_v2  ;;  %v9253_v2 = vcombine.low %v594_v25, %v598_v59  ;;  %v646_v25 = vld [vmem:[#allocation5 + $0xd38] sm:$0xff]  ;;  %v1153_v59 = vld [vmem:[#allocation5 + $0x1d10] sm:$0xff] }
 0x3a6   :  { %7493 = vmatprep.subr.bf16.mxu1 %v9214_v39  ;;  %v9262_v39 = vcombine.high %v602_v30, %v606_v31 }
 0x3a7   :  { %7328 = vmatpush1.bf16.msra.mxu0 %v9715_v35  ;;  %v9763_v35 = vcombine.low %v1105_v0, %v1109_v23  ;;  %v1157_v0 = vld [vmem:[#allocation5 + $0x1d30] sm:$0xff]  ;;  %v9293_v23 = vcombine.low %v634_v24, %v638_v12 }
 0x3a8   :  { %7329 = vmatprep.subr.bf16.mxu0 %v9724_v40  ;;  %v9772_v40 = vcombine.high %v1113_v32, %v1117_v34 }
 0x3a9   :  { %7494 = vmatpush1.bf16.msra.mxu1 %v9213_v52  ;;  %v9261_v52 = vcombine.low %v602_v30, %v606_v31  ;;  %v1161_v30 = vld [vmem:[#allocation5 + $0x1d50] sm:$0xff] }
 0x3aa   :  { %7495 = vmatprep.subr.bf16.mxu1 %v9222_v53  ;;  %v9270_v53 = vcombine.high %v610_v43, %v614_v56  ;;  %v1165_v31 = vld [vmem:[#allocation5 + $0x1d70] sm:$0xff] }
 0x3ab   :  { %7330 = vmatpush1.bf16.msra.mxu0 %v9723_v49  ;;  %v9771_v49 = vcombine.low %v1113_v32, %v1117_v34  ;;  %v9811_v34 = vcombine.low %v1153_v59, %v1157_v0 }
 0x3ac   :  { %7331 = vmatprep.subr.bf16.mxu0 %v9732_v15  ;;  %v9780_v15 = vcombine.high %v1121_v45, %v1125_v48 }
 0x3ad   :  { %7496 = vmatpush1.bf16.msra.mxu1 %v9221_v57  ;;  %v9269_v57 = vcombine.low %v610_v43, %v614_v56  ;;  %v1169_v43 = vld [vmem:[#allocation5 + $0x1d90] sm:$0xff] }
 0x3ae   :  { %7497 = vmatprep.subr.bf16.mxu1 %v9230_v60  ;;  %v9278_v60 = vcombine.high %v618_v33, %v622_v51  ;;  %v1173_v56 = vld [vmem:[#allocation5 + $0x1db0] sm:$0xff] }
 0x3af   :  { %7332 = vmatpush1.bf16.msra.mxu0 %v9731_v58  ;;  %v9779_v58 = vcombine.low %v1121_v45, %v1125_v48  ;;  %v9819_v48 = vcombine.low %v1161_v30, %v1165_v31 }
 0x3b0   :  { %7333 = vmatprep.subr.bf16.mxu0 %v9740_v1  ;;  %v9788_v1 = vcombine.high %v1129_v54, %v1133_v55 }
 0x3b1   :  { %7498 = vmatpush1.bf16.msra.mxu1 %v9229_v8  ;;  %v9277_v8 = vcombine.low %v618_v33, %v622_v51  ;;  %v670_v33 = vld [vmem:[#allocation5 + $0xdf8] sm:$0xff] }
 0x3b2   :  { %7499 = vmatprep.subr.bf16.mxu1 %v9238_v13  ;;  %v9286_v13 = vcombine.high %v626_v6, %v630_v7 }
 0x3b3   :  { %7334 = vmatpush1.bf16.msra.mxu0 %v9739_v11  ;;  %v9787_v11 = vcombine.low %v1129_v54, %v1133_v55  ;;  %v1177_v54 = vld [vmem:[#allocation5 + $0x1dd0] sm:$0xff] }
 0x3b4   :  { %7335 = vmatprep.subr.bf16.mxu0 %v9748_v61  ;;  %v9796_v61 = vcombine.high %v1137_v3, %v1141_v46  ;;  %v1181_v55 = vld [vmem:[#allocation5 + $0x1df0] sm:$0xff] }
 0x3b5   :  { %7500 = vmatpush1.bf16.msra.mxu1 %v9237_v18  ;;  %v9795_v18 = vcombine.low %v1137_v3, %v1141_v46  ;;  %v674_v3 = vld [vmem:[#allocation5 + $0xe18] sm:$0xff] }
 0x3b6   :  { %7501 = vmatprep.subr.bf16.mxu1 %v9246_v20  ;;  %v9804_v20 = vcombine.high %v1145_v26, %v1149_v17  ;;  %v678_v46 = vld [vmem:[#allocation5 + $0xe38] sm:$0xff] }
 0x3b7   :  { %7336 = vmatpush1.bf16.msra.mxu0 %v9747_v19  ;;  %v9294_v19 = vcombine.high %v634_v24, %v638_v12  ;;  %v9334_v24 = vcombine.high %v674_v3, %v678_v46 }
 0x3b8   :  { %7337 = vmatprep.subr.bf16.mxu0 %v9756_v21  ;;  %v642_v21 = vld [vmem:[#allocation5 + $0xd18] sm:$0xff] }
 0x3b9   :  { %7502 = vmatpush1.bf16.msra.mxu1 %v9245_v42  ;;  %v9803_v42 = vcombine.low %v1145_v26, %v1149_v17  ;;  %v9301_v32 = vcombine.low %v642_v21, %v646_v25  ;;  %v682_v26 = vld [vmem:[#allocation5 + $0xe58] sm:$0xff] }
 0x3ba   :  { %7503 = vmatprep.subr.bf16.mxu1 %v9254_v28  ;;  %v650_v28 = vld [vmem:[#allocation5 + $0xd58] sm:$0xff] }
 0x3bb   :  { %7338 = vmatpush1.bf16.msra.mxu0 %v9755_v27  ;;  %v9302_v27 = vcombine.high %v642_v21, %v646_v25  ;;  %v686_v17 = vld [vmem:[#allocation5 + $0xe78] sm:$0xff] }
 0x3bc   :  { %7339 = vmatprep.subr.bf16.mxu0 %v9764_v29  ;;  %v654_v29 = vld [vmem:[#allocation5 + $0xd78] sm:$0xff]  ;;  %v9342_v21 = vcombine.high %v682_v26, %v686_v17 }
 0x3bd   :  { %7504 = vmatpush1.bf16.msra.mxu1 %v9253_v2  ;;  %v9310_v2 = vcombine.high %v650_v28, %v654_v29  ;;  %v9309_v45 = vcombine.low %v650_v28, %v654_v29 }
 0x3be   :  { %7505 = vmatprep.subr.bf16.mxu1 %v9262_v39  ;;  %v658_v39 = vld [vmem:[#allocation5 + $0xd98] sm:$0xff] }
 0x3bf   :  { %7340 = vmatpush1.bf16.msra.mxu0 %v9763_v35  ;;  %v9820_v35 = vcombine.high %v1161_v30, %v1165_v31  ;;  %v698_v30 = vld [vmem:[#allocation5 + $0xed8] sm:$0xff] }
 0x3c0   :  { %7341 = vmatprep.subr.bf16.mxu0 %v9772_v40  ;;  %v662_v40 = vld [vmem:[#allocation5 + $0xdb8] sm:$0xff] }
 0x3c1   :  { %7506 = vmatpush1.bf16.msra.mxu1 %v9261_v52  ;;  %v9318_v52 = vcombine.high %v658_v39, %v662_v40  ;;  %v702_v31 = vld [vmem:[#allocation5 + $0xef8] sm:$0xff] }
 0x3c2   :  { %7516 = vmatprep.subr.bf16.mxu1 %v9270_v53  ;;  %v9828_v53 = vcombine.high %v1169_v43, %v1173_v56 }
 0x3c3   :  { %7342 = vmatpush1.bf16.msra.mxu0 %v9771_v49 }
 0x3c4   :  { %7352 = vmatprep.subr.bf16.mxu0 %v9780_v15  ;;  %7508 = vmatmul.mubr.bf16.vlgmr.msra.gmra.mrb[8].mxu1 %v10803_v38  ;;  %v9285_v38 = vcombine.low %v626_v6, %v630_v7  ;;  %v666_v15 = vld [vmem:[#allocation5 + $0xdd8] sm:$0xff]  ;;  %v9836_v7 = vcombine.high %v1177_v54, %v1181_v55 }
 0x3c5   :  { %7517 = vmatpush1.bf16.msra.mxu1 %v9269_v57  ;;  %7548 = vmatprep.mubr.bf16.mxu1 %v10808_v47  ;;  %v9812_v47 = vcombine.high %v1153_v59, %v1157_v0  ;;  %v9326_v6 = vcombine.high %v666_v15, %v670_v33  ;;  %v690_v59 = vld [vmem:[#allocation5 + $0xe98] sm:$0xff] }
 0x3c6   :  { %7344 = vmatmul.mubr.bf16.vlgmr.msra.gmra.mrb[4].mxu0 %v10879_v62  ;;  %7518 = vmatprep.subr.bf16.mxu1 %v9278_v60  ;;  %v694_v0 = vld [vmem:[#allocation5 + $0xeb8] sm:$0xff] }
 0x3c7   :  { %7353 = vmatpush1.bf16.msra.mxu0 %v9779_v58  ;;  %7384 = vmatprep.mubr.bf16.mxu0 %v10881_v9  ;;  %v9317_v58 = vcombine.low %v658_v39, %v662_v40  ;;  %v9350_v28 = vcombine.high %v690_v59, %v694_v0  ;;  %v9358_v39 = vcombine.high %v698_v30, %v702_v31 }
 0x3c8   :  { %7354 = vmatprep.subr.bf16.mxu0 %v9788_v1  ;;  %v9827_v1 = vcombine.low %v1169_v43, %v1173_v56  ;;  %v706_v43 = vld [vmem:[#allocation5 + $0xf18] sm:$0xff] }
 0x3c9   :  { %7519 = vmatpush1.bf16.msra.mxu1 %v9277_v8  ;;  %v1185_v8 = vld [vmem:[#allocation5 + $0x1e10] sm:$0xff]  ;;  %v710_v56 = vld [vmem:[#allocation5 + $0xf38] sm:$0xff] }
 0x3ca   :  { %7520 = vmatprep.subr.bf16.mxu1 %v9286_v13  ;;  %v9325_v13 = vcombine.low %v666_v15, %v670_v33  ;;  %v9366_v15 = vcombine.high %v706_v43, %v710_v56 }
 0x3cb   :  { %7355 = vmatpush1.bf16.msra.mxu0 %v9787_v11  ;;  %v1189_v11 = vld [vmem:[#allocation5 + $0x1e30] sm:$0xff] }
 0x3cc   :  { %7356 = vmatprep.subr.bf16.mxu0 %v9796_v61  ;;  %v9835_v61 = vcombine.low %v1177_v54, %v1181_v55  ;;  %v9844_v12 = vcombine.high %v1185_v8, %v1189_v11  ;;  %v714_v54 = vld [vmem:[#allocation5 + $0xf58] sm:$0xff] }
 0x3cd   :  { %7521 = vmatpush1.bf16.msra.mxu1 %v9285_v38  ;;  %v1193_v38 = vld [vmem:[#allocation5 + $0x1e50] sm:$0xff]  ;;  %v718_v55 = vld [vmem:[#allocation5 + $0xf78] sm:$0xff] }
 0x3ce   :  { %7522 = vmatprep.subr.bf16.mxu1 %v9294_v19  ;;  %v9333_v19 = vcombine.low %v674_v3, %v678_v46  ;;  %v722_v3 = vld [vmem:[#allocation5 + $0xf98] sm:$0xff] }
 0x3cf   :  { %7357 = vmatpush1.bf16.msra.mxu0 %v9795_v18  ;;  %v1197_v18 = vld [vmem:[#allocation5 + $0x1e70] sm:$0xff]  ;;  %v726_v46 = vld [vmem:[#allocation5 + $0xfb8] sm:$0xff] }
 0x3d0   :  { %7358 = vmatprep.subr.bf16.mxu0 %v9804_v20  ;;  %v9843_v20 = vcombine.low %v1185_v8, %v1189_v11  ;;  %v9852_v25 = vcombine.high %v1193_v38, %v1197_v18  ;;  %v1233_v8 = vld [vmem:[#allocation5 + $0x1f90] sm:$0xff] }
 0x3d1   :  { %7523 = vmatpush1.bf16.msra.mxu1 %v9293_v23  ;;  %v1201_v23 = vld [vmem:[#allocation5 + $0x1e90] sm:$0xff] }
 0x3d2   :  { %7524 = vmatprep.subr.bf16.mxu1 %v9302_v27  ;;  %v9341_v27 = vcombine.low %v682_v26, %v686_v17  ;;  %v1237_v11 = vld [vmem:[#allocation5 + $0x1fb0] sm:$0xff]  ;;  %v730_v26 = vld [vmem:[#allocation5 + $0xfd8] sm:$0xff] }
 0x3d3   :  { %7359 = vmatpush1.bf16.msra.mxu0 %v9803_v42  ;;  %v1205_v42 = vld [vmem:[#allocation5 + $0x1eb0] sm:$0xff]  ;;  %v734_v17 = vld [vmem:[#allocation5 + $0xff8] sm:$0xff] }
 0x3d4   :  { %7360 = vmatprep.subr.bf16.mxu0 %v9812_v47  ;;  %v9851_v47 = vcombine.low %v1193_v38, %v1197_v18  ;;  %v9860_v29 = vcombine.high %v1201_v23, %v1205_v42  ;;  %v1241_v38 = vld [vmem:[#allocation5 + $0x1fd0] sm:$0xff] }
 0x3d5   :  { %7525 = vmatpush1.bf16.msra.mxu1 %v9301_v32  ;;  %v1209_v32 = vld [vmem:[#allocation5 + $0x1ed0] sm:$0xff] }
 0x3d6   :  { %7526 = vmatprep.subr.bf16.mxu1 %v9310_v2  ;;  %v9349_v2 = vcombine.low %v690_v59, %v694_v0  ;;  %v1245_v18 = vld [vmem:[#allocation5 + $0x1ff0] sm:$0xff]  ;;  %v738_v59 = vld [vmem:[#allocation5 + $0x1018] sm:$0xff] }
 0x3d7   :  { %7361 = vmatpush1.bf16.msra.mxu0 %v9811_v34  ;;  %v10939_v49 = vpop.f32.mrb[4].mxu1  ;;  %v1213_v34 = vld [vmem:[#allocation5 + $0x1ef0] sm:$0xff]  ;;  %v742_v0 = vld [vmem:[#allocation5 + $0x1038] sm:$0xff] }
 0x3d8   :  { %7362 = vmatprep.subr.bf16.mxu0 %v9820_v35  ;;  %v10941_v51 = vpop.f32.mrb[5].mxu1  ;;  %v9859_v35 = vcombine.low %v1201_v23, %v1205_v42  ;;  %v9868_v40 = vcombine.high %v1209_v32, %v1213_v34  ;;  %v9389_v23 = vcombine.low %v730_v26, %v734_v17  ;;  %v9899_v42 = vcombine.low %v1241_v38, %v1245_v18 }
 0x3d9   :  { %v7062_v57 = vpop.f32.mrb[6].mxu1  ;;  %7527 = vmatpush1.bf16.msra.mxu1 %v9309_v45  ;;  %v1217_v45 = vld [vmem:[#allocation5 + $0x1f10] sm:$0xff] }
 0x3da   :  { %v7063_v60 = vpop.f32.mrb[7].mxu1  ;;  %7528 = vmatprep.subr.bf16.mxu1 %v9318_v52  ;;  %v9357_v52 = vcombine.low %v698_v30, %v702_v31  ;;  %v1225_v57 = vld [vmem:[#allocation5 + $0x1f50] sm:$0xff]  ;;  %v750_v30 = vld [vmem:[#allocation5 + $0x1078] sm:$0xff]  ;;  %v9397_v31 = vcombine.low %v738_v59, %v742_v0 }
 0x3db   :  { %7363 = vmatpush1.bf16.msra.mxu0 %v9819_v48  ;;  %v1221_v48 = vld [vmem:[#allocation5 + $0x1f30] sm:$0xff]  ;;  %v9365_v60 = vcombine.low %v706_v43, %v710_v56 }
 0x3dc   :  { %7364 = vmatprep.subr.bf16.mxu0 %v9828_v53  ;;  %v9867_v53 = vcombine.low %v1209_v32, %v1213_v34  ;;  %v9876_v33 = vcombine.high %v1217_v45, %v1221_v48  ;;  %v10221_v32 = vld [vmem:[#allocation8] ss:$8 sps:$4 sm:$0xff]  }
 0x3dd   :  { %7529 = vmatpush1.bf16.msra.mxu1 %v9317_v58  ;;  %v1229_v58 = vld [vmem:[#allocation5 + $0x1f70] sm:$0xff] }
 0x3de   :  { %7530 = vmatprep.subr.bf16.mxu1 %v9326_v6  ;;  %v9374_v6 = vcombine.high %v714_v54, %v718_v55 }
 0x3df   :  { %7365 = vmatpush1.bf16.msra.mxu0 %v9827_v1  ;;  %v9875_v1 = vcombine.low %v1217_v45, %v1221_v48  ;;  %v10229_v45 = vld [vmem:[#allocation8 + $0x24] ss:$8 sps:$4 sm:$0xff]   ;;  %v762_v48 = vld [vmem:[#allocation5 + $0x10d8] sm:$0xff] }
 0x3e0   :  { %7366 = vmatprep.subr.bf16.mxu0 %v9836_v7  ;;  %v9884_v7 = vcombine.high %v1225_v57, %v1229_v58 }
 0x3e1   :  { %7531 = vmatpush1.bf16.msra.mxu1 %v9325_v13  ;;  %v9373_v13 = vcombine.low %v714_v54, %v718_v55  ;;  %v770_v54 = vld [vmem:[#allocation5 + $0x1118] sm:$0xff] }
 0x3e2   :  { %7532 = vmatprep.subr.bf16.mxu1 %v9334_v24  ;;  %v9382_v24 = vcombine.high %v722_v3, %v726_v46  ;;  %v774_v55 = vld [vmem:[#allocation5 + $0x1138] sm:$0xff] }
 0x3e3   :  { %7367 = vmatpush1.bf16.msra.mxu0 %v9835_v61  ;;  %v9883_v61 = vcombine.low %v1225_v57, %v1229_v58  ;;  %v10230_v58 = vld [vmem:[#allocation8 + $0x30] ss:$8 sps:$4 sm:$0xff]  }
 0x3e4   :  { %7368 = vmatprep.subr.bf16.mxu0 %v9844_v12  ;;  %v9892_v12 = vcombine.high %v1233_v8, %v1237_v11 }
 0x3e5   :  { %7533 = vmatpush1.bf16.msra.mxu1 %v9333_v19  ;;  %v9381_v19 = vcombine.low %v722_v3, %v726_v46  ;;  %v10233_v3 = vld [vmem:[#allocation8 + $0x40] ss:$8 sps:$4 sm:$0xff]  }
 0x3e6   :  { %7534 = vmatprep.subr.bf16.mxu1 %v9342_v21  ;;  %v9390_v21 = vcombine.high %v730_v26, %v734_v17  ;;  %v10241_v26 = vld [vmem:[#allocation8 + $0x64] ss:$8 sps:$4 sm:$0xff]   ;;  %v794_v17 = vld [vmem:[#allocation5 + $0x11d8] sm:$0xff] }
 0x3e7   :  { %7369 = vmatpush1.bf16.msra.mxu0 %v9843_v20  ;;  %v9891_v20 = vcombine.low %v1233_v8, %v1237_v11  ;;  %v10238_v8 = vld [vmem:[#allocation8 + $0x54] ss:$8 sps:$4 sm:$0xff]  }
 0x3e8   :  { %7370 = vmatprep.subr.bf16.mxu0 %v9852_v25  ;;  %v9900_v25 = vcombine.high %v1241_v38, %v1245_v18  ;;  %v786_v11 = vld [vmem:[#allocation5 + $0x1198] sm:$0xff] }
 0x3e9   :  { %7535 = vmatpush1.bf16.msra.mxu1 %v9341_v27  ;;  %v9398_v27 = vcombine.high %v738_v59, %v742_v0  ;;  %v798_v38 = vld [vmem:[#allocation5 + $0x11f8] sm:$0xff] }
 0x3ea   :  { %7536 = vmatprep.subr.bf16.mxu1 %v9350_v28  ;;  %v7722_v28 = vmax.f32 %v10921_v41, 0.0  ;;  %v10224_v41 = vld [vmem:[#allocation8 + $0x10] ss:$8 sps:$4 sm:$0xff]   ;;  %v9453_v0 = vcombine.low %v794_v17, %v798_v38 }
 0x3eb   :  { %7371 = vmatpush1.bf16.msra.mxu0 %v9851_v47  ;;  %v10223_v47 = vld [vmem:[#allocation8 + $0x4] ss:$8 sps:$4 sm:$0xff]   ;;  %v806_v59 = vld [vmem:[#allocation5 + $0x1238] sm:$0xff] }
 0x3ec   :  { %7372 = vmatprep.subr.bf16.mxu0 %v9860_v29  ;;  %v746_v29 = vld [vmem:[#allocation5 + $0x1058] sm:$0xff] }
 0x3ed   :  { %7537 = vmatpush1.bf16.msra.mxu1 %v9349_v2  ;;  %v9406_v34 = vcombine.high %v746_v29, %v750_v30  ;;  %v10226_v2 = vld [vmem:[#allocation8 + $0x14] ss:$8 sps:$4 sm:$0xff]   ;;  %v9405_v43 = vcombine.low %v746_v29, %v750_v30  ;;  %v10245_v30 = vld [vmem:[#allocation8 + $0x80] ss:$8 sps:$4 sm:$0xff]  }
 0x3ee   :  { %7538 = vmatprep.subr.bf16.mxu1 %v9358_v39  ;;  %v758_v39 = vld [vmem:[#allocation5 + $0x10b8] sm:$0xff] }
 0x3ef   :  { %7373 = vmatpush1.bf16.msra.mxu0 %v9859_v35  ;;  %v754_v35 = vld [vmem:[#allocation5 + $0x1098] sm:$0xff] }
 0x3f0   :  { %7374 = vmatprep.subr.bf16.mxu0 %v9868_v40  ;;  %v7730_v40 = vpack.c.bf16 %v7722_v28, %v7722_v28  ;;  %v9414_v56 = vcombine.high %v754_v35, %v758_v39  ;;  %v814_v28 = vld [vmem:[#allocation5 + $0x1278] sm:$0xff] }
 0x3f1   :  { %7539 = vmatpush1.bf16.msra.mxu1 %v9357_v52  ;;  %v766_v52 = vld [vmem:[#allocation5 + $0x10f8] sm:$0xff] }
 0x3f2   :  { %7540 = vmatprep.subr.bf16.mxu1 %v9366_v15  ;;  %v9422_v15 = vcombine.high %v762_v48, %v766_v52  ;;  %v9421_v57 = vcombine.low %v762_v48, %v766_v52  ;;  %v10251_v48 = vld [vmem:[#allocation8 + $0xa0] ss:$8 sps:$4 sm:$0xff]  }
 0x3f3   :  { %7375 = vmatpush1.bf16.msra.mxu0 %v9867_v53  ;;  %v9413_v53 = vcombine.low %v754_v35, %v758_v39  ;;  %v10248_v39 = vld [vmem:[#allocation8 + $0x90] ss:$8 sps:$4 sm:$0xff]  }
 0x3f4   :  { %7376 = vmatprep.subr.bf16.mxu0 %v9876_v33  ;;  %v10232_v33 = vld [vmem:[#allocation8 + $0x34] ss:$8 sps:$4 sm:$0xff]  }
 0x3f5   :  { %7541 = vmatpush1.bf16.msra.mxu1 %v9365_v60  ;;  %v9430_v60 = vcombine.high %v770_v54, %v774_v55 }
 0x3f6   :  { %7542 = vmatprep.subr.bf16.mxu1 %v9374_v6  ;;  %v778_v6 = vld [vmem:[#allocation5 + $0x1158] sm:$0xff] }
 0x3f7   :  { %7377 = vmatpush1.bf16.msra.mxu0 %v9875_v1  ;;  %v10235_v1 = vld [vmem:[#allocation8 + $0x44] ss:$8 sps:$4 sm:$0xff]  }
 0x3f8   :  { %7378 = vmatprep.subr.bf16.mxu0 %v9884_v7  ;;  %v9429_v7 = vcombine.low %v770_v54, %v774_v55  ;;  %v10254_v54 = vld [vmem:[#allocation8 + $0xb0] ss:$8 sps:$4 sm:$0xff]  }
 0x3f9   :  { %7543 = vmatpush1.bf16.msra.mxu1 %v9373_v13  ;;  %v790_v13 = vld [vmem:[#allocation5 + $0x11b8] sm:$0xff] }
 0x3fa   :  { %7544 = vmatprep.subr.bf16.mxu1 %v9382_v24  ;;  %v10236_v24 = vld [vmem:[#allocation8 + $0x50] ss:$8 sps:$4 sm:$0xff]   ;;  %v9445_v18 = vcombine.low %v786_v11, %v790_v13 }
 0x3fb   :  { %7379 = vmatpush1.bf16.msra.mxu0 %v9883_v61 }
 0x3fc   :  { %7380 = vmatprep.subr.bf16.mxu0 %v9892_v12  ;;  %v9446_v12 = vcombine.high %v786_v11, %v790_v13  ;;  %v10260_v13 = vld [vmem:[#allocation8 + $0xd0] ss:$8 sps:$4 sm:$0xff]  }
 0x3fd   :  { %7545 = vmatpush1.bf16.msra.mxu1 %v9381_v19  ;;  %v10239_v19 = vld [vmem:[#allocation8 + $0x60] ss:$8 sps:$4 sm:$0xff]  }
 0x3fe   :  { %7546 = vmatprep.subr.bf16.mxu1 %v9390_v21  ;;  %v10244_v21 = vld [vmem:[#allocation8 + $0x74] ss:$8 sps:$4 sm:$0xff]  }
 0x3ff   :  { %7381 = vmatpush1.bf16.msra.mxu0 %v9891_v20  ;;  %v9454_v20 = vcombine.high %v794_v17, %v798_v38  ;;  %v10948_v17 = vld [vmem:[#allocation7] sm:$0xff] }
 0x400   :  { %7382 = vmatprep.subr.bf16.mxu0 %v9900_v25  ;;  %v802_v25 = vld [vmem:[#allocation5 + $0x1218] sm:$0xff] }
 0x401   :  { %7547 = vmatpush1.bf16.msra.mxu1 %v9389_v23  ;;  %v10242_v23 = vld [vmem:[#allocation8 + $0x70] ss:$8 sps:$4 sm:$0xff]   ;;  %v9461_v29 = vcombine.low %v802_v25, %v806_v59 }
 0x402   :  { %7557 = vmatprep.subr.bf16.mxu1 %v9398_v27  ;;  %v10247_v27 = vld [vmem:[#allocation8 + $0x84] ss:$8 sps:$4 sm:$0xff]  }
 0x403   :  { %7383 = vmatpush1.bf16.msra.mxu0 %v9899_v42  ;;  %v9462_v42 = vcombine.high %v802_v25, %v806_v59  ;;  %v866_v25 = vld [vmem:[#allocation5 + $0x1418] sm:$0xff] }
 0x404   :  { %8517 = vmatprep.subr.bf16.mxu0 %v10223_v47  ;;  %7549 = vmatmul.mubr.bf16.vlgmr.msra.gmra.mrb[8].mxu1 %v10827_v5  ;;  %v10227_v5 = vld [vmem:[#allocation8 + $0x20] ss:$8 sps:$4 sm:$0xff]   ;;  %v810_v47 = vld [vmem:[#allocation5 + $0x1258] sm:$0xff] }
 0x405   :  { %7558 = vmatpush1.bf16.msra.mxu1 %v9397_v31  ;;  %7589 = vmatprep.mubr.bf16.mxu1 %v10829_v14  ;;  %v782_v14 = vld [vmem:[#allocation5 + $0x1178] sm:$0xff]  ;;  %v9470_v31 = vcombine.high %v810_v47, %v814_v28  ;;  %v9469_v35 = vcombine.low %v810_v47, %v814_v28  ;;  %v7721_v47 = vmax.f32 %v10919_v37, 0.0  ;;  %v10271_v28 = vld [vmem:[#allocation8 + $0x104] ss:$8 sps:$4 sm:$0xff]  }
 0x406   :  { %7385 = vmatmul.mubr.bf16.vlgmr.msra.gmra.mrb[4].mxu0 %v10893_v50  ;;  %7559 = vmatprep.subr.bf16.mxu1 %v9406_v34  ;;  %v9438_v46 = vcombine.high %v778_v6, %v782_v14  ;;  %v9437_v61 = vcombine.low %v778_v6, %v782_v14  ;;  %v818_v34 = vld [vmem:[#allocation5 + $0x1298] sm:$0xff]  ;;  %v10257_v6 = vld [vmem:[#allocation8 + $0xc0] ss:$8 sps:$4 sm:$0xff]  }
 0x407   :  { %8518 = vmatpush1.bf16.msra.mxu0 %v10221_v32  ;;  %8549 = vmatprep.mubr.bf16.mxu0 %v7730_v40  ;;  %v10250_v32 = vld [vmem:[#allocation8 + $0x94] ss:$8 sps:$4 sm:$0xff]  }
 0x408   :  { %8519 = vmatprep.subr.bf16.mxu0 %v10226_v2  ;;  %v822_v2 = vld [vmem:[#allocation5 + $0x12b8] sm:$0xff] }
 0x409   :  { %7560 = vmatpush1.bf16.msra.mxu1 %v9405_v43  ;;  %v9478_v40 = vcombine.high %v818_v34, %v822_v2  ;;  %v10253_v43 = vld [vmem:[#allocation8 + $0xa4] ss:$8 sps:$4 sm:$0xff]   ;;  %v870_v59 = vld [vmem:[#allocation5 + $0x1438] sm:$0xff] }
 0x40a   :  { %7561 = vmatprep.subr.bf16.mxu1 %v9414_v56  ;;  %v830_v56 = vld [vmem:[#allocation5 + $0x12f8] sm:$0xff] }
 0x40b   :  { %8520 = vmatpush1.bf16.msra.mxu0 %v10224_v41  ;;  %v826_v41 = vld [vmem:[#allocation5 + $0x12d8] sm:$0xff] }
 0x40c   :  { %8521 = vmatprep.subr.bf16.mxu0 %v10229_v45  ;;  %v9477_v45 = vcombine.low %v818_v34, %v822_v2  ;;  %v9486_v52 = vcombine.high %v826_v41, %v830_v56  ;;  %v10269_v34 = vld [vmem:[#allocation8 + $0x100] ss:$8 sps:$4 sm:$0xff]   ;;  %v7729_v2 = vpack.c.bf16 %v7721_v47, %v7721_v47  ;;  %v942_v47 = vld [vmem:[#allocation5 + $0x1678] sm:$0xff] }
 0x40d   :  { %7562 = vmatpush1.bf16.msra.mxu1 %v9413_v53  ;;  %v10256_v53 = vld [vmem:[#allocation8 + $0xb4] ss:$8 sps:$4 sm:$0xff]  }
 0x40e   :  { %7563 = vmatprep.subr.bf16.mxu1 %v9422_v15  ;;  %v838_v15 = vld [vmem:[#allocation5 + $0x1338] sm:$0xff] }
 0x40f   :  { %8522 = vmatpush1.bf16.msra.mxu0 %v10227_v5  ;;  %v834_v5 = vld [vmem:[#allocation5 + $0x1318] sm:$0xff] }
 0x410   :  { %8523 = vmatprep.subr.bf16.mxu0 %v10232_v33  ;;  %v9485_v33 = vcombine.low %v826_v41, %v830_v56  ;;  %v9494_v55 = vcombine.high %v834_v5, %v838_v15  ;;  %v10272_v41 = vld [vmem:[#allocation8 + $0x110] ss:$8 sps:$4 sm:$0xff]  }
 0x411   :  { %7564 = vmatpush1.bf16.msra.mxu1 %v9421_v57  ;;  %v10259_v57 = vld [vmem:[#allocation8 + $0xc4] ss:$8 sps:$4 sm:$0xff]  }
 0x412   :  { %7565 = vmatprep.subr.bf16.mxu1 %v9430_v60  ;;  %v846_v60 = vld [vmem:[#allocation5 + $0x1378] sm:$0xff] }
 0x413   :  { %8524 = vmatpush1.bf16.msra.mxu0 %v10230_v58  ;;  %v842_v58 = vld [vmem:[#allocation5 + $0x1358] sm:$0xff] }
 0x414   :  { %8525 = vmatprep.subr.bf16.mxu0 %v10235_v1  ;;  %v9493_v1 = vcombine.low %v834_v5, %v838_v15  ;;  %v9502_v14 = vcombine.high %v842_v58, %v846_v60  ;;  %v9501_v11 = vcombine.low %v842_v58, %v846_v60  ;;  %v10275_v5 = vld [vmem:[#allocation8 + $0x120] ss:$8 sps:$4 sm:$0xff]   ;;  %v10280_v15 = vld [vmem:[#allocation8 + $0x134] ss:$8 sps:$4 sm:$0xff]   ;;  %v10283_v60 = vld [vmem:[#allocation8 + $0x144] ss:$8 sps:$4 sm:$0xff]  }
 0x415   :  { %7566 = vmatpush1.bf16.msra.mxu1 %v9429_v7  ;;  %v10262_v7 = vld [vmem:[#allocation8 + $0xd4] ss:$8 sps:$4 sm:$0xff]  }
 0x416   :  { %7567 = vmatprep.subr.bf16.mxu1 %v9438_v46  ;;  %v854_v46 = vld [vmem:[#allocation5 + $0x13b8] sm:$0xff] }
 0x417   :  { %8526 = vmatpush1.bf16.msra.mxu0 %v10233_v3  ;;  %v850_v3 = vld [vmem:[#allocation5 + $0x1398] sm:$0xff] }
 0x418   :  { %8527 = vmatprep.subr.bf16.mxu0 %v10238_v8  ;;  %v1263_v8 = vsub.s32 3, %v10756_v44 }
 0x419   :  { %7568 = vmatpush1.bf16.msra.mxu1 %v9437_v61  ;;  %v9510_v61 = vcombine.high %v850_v3, %v854_v46 }
 0x41a   :  { %7569 = vmatprep.subr.bf16.mxu1 %v9446_v12  ;;  %v858_v12 = vld [vmem:[#allocation5 + $0x13d8] sm:$0xff]  ;;  %v1264_v38 = vrot.slane %v10948_v17, %v1263_v8 }
 0x41b   :  { %8528 = vmatpush1.bf16.msra.mxu0 %v10236_v24  ;;  %v10265_v24 = vld [vmem:[#allocation8 + $0xe4] ss:$8 sps:$4 sm:$0xff]   ;;  %v918_v8 = vld [vmem:[#allocation5 + $0x15b8] sm:$0xff] }
 0x41c   :  { %8529 = vmatprep.subr.bf16.mxu0 %v10241_v26  ;;  %v862_v26 = vld [vmem:[#allocation5 + $0x13f8] sm:$0xff] }
 0x41d   :  { %7570 = vmatpush1.bf16.msra.mxu1 %v9445_v18  ;;  %v9509_v18 = vcombine.low %v850_v3, %v854_v46  ;;  %v10286_v3 = vld [vmem:[#allocation8 + $0x154] ss:$8 sps:$4 sm:$0xff]  }
 0x41e   :  { %7571 = vmatprep.subr.bf16.mxu1 %v9454_v20  ;;  %v9518_v20 = vcombine.high %v858_v12, %v862_v26  ;;  %v914_v46 = vld [vmem:[#allocation5 + $0x1598] sm:$0xff] }
 0x41f   :  { %8530 = vmatpush1.bf16.msra.mxu0 %v10239_v19  ;;  %v10263_v19 = vld [vmem:[#allocation8 + $0xe0] ss:$8 sps:$4 sm:$0xff]  }
 0x420   :  { %8531 = vmatprep.subr.bf16.mxu0 %v10244_v21  ;;  %v10268_v21 = vld [vmem:[#allocation8 + $0xf4] ss:$8 sps:$4 sm:$0xff]  }
 0x421   :  { %7572 = vmatpush1.bf16.msra.mxu1 %v9453_v0  ;;  %v10075_v0 = vadd.f32 %v10941_v51, %v1264_v38  ;;  %v9573_v38 = vcombine.low %v914_v46, %v918_v8 }
 0x422   :  { %7573 = vmatprep.subr.bf16.mxu1 %v9462_v42  ;;  %v10266_v42 = vld [vmem:[#allocation8 + $0xf0] ss:$8 sps:$4 sm:$0xff]  }
 0x423   :  { %8532 = vmatpush1.bf16.msra.mxu0 %v10242_v23  ;;  %v9517_v23 = vcombine.low %v858_v12, %v862_v26  ;;  %v922_v12 = vld [vmem:[#allocation5 + $0x15d8] sm:$0xff] }
 0x424   :  { %8533 = vmatprep.subr.bf16.mxu0 %v10247_v27  ;;  %v9526_v27 = vcombine.high %v866_v25, %v870_v59  ;;  %v926_v26 = vld [vmem:[#allocation5 + $0x15f8] sm:$0xff] }
 0x425   :  { %7574 = vmatpush1.bf16.msra.mxu1 %v9461_v29  ;;  %v7724_v29 = vmax.f32 %v10075_v0, 0.0  ;;  %v10290_v0 = vld [vmem:[#allocation8 + $0x170] ss:$8 sps:$4 sm:$0xff]  }
 0x426   :  { %7575 = vmatprep.subr.bf16.mxu1 %v9470_v31  ;;  %v878_v31 = vld [vmem:[#allocation5 + $0x1478] sm:$0xff] }
 0x427   :  { %8534 = vmatpush1.bf16.msra.mxu0 %v10245_v30  ;;  %v874_v30 = vld [vmem:[#allocation5 + $0x1458] sm:$0xff] }
 0x428   :  { %8535 = vmatprep.subr.bf16.mxu0 %v10250_v32  ;;  %v9525_v32 = vcombine.low %v866_v25, %v870_v59  ;;  %v9534_v51 = vcombine.high %v874_v30, %v878_v31  ;;  %v9533_v37 = vcombine.low %v874_v30, %v878_v31  ;;  %v934_v25 = vld [vmem:[#allocation5 + $0x1638] sm:$0xff]  ;;  %v9581_v59 = vcombine.low %v922_v12, %v926_v26 }
 0x429   :  { %7576 = vmatpush1.bf16.msra.mxu1 %v9469_v35  ;;  %v10274_v35 = vld [vmem:[#allocation8 + $0x114] ss:$8 sps:$4 sm:$0xff]  }
 0x42a   :  { %7577 = vmatprep.subr.bf16.mxu1 %v9478_v40  ;;  %v886_v40 = vld [vmem:[#allocation5 + $0x14b8] sm:$0xff] }
 0x42b   :  { %8536 = vmatpush1.bf16.msra.mxu0 %v10248_v39  ;;  %v882_v39 = vld [vmem:[#allocation5 + $0x1498] sm:$0xff] }
 0x42c   :  { %8537 = vmatprep.subr.bf16.mxu0 %v10253_v43  ;;  %v7732_v43 = vpack.c.bf16 %v7724_v29, %v7724_v29  ;;  %v9542_v56 = vcombine.high %v882_v39, %v886_v40  ;;  %v10293_v29 = vld [vmem:[#allocation8 + $0x180] ss:$8 sps:$4 sm:$0xff]   ;;  %v10298_v31 = vld [vmem:[#allocation8 + $0x194] ss:$8 sps:$4 sm:$0xff]  }
 0x42d   :  { %7578 = vmatpush1.bf16.msra.mxu1 %v9477_v45  ;;  %v10277_v45 = vld [vmem:[#allocation8 + $0x124] ss:$8 sps:$4 sm:$0xff]  }
 0x42e   :  { %7579 = vmatprep.subr.bf16.mxu1 %v9486_v52  ;;  %v894_v52 = vld [vmem:[#allocation5 + $0x14f8] sm:$0xff] }
 0x42f   :  { %8538 = vmatpush1.bf16.msra.mxu0 %v10251_v48  ;;  %v890_v48 = vld [vmem:[#allocation5 + $0x14d8] sm:$0xff] }
 0x430   :  { %8539 = vmatprep.subr.bf16.mxu0 %v10256_v53  ;;  %v9541_v53 = vcombine.low %v882_v39, %v886_v40  ;;  %v10301_v39 = vld [vmem:[#allocation8 + $0x1a4] ss:$8 sps:$4 sm:$0xff]   ;;  %v954_v40 = vld [vmem:[#allocation5 + $0x16d8] sm:$0xff] }
 0x431   :  { %7580 = vmatpush1.bf16.msra.mxu1 %v9485_v33  ;;  %v898_v33 = vld [vmem:[#allocation5 + $0x1518] sm:$0xff] }
 0x432   :  { %7581 = vmatprep.subr.bf16.mxu1 %v9494_v55  ;;  %v9549_v55 = vcombine.low %v890_v48, %v894_v52 }
 0x433   :  { %8540 = vmatpush1.bf16.msra.mxu0 %v10254_v54  ;;  %v902_v54 = vld [vmem:[#allocation5 + $0x1538] sm:$0xff] }
 0x434   :  { %8541 = vmatprep.subr.bf16.mxu0 %v10259_v57  ;;  %v10278_v57 = vld [vmem:[#allocation8 + $0x130] ss:$8 sps:$4 sm:$0xff]   ;;  %v9558_v58 = vcombine.high %v898_v33, %v902_v54 }
 0x435   :  { %7582 = vmatpush1.bf16.msra.mxu1 %v9493_v1  ;;  %v906_v1 = vld [vmem:[#allocation5 + $0x1558] sm:$0xff] }
 0x436   :  { %7583 = vmatprep.subr.bf16.mxu1 %v9502_v14  ;;  %v10281_v14 = vld [vmem:[#allocation8 + $0x140] ss:$8 sps:$4 sm:$0xff]  }
 0x437   :  { %8542 = vmatpush1.bf16.msra.mxu0 %v10257_v6  ;;  %v9557_v6 = vcombine.low %v898_v33, %v902_v54  ;;  %v970_v33 = vld [vmem:[#allocation5 + $0x1758] sm:$0xff] }
 0x438   :  { %8543 = vmatprep.subr.bf16.mxu0 %v10262_v7  ;;  %v974_v54 = vld [vmem:[#allocation5 + $0x1778] sm:$0xff] }
 0x439   :  { %7584 = vmatpush1.bf16.msra.mxu1 %v9501_v11 }
 0x43a   :  { %7585 = vmatprep.subr.bf16.mxu1 %v9510_v61  ;;  %v9574_v61 = vcombine.high %v914_v46, %v918_v8  ;;  %v10313_v8 = vld [vmem:[#allocation8 + $0x1e4] ss:$8 sps:$4 sm:$0xff]  }
 0x43b   :  { %8544 = vmatpush1.bf16.msra.mxu0 %v10260_v13  ;;  %v10284_v13 = vld [vmem:[#allocation8 + $0x150] ss:$8 sps:$4 sm:$0xff]  }
 0x43c   :  { %8545 = vmatprep.subr.bf16.mxu0 %v10265_v24  ;;  %v10289_v24 = vld [vmem:[#allocation8 + $0x164] ss:$8 sps:$4 sm:$0xff]  }
 0x43d   :  { %7586 = vmatpush1.bf16.msra.mxu1 %v9509_v18  ;;  %v10287_v18 = vld [vmem:[#allocation8 + $0x160] ss:$8 sps:$4 sm:$0xff]  }
 0x43e   :  { %7587 = vmatprep.subr.bf16.mxu1 %v9518_v20  ;;  %v10292_v20 = vld [vmem:[#allocation8 + $0x174] ss:$8 sps:$4 sm:$0xff]  }
 0x43f   :  { %8546 = vmatpush1.bf16.msra.mxu0 %v10263_v19  ;;  %v9582_v19 = vcombine.high %v922_v12, %v926_v26 }
 0x440   :  { %8547 = vmatprep.subr.bf16.mxu0 %v10268_v21  ;;  %v930_v21 = vld [vmem:[#allocation5 + $0x1618] sm:$0xff] }
 0x441   :  { %7588 = vmatpush1.bf16.msra.mxu1 %v9517_v23  ;;  %v9590_v23 = vcombine.high %v930_v21, %v934_v25 }
 0x442   :  { %7598 = vmatprep.subr.bf16.mxu1 %v9526_v27  ;;  %v938_v27 = vld [vmem:[#allocation5 + $0x1658] sm:$0xff] }
 0x443   :  { %8548 = vmatpush1.bf16.msra.mxu0 %v10266_v42  ;;  %v10295_v42 = vld [vmem:[#allocation8 + $0x184] ss:$8 sps:$4 sm:$0xff]   ;;  %v9598_v30 = vcombine.high %v938_v27, %v942_v47 }
 0x444   :  { %8558 = vmatprep.subr.bf16.mxu0 %v10271_v28  ;;  %7590 = vmatmul.mubr.bf16.vlgmr.msra.gmra.mrb[8].mxu1 %v10844_v36  ;;  %v9550_v36 = vcombine.high %v890_v48, %v894_v52  ;;  %v9589_v28 = vcombine.low %v930_v21, %v934_v25  ;;  %v962_v48 = vld [vmem:[#allocation5 + $0x1718] sm:$0xff] }
 0x445   :  { %7599 = vmatpush1.bf16.msra.mxu1 %v9525_v32  ;;  %7630 = vmatprep.mubr.bf16.mxu1 %v10846_v63  ;;  %v910_v63 = vld [vmem:[#allocation5 + $0x1578] sm:$0xff] }
 0x446   :  { %8550 = vmatmul.mubr.bf16.vlgmr.msra.gmra.mrb[8].mxu0 %v7729_v2  ;;  %7600 = vmatprep.subr.bf16.mxu1 %v9534_v51  ;;  %v9566_v7 = vcombine.high %v906_v1, %v910_v63  ;;  %v9565_v11 = vcombine.low %v906_v1, %v910_v63  ;;  %v946_v32 = vld [vmem:[#allocation5 + $0x1698] sm:$0xff]  ;;  %v9597_v2 = vcombine.low %v938_v27, %v942_v47  ;;  %v10317_v47 = vld [vmem:[#allocation8 + $0x200] ss:$8 sps:$4 sm:$0xff]  }
 0x447   :  { %8559 = vmatpush1.bf16.msra.mxu0 %v10269_v34  ;;  %8590 = vmatprep.mubr.bf16.mxu0 %v7732_v43  ;;  %v950_v34 = vld [vmem:[#allocation5 + $0x16b8] sm:$0xff] }
 0x448   :  { %8560 = vmatprep.subr.bf16.mxu0 %v10274_v35  ;;  %v10296_v51 = vld [vmem:[#allocation8 + $0x190] ss:$8 sps:$4 sm:$0xff]   ;;  %v9606_v35 = vcombine.high %v946_v32, %v950_v34  ;;  %v10310_v1 = vld [vmem:[#allocation8 + $0x1d4] ss:$8 sps:$4 sm:$0xff]  }
 0x449   :  { %7601 = vmatpush1.bf16.msra.mxu1 %v9533_v37  ;;  %v958_v43 = vld [vmem:[#allocation5 + $0x16f8] sm:$0xff]  ;;  %v9605_v37 = vcombine.low %v946_v32, %v950_v34 }
 0x44a   :  { %7602 = vmatprep.subr.bf16.mxu1 %v9542_v56  ;;  %v9614_v56 = vcombine.high %v954_v40, %v958_v43  ;;  %v966_v52 = vld [vmem:[#allocation5 + $0x1738] sm:$0xff] }
 0x44b   :  { %8561 = vmatpush1.bf16.msra.mxu0 %v10272_v41  ;;  %v10299_v41 = vld [vmem:[#allocation8 + $0x1a0] ss:$8 sps:$4 sm:$0xff]   ;;  %v978_v63 = vld [vmem:[#allocation5 + $0x1798] sm:$0xff] }
 0x44c   :  { %8562 = vmatprep.subr.bf16.mxu0 %v10277_v45  ;;  %v10304_v45 = vld [vmem:[#allocation8 + $0x1b4] ss:$8 sps:$4 sm:$0xff]   ;;  %v10314_v21 = vld [vmem:[#allocation8 + $0x1f0] ss:$8 sps:$4 sm:$0xff]  }
 0x44d   :  { %7603 = vmatpush1.bf16.msra.mxu1 %v9541_v53  ;;  %v9613_v53 = vcombine.low %v954_v40, %v958_v43 }
 0x44e   :  { %7604 = vmatprep.subr.bf16.mxu1 %v9550_v36  ;;  %v9622_v36 = vcombine.high %v962_v48, %v966_v52 }
 0x44f   :  { %8563 = vmatpush1.bf16.msra.mxu0 %v10275_v5  ;;  %v10302_v5 = vld [vmem:[#allocation8 + $0x1b0] ss:$8 sps:$4 sm:$0xff]  }
 0x450   :  { %8564 = vmatprep.subr.bf16.mxu0 %v10280_v15  ;;  %v10307_v15 = vld [vmem:[#allocation8 + $0x1c4] ss:$8 sps:$4 sm:$0xff]  }
 0x451   :  { %7605 = vmatpush1.bf16.msra.mxu1 %v9549_v55  ;;  %v9621_v55 = vcombine.low %v962_v48, %v966_v52  ;;  %v10326_v52 = vld [vmem:[#allocation8 + $0x230] ss:$8 sps:$4 sm:$0xff]  }
 0x452   :  { %7606 = vmatprep.subr.bf16.mxu1 %v9558_v58  ;;  %v9630_v58 = vcombine.high %v970_v33, %v974_v54 }
 0x453   :  { %8565 = vmatpush1.bf16.msra.mxu0 %v10278_v57  ;;  %v10305_v57 = vld [vmem:[#allocation8 + $0x1c0] ss:$8 sps:$4 sm:$0xff]  }
 0x454   :  { %8566 = vmatprep.subr.bf16.mxu0 %v10283_v60  ;;  %v1259_v60 = vsub.s32 2, %v10756_v44 }
 0x455   :  { %7607 = vmatpush1.bf16.msra.mxu1 %v9557_v6  ;;  %v982_v6 = vld [vmem:[#allocation5 + $0x17b8] sm:$0xff] }
 0x456   :  { %7608 = vmatprep.subr.bf16.mxu1 %v9566_v7  ;;  %v10308_v7 = vld [vmem:[#allocation8 + $0x1d0] ss:$8 sps:$4 sm:$0xff]   ;;  %v1260_v46 = vrot.slane %v10948_v17, %v1259_v60 }
 0x457   :  { %8567 = vmatpush1.bf16.msra.mxu0 %v10281_v14  ;;  %v9629_v14 = vcombine.low %v970_v33, %v974_v54  ;;  %v10329_v33 = vld [vmem:[#allocation8 + $0x240] ss:$8 sps:$4 sm:$0xff]   ;;  %v1042_v54 = vld [vmem:[#allocation5 + $0x1998] sm:$0xff] }
 0x458   :  { %8568 = vmatprep.subr.bf16.mxu0 %v10286_v3  ;;  %v9638_v3 = vcombine.high %v978_v63, %v982_v6  ;;  %v10074_v26 = vadd.f32 %v10939_v49, %v1260_v46  ;;  %v10335_v46 = vld [vmem:[#allocation8 + $0x260] ss:$8 sps:$4 sm:$0xff]  }
 0x459   :  { %7609 = vmatpush1.bf16.msra.mxu1 %v9565_v11  ;;  %v986_v11 = vld [vmem:[#allocation5 + $0x17d8] sm:$0xff] }
 0x45a   :  { %7610 = vmatprep.subr.bf16.mxu1 %v9574_v61  ;;  %v9637_v61 = vcombine.low %v978_v63, %v982_v6  ;;  %v1050_v63 = vld [vmem:[#allocation5 + $0x19d8] sm:$0xff] }
 0x45b   :  { %8569 = vmatpush1.bf16.msra.mxu0 %v10284_v13  ;;  %v990_v13 = vld [vmem:[#allocation5 + $0x17f8] sm:$0xff] }
 0x45c   :  { %8570 = vmatprep.subr.bf16.mxu0 %v10289_v24  ;;  %v10311_v24 = vld [vmem:[#allocation8 + $0x1e0] ss:$8 sps:$4 sm:$0xff]   ;;  %v9646_v12 = vcombine.high %v986_v11, %v990_v13  ;;  %v1054_v6 = vld [vmem:[#allocation5 + $0x19f8] sm:$0xff] }
 0x45d   :  { %7611 = vmatpush1.bf16.msra.mxu1 %v9573_v38  ;;  %v10316_v38 = vld [vmem:[#allocation8 + $0x1f4] ss:$8 sps:$4 sm:$0xff]  }
 0x45e   :  { %7612 = vmatprep.subr.bf16.mxu1 %v9582_v19  ;;  %v998_v19 = vld [vmem:[#allocation5 + $0x1838] sm:$0xff] }
 0x45f   :  { %8571 = vmatpush1.bf16.msra.mxu0 %v10287_v18  ;;  %v994_v18 = vld [vmem:[#allocation5 + $0x1818] sm:$0xff] }
 0x460   :  { %8572 = vmatprep.subr.bf16.mxu0 %v10292_v20  ;;  %v9645_v20 = vcombine.low %v986_v11, %v990_v13  ;;  %v9654_v25 = vcombine.high %v994_v18, %v998_v19  ;;  %v9653_v27 = vcombine.low %v994_v18, %v998_v19  ;;  %v1062_v11 = vld [vmem:[#allocation5 + $0x1a38] sm:$0xff]  ;;  %v10343_v18 = vld [vmem:[#allocation8 + $0x284] ss:$8 sps:$4 sm:$0xff]  }
 0x461   :  { %7613 = vmatpush1.bf16.msra.mxu1 %v9581_v59  ;;  %v7723_v59 = vmax.f32 %v10074_v26, 0.0  ;;  %v10340_v13 = vld [vmem:[#allocation8 + $0x274] ss:$8 sps:$4 sm:$0xff]  }
 0x462   :  { %7614 = vmatprep.subr.bf16.mxu1 %v9590_v23  ;;  %v1006_v23 = vld [vmem:[#allocation5 + $0x1878] sm:$0xff] }
 0x463   :  { %8573 = vmatpush1.bf16.msra.mxu0 %v10290_v0  ;;  %v1002_v0 = vld [vmem:[#allocation5 + $0x1858] sm:$0xff] }
 0x464   :  { %8574 = vmatprep.subr.bf16.mxu0 %v10295_v42  ;;  %v10319_v42 = vld [vmem:[#allocation8 + $0x204] ss:$8 sps:$4 sm:$0xff]   ;;  %v9662_v49 = vcombine.high %v1002_v0, %v1006_v23  ;;  %v9661_v32 = vcombine.low %v1002_v0, %v1006_v23  ;;  %v1066_v26 = vld [vmem:[#allocation5 + $0x1a58] sm:$0xff] }
 0x465   :  { %7615 = vmatpush1.bf16.msra.mxu1 %v9589_v28  ;;  %v7731_v28 = vpack.c.bf16 %v7723_v59, %v7723_v59  ;;  %v1078_v59 = vld [vmem:[#allocation5 + $0x1ab8] sm:$0xff] }
 0x466   :  { %7616 = vmatprep.subr.bf16.mxu1 %v9598_v30  ;;  %v1014_v30 = vld [vmem:[#allocation5 + $0x18b8] sm:$0xff] }
 0x467   :  { %8575 = vmatpush1.bf16.msra.mxu0 %v10293_v29  ;;  %v1010_v29 = vld [vmem:[#allocation5 + $0x1898] sm:$0xff] }
 0x468   :  { %8576 = vmatprep.subr.bf16.mxu0 %v10298_v31  ;;  %v10322_v31 = vld [vmem:[#allocation8 + $0x214] ss:$8 sps:$4 sm:$0xff]   ;;  %v9670_v34 = vcombine.high %v1010_v29, %v1014_v30  ;;  %v9669_v40 = vcombine.low %v1010_v29, %v1014_v30 }
 0x469   :  { %7617 = vmatpush1.bf16.msra.mxu1 %v9597_v2  ;;  %v10320_v2 = vld [vmem:[#allocation8 + $0x210] ss:$8 sps:$4 sm:$0xff]   ;;  %v10346_v0 = vld [vmem:[#allocation8 + $0x294] ss:$8 sps:$4 sm:$0xff]  }
 0x46a   :  { %7618 = vmatprep.subr.bf16.mxu1 %v9606_v35  ;;  %v1022_v35 = vld [vmem:[#allocation5 + $0x18f8] sm:$0xff] }
 0x46b   :  { %8577 = vmatpush1.bf16.msra.mxu0 %v10296_v51  ;;  %v1018_v51 = vld [vmem:[#allocation5 + $0x18d8] sm:$0xff] }
 0x46c   :  { %8578 = vmatprep.subr.bf16.mxu0 %v10301_v39  ;;  %v10325_v39 = vld [vmem:[#allocation8 + $0x224] ss:$8 sps:$4 sm:$0xff]   ;;  %v9678_v43 = vcombine.high %v1018_v51, %v1022_v35 }
 0x46d   :  { %7619 = vmatpush1.bf16.msra.mxu1 %v9605_v37  ;;  %v10323_v37 = vld [vmem:[#allocation8 + $0x220] ss:$8 sps:$4 sm:$0xff]  }
 0x46e   :  { %7620 = vmatprep.subr.bf16.mxu1 %v9614_v56  ;;  %v10328_v56 = vld [vmem:[#allocation8 + $0x234] ss:$8 sps:$4 sm:$0xff]  }
 0x46f   :  { %8579 = vmatpush1.bf16.msra.mxu0 %v10299_v41  ;;  %v1030_v41 = vld [vmem:[#allocation5 + $0x1938] sm:$0xff] }
 0x470   :  { %8580 = vmatprep.subr.bf16.mxu0 %v10304_v45  ;;  %v9677_v45 = vcombine.low %v1018_v51, %v1022_v35 }
 0x471   :  { %7621 = vmatpush1.bf16.msra.mxu1 %v9613_v53  ;;  %v1034_v53 = vld [vmem:[#allocation5 + $0x1958] sm:$0xff] }
 0x472   :  { %7622 = vmatprep.subr.bf16.mxu1 %v9622_v36 }
 0x473   :  { %8581 = vmatpush1.bf16.msra.mxu0 %v10302_v5  ;;  %v1038_v5 = vld [vmem:[#allocation5 + $0x1978] sm:$0xff] }
 0x474   :  { %8582 = vmatprep.subr.bf16.mxu0 %v10307_v15  ;;  %v9694_v15 = vcombine.high %v1034_v53, %v1038_v5 }
 0x475   :  { %7623 = vmatpush1.bf16.msra.mxu1 %v9621_v55  ;;  %v1046_v55 = vld [vmem:[#allocation5 + $0x19b8] sm:$0xff] }
 0x476   :  { %7624 = vmatprep.subr.bf16.mxu1 %v9630_v58  ;;  %v9693_v58 = vcombine.low %v1034_v53, %v1038_v5  ;;  %v9702_v60 = vcombine.high %v1042_v54, %v1046_v55 }
 0x477   :  { %8583 = vmatpush1.bf16.msra.mxu0 %v10305_v57  ;;  %v10334_v57 = vld [vmem:[#allocation8 + $0x254] ss:$8 sps:$4 sm:$0xff]  }
 0x478   :  { %8584 = vmatprep.subr.bf16.mxu0 %v10310_v1  ;;  %v10332_v1 = vld [vmem:[#allocation8 + $0x250] ss:$8 sps:$4 sm:$0xff]  }
 0x479   :  { %7625 = vmatpush1.bf16.msra.mxu1 %v9629_v14  ;;  %v10337_v14 = vld [vmem:[#allocation8 + $0x264] ss:$8 sps:$4 sm:$0xff]  }
 0x47a   :  { %7626 = vmatprep.subr.bf16.mxu1 %v9638_v3  ;;  %v9710_v3 = vcombine.high %v1050_v63, %v1054_v6 }
 0x47b   :  { %8585 = vmatpush1.bf16.msra.mxu0 %v10308_v7  ;;  %v9701_v7 = vcombine.low %v1042_v54, %v1046_v55 }
 0x47c   :  { %8586 = vmatprep.subr.bf16.mxu0 %v10313_v8  ;;  %v1058_v8 = vld [vmem:[#allocation5 + $0x1a18] sm:$0xff] }
 0x47d   :  { %7627 = vmatpush1.bf16.msra.mxu1 %v9637_v61  ;;  %v9709_v61 = vcombine.low %v1050_v63, %v1054_v6  ;;  %v9717_v19 = vcombine.low %v1058_v8, %v1062_v11 }
 0x47e   :  { %7628 = vmatprep.subr.bf16.mxu1 %v9646_v12  ;;  %v10338_v12 = vld [vmem:[#allocation8 + $0x270] ss:$8 sps:$4 sm:$0xff]  }
 0x47f   :  { %8587 = vmatpush1.bf16.msra.mxu0 %v10311_v24  ;;  %v9718_v24 = vcombine.high %v1058_v8, %v1062_v11 }
 0x480   :  { %8588 = vmatprep.subr.bf16.mxu0 %v10316_v38  ;;  %v1070_v38 = vld [vmem:[#allocation5 + $0x1a78] sm:$0xff] }
 0x481   :  { %7629 = vmatpush1.bf16.msra.mxu1 %v9645_v20  ;;  %v9726_v20 = vcombine.high %v1066_v26, %v1070_v38  ;;  %v9725_v23 = vcombine.low %v1066_v26, %v1070_v38  ;;  %v1146_v26 = vld [vmem:[#allocation5 + $0x1cd8] sm:$0xff] }
 0x482   :  { %7639 = vmatprep.subr.bf16.mxu1 %v9654_v25  ;;  %v1074_v25 = vld [vmem:[#allocation5 + $0x1a98] sm:$0xff] }
 0x483   :  { %8589 = vmatpush1.bf16.msra.mxu0 %v10314_v21  ;;  %v10341_v21 = vld [vmem:[#allocation8 + $0x280] ss:$8 sps:$4 sm:$0xff]   ;;  %v9733_v29 = vcombine.low %v1074_v25, %v1078_v59  ;;  %v1150_v38 = vld [vmem:[#allocation5 + $0x1cf8] sm:$0xff] }
 0x484   :  { %8599 = vmatprep.subr.bf16.mxu0 %v10319_v42  ;;  %7631 = vmatmul.mubr.bf16.vlgmr.msra.gmra.mrb[8].mxu1 %v10862_v16  ;;  %v1026_v16 = vld [vmem:[#allocation5 + $0x1918] sm:$0xff]  ;;  %v9734_v42 = vcombine.high %v1074_v25, %v1078_v59  ;;  %v9805_v25 = vcombine.low %v1146_v26, %v1150_v38 }
 0x485   :  { %7640 = vmatpush1.bf16.msra.mxu1 %v9653_v27  ;;  %7671 = vmatprep.mubr.bf16.mxu1 %v10864_v22  ;;  %v9686_v48 = vcombine.high %v1026_v16, %v1030_v41  ;;  %v10331_v22 = vld [vmem:[#allocation8 + $0x244] ss:$8 sps:$4 sm:$0xff]   ;;  %v9685_v36 = vcombine.low %v1026_v16, %v1030_v41  ;;  %v10344_v27 = vld [vmem:[#allocation8 + $0x290] ss:$8 sps:$4 sm:$0xff]  }
 0x486   :  { %8591 = vmatmul.mubr.bf16.vlgmr.msra.gmra.mrb[8].mxu0 %v7731_v28  ;;  %7641 = vmatprep.subr.bf16.mxu1 %v9662_v49  ;;  %v1082_v49 = vld [vmem:[#allocation5 + $0x1ad8] sm:$0xff]  ;;  %v10349_v28 = vld [vmem:[#allocation8 + $0x2a4] ss:$8 sps:$4 sm:$0xff]  }
 0x487   :  { %8600 = vmatpush1.bf16.msra.mxu0 %v10317_v47  ;;  %v1086_v47 = vld [vmem:[#allocation5 + $0x1af8] sm:$0xff] }
 0x488   :  { %8601 = vmatprep.subr.bf16.mxu0 %v10322_v31  ;;  %v9742_v30 = vcombine.high %v1082_v49, %v1086_v47  ;;  %v10347_v31 = vld [vmem:[#allocation8 + $0x2a0] ss:$8 sps:$4 sm:$0xff]   ;;  %v9741_v51 = vcombine.low %v1082_v49, %v1086_v47  ;;  %v1170_v49 = vld [vmem:[#allocation5 + $0x1d98] sm:$0xff] }
 0x489   :  { %7642 = vmatpush1.bf16.msra.mxu1 %v9661_v32  ;;  %v1090_v32 = vld [vmem:[#allocation5 + $0x1b18] sm:$0xff] }
 0x48a   :  { %7643 = vmatprep.subr.bf16.mxu1 %v9670_v34  ;;  %v1094_v34 = vld [vmem:[#allocation5 + $0x1b38] sm:$0xff] }
 0x48b   :  { %8602 = vmatpush1.bf16.msra.mxu0 %v10320_v2  ;;  %v10352_v2 = vld [vmem:[#allocation8 + $0x2b4] ss:$8 sps:$4 sm:$0xff]   ;;  %v9750_v35 = vcombine.high %v1090_v32, %v1094_v34  ;;  %v9749_v16 = vcombine.low %v1090_v32, %v1094_v34 }
 0x48c   :  { %8603 = vmatprep.subr.bf16.mxu0 %v10325_v39  ;;  %v10350_v39 = vld [vmem:[#allocation8 + $0x2b0] ss:$8 sps:$4 sm:$0xff]  }
 0x48d   :  { %7644 = vmatpush1.bf16.msra.mxu1 %v9669_v40  ;;  %v1098_v40 = vld [vmem:[#allocation5 + $0x1b58] sm:$0xff] }
 0x48e   :  { %7645 = vmatprep.subr.bf16.mxu1 %v9678_v43  ;;  %v1102_v43 = vld [vmem:[#allocation5 + $0x1b78] sm:$0xff] }
 0x48f   :  { %8604 = vmatpush1.bf16.msra.mxu0 %v10323_v37  ;;  %v10355_v37 = vld [vmem:[#allocation8 + $0x2c4] ss:$8 sps:$4 sm:$0xff]   ;;  %v9758_v41 = vcombine.high %v1098_v40, %v1102_v43  ;;  %v9757_v53 = vcombine.low %v1098_v40, %v1102_v43  ;;  %v1174_v47 = vld [vmem:[#allocation5 + $0x1db8] sm:$0xff] }
 0x490   :  { %8605 = vmatprep.subr.bf16.mxu0 %v10328_v56  ;;  %v10353_v56 = vld [vmem:[#allocation8 + $0x2c0] ss:$8 sps:$4 sm:$0xff]   ;;  %v1178_v32 = vld [vmem:[#allocation5 + $0x1dd8] sm:$0xff] }
 0x491   :  { %7646 = vmatpush1.bf16.msra.mxu1 %v9677_v45  ;;  %v1106_v45 = vld [vmem:[#allocation5 + $0x1b98] sm:$0xff] }
 0x492   :  { %7647 = vmatprep.subr.bf16.mxu1 %v9686_v48  ;;  %v1110_v48 = vld [vmem:[#allocation5 + $0x1bb8] sm:$0xff] }
 0x493   :  { %8606 = vmatpush1.bf16.msra.mxu0 %v10326_v52  ;;  %v10358_v52 = vld [vmem:[#allocation8 + $0x2d4] ss:$8 sps:$4 sm:$0xff]   ;;  %v9766_v5 = vcombine.high %v1106_v45, %v1110_v48  ;;  %v9765_v54 = vcombine.low %v1106_v45, %v1110_v48 }
 0x494   :  { %8607 = vmatprep.subr.bf16.mxu0 %v10331_v22  ;;  %v10356_v22 = vld [vmem:[#allocation8 + $0x2d0] ss:$8 sps:$4 sm:$0xff]  }
 0x495   :  { %7648 = vmatpush1.bf16.msra.mxu1 %v9685_v36  ;;  %v1114_v36 = vld [vmem:[#allocation5 + $0x1bd8] sm:$0xff] }
 0x496   :  { %7649 = vmatprep.subr.bf16.mxu1 %v9694_v15  ;;  %v1118_v15 = vld [vmem:[#allocation5 + $0x1bf8] sm:$0xff] }
 0x497   :  { %8608 = vmatpush1.bf16.msra.mxu0 %v10329_v33  ;;  %v10361_v33 = vld [vmem:[#allocation8 + $0x2e4] ss:$8 sps:$4 sm:$0xff]   ;;  %v9774_v55 = vcombine.high %v1114_v36, %v1118_v15  ;;  %v9773_v63 = vcombine.low %v1114_v36, %v1118_v15  ;;  %v1182_v34 = vld [vmem:[#allocation5 + $0x1df8] sm:$0xff] }
 0x498   :  { %8609 = vmatprep.subr.bf16.mxu0 %v10334_v57  ;;  %v10359_v57 = vld [vmem:[#allocation8 + $0x2e0] ss:$8 sps:$4 sm:$0xff]   ;;  %v1190_v45 = vld [vmem:[#allocation5 + $0x1e38] sm:$0xff] }
 0x499   :  { %7650 = vmatpush1.bf16.msra.mxu1 %v9693_v58  ;;  %v1122_v58 = vld [vmem:[#allocation5 + $0x1c18] sm:$0xff] }
 0x49a   :  { %7651 = vmatprep.subr.bf16.mxu1 %v9702_v60  ;;  %v1126_v60 = vld [vmem:[#allocation5 + $0x1c38] sm:$0xff] }
 0x49b   :  { %8610 = vmatpush1.bf16.msra.mxu0 %v10332_v1  ;;  %v10364_v1 = vld [vmem:[#allocation8 + $0x2f4] ss:$8 sps:$4 sm:$0xff]   ;;  %v9782_v6 = vcombine.high %v1122_v58, %v1126_v60  ;;  %v9781_v8 = vcombine.low %v1122_v58, %v1126_v60 }
 0x49c   :  { %8611 = vmatprep.subr.bf16.mxu0 %v10337_v14  ;;  %v10362_v14 = vld [vmem:[#allocation8 + $0x2f0] ss:$8 sps:$4 sm:$0xff]  }
 0x49d   :  { %7652 = vmatpush1.bf16.msra.mxu1 %v9701_v7  ;;  %v1130_v7 = vld [vmem:[#allocation5 + $0x1c58] sm:$0xff] }
 0x49e   :  { %7653 = vmatprep.subr.bf16.mxu1 %v9710_v3  ;;  %v1134_v3 = vld [vmem:[#allocation5 + $0x1c78] sm:$0xff] }
 0x49f   :  { %8612 = vmatpush1.bf16.msra.mxu0 %v10335_v46  ;;  %v10367_v46 = vld [vmem:[#allocation8 + $0x304] ss:$8 sps:$4 sm:$0xff]   ;;  %v9790_v11 = vcombine.high %v1130_v7, %v1134_v3  ;;  %v1194_v36 = vld [vmem:[#allocation5 + $0x1e58] sm:$0xff] }
 0x4a0   :  { %8613 = vmatprep.subr.bf16.mxu0 %v10340_v13  ;;  %v1138_v13 = vld [vmem:[#allocation5 + $0x1c98] sm:$0xff] }
 0x4a1   :  { %7654 = vmatpush1.bf16.msra.mxu1 %v9709_v61  ;;  %v1142_v61 = vld [vmem:[#allocation5 + $0x1cb8] sm:$0xff] }
 0x4a2   :  { %7655 = vmatprep.subr.bf16.mxu1 %v9718_v24  ;;  %v9789_v24 = vcombine.low %v1130_v7, %v1134_v3  ;;  %v1198_v15 = vld [vmem:[#allocation5 + $0x1e78] sm:$0xff] }
 0x4a3   :  { %8614 = vmatpush1.bf16.msra.mxu0 %v10338_v12  ;;  %v9798_v12 = vcombine.high %v1138_v13, %v1142_v61  ;;  %v1202_v58 = vld [vmem:[#allocation5 + $0x1e98] sm:$0xff] }
 0x4a4   :  { %8615 = vmatprep.subr.bf16.mxu0 %v10343_v18  ;;  %v9797_v18 = vcombine.low %v1138_v13, %v1142_v61  ;;  %v1206_v60 = vld [vmem:[#allocation5 + $0x1eb8] sm:$0xff] }
 0x4a5   :  { %7656 = vmatpush1.bf16.msra.mxu1 %v9717_v19  ;;  %v9806_v19 = vcombine.high %v1146_v26, %v1150_v38  ;;  %v1210_v7 = vld [vmem:[#allocation5 + $0x1ed8] sm:$0xff] }
 0x4a6   :  { %7657 = vmatprep.subr.bf16.mxu1 %v9726_v20  ;;  %v1154_v20 = vld [vmem:[#allocation5 + $0x1d18] sm:$0xff] }
 0x4a7   :  { %8616 = vmatpush1.bf16.msra.mxu0 %v10341_v21  ;;  %v1158_v21 = vld [vmem:[#allocation5 + $0x1d38] sm:$0xff] }
 0x4a8   :  { %8617 = vmatprep.subr.bf16.mxu0 %v10346_v0  ;;  %v9814_v59 = vcombine.high %v1154_v20, %v1158_v21  ;;  %v1162_v0 = vld [vmem:[#allocation5 + $0x1d58] sm:$0xff] }
 0x4a9   :  { %7658 = vmatpush1.bf16.msra.mxu1 %v9725_v23  ;;  %v9813_v23 = vcombine.low %v1154_v20, %v1158_v21  ;;  %v1214_v3 = vld [vmem:[#allocation5 + $0x1ef8] sm:$0xff] }
 0x4aa   :  { %7659 = vmatprep.subr.bf16.mxu1 %v9734_v42  ;;  %v1271_v42 = vsub.s32 5, %v10756_v44  ;;  %v10374_v13 = vld [vmem:[#allocation8 + $0x330] ss:$8 sps:$4 sm:$0xff]   ;;  %v9869_v26 = vcombine.low %v1210_v7, %v1214_v3  ;;  %v10382_v21 = vld [vmem:[#allocation8 + $0x354] ss:$8 sps:$4 sm:$0xff]  }
 0x4ab   :  { %8618 = vmatpush1.bf16.msra.mxu0 %v10344_v27  ;;  %v1218_v61 = vld [vmem:[#allocation5 + $0x1f18] sm:$0xff] }
 0x4ac   :  { %8619 = vmatprep.subr.bf16.mxu0 %v10349_v28  ;;  %v1230_v20 = vld [vmem:[#allocation5 + $0x1f78] sm:$0xff] }
 0x4ad   :  { %7660 = vmatpush1.bf16.msra.mxu1 %v9733_v29 }
 0x4ae   :  { %7661 = vmatprep.subr.bf16.mxu1 %v9742_v30  ;;  %v1272_v30 = vrot.slane %v10948_v17, %v1271_v42 }
 0x4af   :  { %8620 = vmatpush1.bf16.msra.mxu0 %v10347_v31  ;;  %v9830_v31 = vcombine.high %v1170_v49, %v1174_v47 }
 0x4b0   :  { %8621 = vmatprep.subr.bf16.mxu0 %v10352_v2 }
 0x4b1   :  { %7662 = vmatpush1.bf16.msra.mxu1 %v9741_v51 }
 0x4b2   :  { %7663 = vmatprep.subr.bf16.mxu1 %v9750_v35 }
 0x4b3   :  { %8622 = vmatpush1.bf16.msra.mxu0 %v10350_v39  ;;  %v9829_v39 = vcombine.low %v1170_v49, %v1174_v47  ;;  %v10383_v49 = vld [vmem:[#allocation8 + $0x360] ss:$8 sps:$4 sm:$0xff]   ;;  %v1242_v47 = vld [vmem:[#allocation5 + $0x1fd8] sm:$0xff] }
 0x4b4   :  { %8623 = vmatprep.subr.bf16.mxu0 %v10355_v37  ;;  %v9838_v37 = vcombine.high %v1178_v32, %v1182_v34 }
 0x4b5   :  { %7664 = vmatpush1.bf16.msra.mxu1 %v9749_v16 }
 0x4b6   :  { %7665 = vmatprep.subr.bf16.mxu1 %v9758_v41 }
 0x4b7   :  { %8624 = vmatpush1.bf16.msra.mxu0 %v10353_v56  ;;  %v1186_v56 = vld [vmem:[#allocation5 + $0x1e18] sm:$0xff] }
 0x4b8   :  { %8625 = vmatprep.subr.bf16.mxu0 %v10358_v52 }
 0x4b9   :  { %7666 = vmatpush1.bf16.msra.mxu1 %v9757_v53  ;;  %v9846_v53 = vcombine.high %v1186_v56, %v1190_v45 }
 0x4ba   :  { %7667 = vmatprep.subr.bf16.mxu1 %v9766_v5  ;;  %v10365_v5 = vld [vmem:[#allocation8 + $0x300] ss:$8 sps:$4 sm:$0xff]  }
 0x4bb   :  { %8626 = vmatpush1.bf16.msra.mxu0 %v10356_v22 }
 0x4bc   :  { %8627 = vmatprep.subr.bf16.mxu0 %v10361_v33  ;;  %v10370_v33 = vld [vmem:[#allocation8 + $0x314] ss:$8 sps:$4 sm:$0xff]  }
 0x4bd   :  { %7668 = vmatpush1.bf16.msra.mxu1 %v9765_v54  ;;  %v9845_v54 = vcombine.low %v1186_v56, %v1190_v45  ;;  %v10401_v56 = vld [vmem:[#allocation8 + $0x3c0] ss:$8 sps:$4 sm:$0xff]   ;;  %v10406_v45 = vld [vmem:[#allocation8 + $0x3d4] ss:$8 sps:$4 sm:$0xff]  }
 0x4be   :  { %7669 = vmatprep.subr.bf16.mxu1 %v9774_v55  ;;  %v9854_v55 = vcombine.high %v1194_v36, %v1198_v15 }
 0x4bf   :  { %8628 = vmatpush1.bf16.msra.mxu0 %v10359_v57  ;;  %v10368_v57 = vld [vmem:[#allocation8 + $0x310] ss:$8 sps:$4 sm:$0xff]  }
 0x4c0   :  { %8629 = vmatprep.subr.bf16.mxu0 %v10364_v1  ;;  %v10373_v1 = vld [vmem:[#allocation8 + $0x324] ss:$8 sps:$4 sm:$0xff]  }
 0x4c1   :  { %7670 = vmatpush1.bf16.msra.mxu1 %v9773_v63  ;;  %v9853_v63 = vcombine.low %v1194_v36, %v1198_v15  ;;  %v10415_v36 = vld [vmem:[#allocation11 + $0x48] sm:$0xff]  }
 0x4c2   :  { %7680 = vmatprep.subr.bf16.mxu1 %v9782_v6  ;;  %v9862_v6 = vcombine.high %v1202_v58, %v1206_v60  ;;  %v10416_v15 = vld [vmem:[#allocation11 + $0x8] sm:$0xff]  }
 0x4c3   :  { %8630 = vmatpush1.bf16.msra.mxu0 %v10362_v14  ;;  %v10371_v14 = vld [vmem:[#allocation8 + $0x320] ss:$8 sps:$4 sm:$0xff]  }
 0x4c4   :  { %8640 = vmatprep.subr.bf16.mxu0 %v10367_v46  ;;  %7672 = vmatmul.mubr.bf16.vlgmr.msra.gmra.mrb[8].mxu1 %v10879_v62  ;;  %v1166_v62 = vld [vmem:[#allocation5 + $0x1d78] sm:$0xff] }
 0x4c5   :  { %7681 = vmatpush1.bf16.msra.mxu1 %v9781_v8  ;;  %7712 = vmatprep.mubr.bf16.mxu1 %v10881_v9  ;;  %v1267_v9 = vsub.s32 4, %v10756_v44  ;;  %v9822_v27 = vcombine.high %v1162_v0, %v1166_v62  ;;  %v9821_v29 = vcombine.low %v1162_v0, %v1166_v62  ;;  %v10376_v46 = vld [vmem:[#allocation8 + $0x334] ss:$8 sps:$4 sm:$0xff]   ;;  %v9861_v8 = vcombine.low %v1202_v58, %v1206_v60  ;;  %v10380_v0 = vld [vmem:[#allocation8 + $0x350] ss:$8 sps:$4 sm:$0xff]   ;;  %v10421_v58 = vld [vmem:[#allocation11 + $0x60] sm:$0xff]  }
 0x4c6   :  { %7682 = vmatprep.subr.bf16.mxu1 %v9790_v11  ;;  %v9870_v11 = vcombine.high %v1210_v7, %v1214_v3  ;;  %v1234_v62 = vld [vmem:[#allocation5 + $0x1f98] sm:$0xff]  ;;  %v10422_v60 = vld [vmem:[#allocation11 + $0x20] sm:$0xff]   ;;  %v10430_v7 = vld [vmem:[#allocation7] sm:$0xff] }
 0x4c7   :  { %v1268_v28 = vrot.slane %v10948_v17, %v1267_v9  ;;  %v9837_v17 = vcombine.low %v1178_v32, %v1182_v34  ;;  %v10385_v9 = vld [vmem:[#allocation8 + $0x364] ss:$8 sps:$4 sm:$0xff]   ;;  %v10386_v32 = vld [vmem:[#allocation8 + $0x370] ss:$8 sps:$4 sm:$0xff]  }
 0x4c8   :  { %v10391_v34 = vld [vmem:[#allocation8 + $0x384] ss:$8 sps:$4 sm:$0xff]  }
 0x4c9   :  { %7683 = vmatpush1.bf16.msra.mxu1 %v9789_v24  ;;  %v1222_v24 = vld [vmem:[#allocation5 + $0x1f38] sm:$0xff] }
 0x4ca   :  { %7684 = vmatprep.subr.bf16.mxu1 %v9798_v12  ;;  %v10379_v12 = vld [vmem:[#allocation8 + $0x344] ss:$8 sps:$4 sm:$0xff]   ;;  %v9878_v38 = vcombine.high %v1218_v61, %v1222_v24 }
 0x4cd   :  { %7685 = vmatpush1.bf16.msra.mxu1 %v9797_v18  ;;  %v10377_v18 = vld [vmem:[#allocation8 + $0x340] ss:$8 sps:$4 sm:$0xff]  }
 0x4ce   :  { %7686 = vmatprep.subr.bf16.mxu1 %v9806_v19  ;;  %v1226_v19 = vld [vmem:[#allocation5 + $0x1f58] sm:$0xff] }
 0x4cf   :  { %v9885_v42 = vcombine.low %v1226_v19, %v1230_v20 }
 0x4d1   :  { %7687 = vmatpush1.bf16.msra.mxu1 %v9805_v25  ;;  %v9877_v25 = vcombine.low %v1218_v61, %v1222_v24 }
 0x4d2   :  { %7688 = vmatprep.subr.bf16.mxu1 %v9814_v59  ;;  %v9886_v59 = vcombine.high %v1226_v19, %v1230_v20  ;;  %v10425_v20 = vld [vmem:[#allocation11 + $0x70] sm:$0xff]  }
 0x4d5   :  { %7689 = vmatpush1.bf16.msra.mxu1 %v9813_v23  ;;  %v1238_v23 = vld [vmem:[#allocation5 + $0x1fb8] sm:$0xff] }
 0x4d6   :  { %7690 = vmatprep.subr.bf16.mxu1 %v9822_v27  ;;  %v9894_v27 = vcombine.high %v1234_v62, %v1238_v23 }
 0x4d9   :  { %v7386_v2 = vpop.f32.mrb[4].mxu0  ;;  %7691 = vmatpush1.bf16.msra.mxu1 %v9821_v29  ;;  %v10388_v29 = vld [vmem:[#allocation8 + $0x374] ss:$8 sps:$4 sm:$0xff]  }
 0x4da   :  { %v10076_v51 = vadd.f32 %v7386_v2, %v1268_v28  ;;  %v7388_v35 = vpop.f32.mrb[5].mxu0  ;;  %7692 = vmatprep.subr.bf16.mxu1 %v9830_v31  ;;  %v1246_v28 = vld [vmem:[#allocation5 + $0x1ff8] sm:$0xff] }
 0x4db   :  { %v10077_v40 = vadd.f32 %v7388_v35, %v1272_v30  ;;  %v7390_v43 = vpop.f32.mrb[6].mxu0  ;;  %v9893_v30 = vcombine.low %v1234_v62, %v1238_v23  ;;  %v9902_v31 = vcombine.high %v1242_v47, %v1246_v28  ;;  %v9901_v2 = vcombine.low %v1242_v47, %v1246_v28  ;;  %v10394_v35 = vld [vmem:[#allocation8 + $0x394] ss:$8 sps:$4 sm:$0xff]  }
 0x4dc   :  { %v7725_v16 = vmax.f32 %v10076_v51, 0.0  ;;  %v7391_v41 = vpop.f32.mrb[7].mxu0  ;;  %v10389_v51 = vld [vmem:[#allocation8 + $0x380] ss:$8 sps:$4 sm:$0xff]  }
 0x4dd   :  { %v7726_v48 = vmax.f32 %v10077_v40, 0.0  ;;  %7693 = vmatpush1.bf16.msra.mxu1 %v9829_v39  ;;  %v10392_v39 = vld [vmem:[#allocation8 + $0x390] ss:$8 sps:$4 sm:$0xff]   ;;  %v10397_v40 = vld [vmem:[#allocation8 + $0x3a4] ss:$8 sps:$4 sm:$0xff]  }
 0x4de   :  { %7694 = vmatprep.subr.bf16.mxu1 %v9838_v37  ;;  %v7733_v22 = vpack.c.bf16 %v7725_v16, %v7725_v16  ;;  %v10395_v43 = vld [vmem:[#allocation8 + $0x3a0] ss:$8 sps:$4 sm:$0xff]   ;;  %v10400_v37 = vld [vmem:[#allocation8 + $0x3b4] ss:$8 sps:$4 sm:$0xff]   ;;  %v10398_v16 = vld [vmem:[#allocation8 + $0x3b0] ss:$8 sps:$4 sm:$0xff]  }
 0x4df   :  { %v7734_v52 = vpack.c.bf16 %v7726_v48, %v7726_v48  ;;  %v10403_v41 = vld [vmem:[#allocation8 + $0x3c4] ss:$8 sps:$4 sm:$0xff]   ;;  %v10404_v48 = vld [vmem:[#allocation8 + $0x3d0] ss:$8 sps:$4 sm:$0xff]  }
 0x4e1   :  { %8631 = vmatprep.mubr.bf16.mxu0 %v7734_v52  ;;  %7695 = vmatpush1.bf16.msra.mxu1 %v9837_v17  ;;  %v10409_v17 = vld [vmem:[#allocation8 + $0x3e4] ss:$8 sps:$4 sm:$0xff]   ;;  %v10407_v52 = vld [vmem:[#allocation8 + $0x3e0] ss:$8 sps:$4 sm:$0xff]  }
 0x4e2   :  { %8632 = vmatmul.mubr.bf16.vlgmr.msra.gmra.mrb[8].mxu0 %v7733_v22  ;;  %7696 = vmatprep.subr.bf16.mxu1 %v9846_v53  ;;  %v10410_v53 = vld [vmem:[#allocation8 + $0x3f0] ss:$8 sps:$4 sm:$0xff]   ;;  %v10414_v22 = vld [vmem:[#allocation11] sm:$0xff]  }
 0x4e3   :  { %8641 = vmatpush1.bf16.msra.mxu0 %v10365_v5  ;;  %v10413_v5 = vld [vmem:[#allocation11 + $0x40] sm:$0xff]  }
 0x4e4   :  { %8642 = vmatprep.subr.bf16.mxu0 %v10370_v33  ;;  %v10417_v33 = vld [vmem:[#allocation11 + $0x50] sm:$0xff]  }
 0x4e5   :  { %7697 = vmatpush1.bf16.msra.mxu1 %v9845_v54  ;;  %v10418_v54 = vld [vmem:[#allocation11 + $0x10] sm:$0xff]  }
 0x4e6   :  { %7698 = vmatprep.subr.bf16.mxu1 %v9854_v55  ;;  %v10419_v55 = vld [vmem:[#allocation11 + $0x58] sm:$0xff]  }
 0x4e7   :  { %8643 = vmatpush1.bf16.msra.mxu0 %v10368_v57  ;;  %v10420_v57 = vld [vmem:[#allocation11 + $0x18] sm:$0xff]  }
 0x4e8   :  { %8644 = vmatprep.subr.bf16.mxu0 %v10373_v1  ;;  %v10423_v1 = vld [vmem:[#allocation11 + $0x68] sm:$0xff]  }
 0x4e9   :  { %7699 = vmatpush1.bf16.msra.mxu1 %v9853_v63  ;;  %v10424_v63 = vld [vmem:[#allocation11 + $0x28] sm:$0xff]  }
 0x4ea   :  { %7700 = vmatprep.subr.bf16.mxu1 %v9862_v6  ;;  %v1275_v6 = vsub.s32 6, %v10756_v44 }
 0x4eb   :  { %8645 = vmatpush1.bf16.msra.mxu0 %v10371_v14  ;;  %v1279_v14 = vsub.s32 7, %v10756_v44 }
 0x4ec   :  { %8646 = vmatprep.subr.bf16.mxu0 %v10376_v46  ;;  %v1276_v3 = vrot.slane %v10430_v7, %v1275_v6 }
 0x4ed   :  { %7701 = vmatpush1.bf16.msra.mxu1 %v9861_v8  ;;  %v1280_v46 = vrot.slane %v10430_v7, %v1279_v14 }
 0x4ee   :  { %7702 = vmatprep.subr.bf16.mxu1 %v9870_v11 }
 0x4ef   :  { %8647 = vmatpush1.bf16.msra.mxu0 %v10374_v13 }
 0x4f0   :  { %8648 = vmatprep.subr.bf16.mxu0 %v10379_v12 }
 0x4f1   :  { %7703 = vmatpush1.bf16.msra.mxu1 %v9869_v26 }
 0x4f2   :  { %7704 = vmatprep.subr.bf16.mxu1 %v9878_v38 }
 0x4f3   :  { %8649 = vmatpush1.bf16.msra.mxu0 %v10377_v18 }
 0x4f4   :  { %8650 = vmatprep.subr.bf16.mxu0 %v10382_v21  ;;  %v10426_v21 = vld [vmem:[#allocation11 + $0x30] sm:$0xff]  }
 0x4f5   :  { %7705 = vmatpush1.bf16.msra.mxu1 %v9877_v25  ;;  %v10427_v25 = vld [vmem:[#allocation11 + $0x78] sm:$0xff]  }
 0x4f6   :  { %7706 = vmatprep.subr.bf16.mxu1 %v9886_v59  ;;  %v10428_v59 = vld [vmem:[#allocation11 + $0x38] sm:$0xff]  }
 0x4f7   :  { %8651 = vmatpush1.bf16.msra.mxu0 %v10380_v0  ;;  %v7865_v0 = vld [vmem:[#allocation10] sm:$0x3] }
 0x4f8   :  { %8652 = vmatprep.subr.bf16.mxu0 %v10385_v9  ;;  %v7870_v62 = vrot.slane %v7865_v0, %v1251_v4  ;;  %v7874_v23 = vrot.slane %v7865_v0, %v1255_v10 }
 0x4f9   :  { %7707 = vmatpush1.bf16.msra.mxu1 %v9885_v42 }
 0x4fa   :  { %7708 = vmatprep.subr.bf16.mxu1 %v9894_v27 }
 0x4fb   :  { %8653 = vmatpush1.bf16.msra.mxu0 %v10383_v49 }
 0x4fc   :  { %8654 = vmatprep.subr.bf16.mxu0 %v10388_v29 }
 0x4fd   :  { %7709 = vmatpush1.bf16.msra.mxu1 %v9893_v30 }
 0x4fe   :  { %7710 = vmatprep.subr.bf16.mxu1 %v9902_v31 }
 0x4ff   :  { %8655 = vmatpush1.bf16.msra.mxu0 %v10386_v32 }
 0x500   :  { %8656 = vmatprep.subr.bf16.mxu0 %v10391_v34 }
 0x501   :  { %7711 = vmatpush1.bf16.msra.mxu1 %v9901_v2  ;;  %v10031_v2 = vld [vmem:[#allocation13] ss:$0 sm:$0xff] }
 0x502   :  { %10048 = vmatprep.subr.bf16.mxu1 %v10413_v5 }
 0x503   :  { %8657 = vmatpush1.bf16.msra.mxu0 %v10389_v51 }
 0x504   :  { %8658 = vmatprep.subr.bf16.mxu0 %v10394_v35  ;;  %7713 = vmatmul.mubr.bf16.vlgmr.msra.gmra.mrb[8].mxu1 %v10893_v50  ;;  %v10412_v50 = vld [vmem:[#allocation8 + $0x3f4] ss:$8 sps:$4 sm:$0xff]  }
 0x505   :  { %10049 = vmatpush3.bf16.msra.mxu1 %v10414_v22 }
 0x506   :  { %10050 = vmatprep.subr.bf16.mxu1 %v10415_v36 }
 0x507   :  { %8659 = vmatpush1.bf16.msra.mxu0 %v10392_v39 }
 0x508   :  { %8660 = vmatprep.subr.bf16.mxu0 %v10397_v40 }
 0x509   :  { %10051 = vmatpush3.bf16.msra.mxu1 %v10416_v15 }
 0x50a   :  { %10052 = vmatprep.subr.bf16.mxu1 %v10417_v33 }
 0x50b   :  { %8661 = vmatpush1.bf16.msra.mxu0 %v10395_v43 }
 0x50c   :  { %8662 = vmatprep.subr.bf16.mxu0 %v10400_v37 }
 0x50d   :  { %10053 = vmatpush3.bf16.msra.mxu1 %v10418_v54 }
 0x50e   :  { %10054 = vmatprep.subr.bf16.mxu1 %v10419_v55 }
 0x50f   :  { %8663 = vmatpush1.bf16.msra.mxu0 %v10398_v16 }
 0x510   :  { %8664 = vmatprep.subr.bf16.mxu0 %v10403_v41 }
 0x511   :  { %10055 = vmatpush3.bf16.msra.mxu1 %v10420_v57 }
 0x512   :  { %10056 = vmatprep.subr.bf16.mxu1 %v10421_v58 }
 0x513   :  { %8665 = vmatpush1.bf16.msra.mxu0 %v10401_v56 }
 0x514   :  { %8666 = vmatprep.subr.bf16.mxu0 %v10406_v45 }
 0x515   :  { %10057 = vmatpush3.bf16.msra.mxu1 %v10422_v60 }
 0x516   :  { %10058 = vmatprep.subr.bf16.mxu1 %v10423_v1 }
 0x517   :  { %8667 = vmatpush1.bf16.msra.mxu0 %v10404_v48 }
 0x518   :  { %8668 = vmatprep.subr.bf16.mxu0 %v10409_v17 }
 0x519   :  { %10059 = vmatpush3.bf16.msra.mxu1 %v10424_v63 }
 0x51a   :  { %10060 = vmatprep.subr.bf16.mxu1 %v10425_v20 }
 0x51b   :  { %8669 = vmatpush1.bf16.msra.mxu0 %v10407_v52 }
 0x51c   :  { %8670 = vmatprep.subr.bf16.mxu0 %v10412_v50 }
 0x51d   :  { %10061 = vmatpush3.bf16.msra.mxu1 %v10426_v21 }
 0x51e   :  { %10062 = vmatprep.subr.bf16.mxu1 %v10427_v25 }
 0x51f   :  { %8671 = vmatpush1.bf16.msra.mxu0 %v10410_v53 }
 0x521   :  { %10063 = vmatpush3.bf16.msra.mxu1 %v10428_v59 }
 0x5d7   :  { %v7714_v8 = vpop.f32.mrb[8].mxu1 }
 0x5d8   :  { %v10078_v11 = vadd.f32 %v7714_v8, %v1276_v3  ;;  %v7716_v13 = vpop.f32.mrb[9].mxu1 }
 0x5d9   :  { %v10079_v61 = vadd.f32 %v7716_v13, %v1280_v46  ;;  %v7718_v24 = vpop.f32.mrb[10].mxu1 }
 0x5da   :  { %v7727_v12 = vmax.f32 %v10078_v11, 0.0  ;;  %v7719_v26 = vpop.f32.mrb[11].mxu1 }
 0x5db   :  { %v7728_v38 = vmax.f32 %v10079_v61, 0.0 }
 0x5dc   :  { %v7735_v19 = vpack.c.bf16 %v7727_v12, %v7727_v12 }
 0x5dd   :  { %v7736_v18 = vpack.c.bf16 %v7728_v38, %v7728_v38 }
 0x5df   :  { %8672 = vmatprep.mubr.bf16.mxu0 %v7736_v18 }
 0x5e0   :  { %8673 = vmatmul.mubr.bf16.vlgmr.msra.gmra.mrb[8].mxu0 %v7735_v19 }
 0x6b3   :  { %v8674_v9 = vpop.f32.mrb[8].mxu0 }
 0x6b4   :  { %v10080_v42 = vadd.f32 %v8674_v9, %v7870_v62  ;;  %v8676_v27 = vpop.f32.mrb[9].mxu0 }
 0x6b5   :  { %v10081_v49 = vadd.f32 %v8676_v27, %v7874_v23  ;;  %v8678_v47 = vpop.f32.mrb[10].mxu0 }
 0x6b6   :  { %v8681_v28 = vmax.f32 %v10080_v42, 0.0  ;;  %v8679_v29 = vpop.f32.mrb[11].mxu0 }
 0x6b7   :  { %v8682_v30 = vmax.f32 %v10081_v49, 0.0 }
 0x6b8   :  { %v8683_v32 = vpack.c.bf16 %v8681_v28, %v8681_v28 }
 0x6b9   :  { %v8684_v31 = vpack.c.bf16 %v8682_v30, %v8682_v30 }
 0x6bb   :  { %8852 = vmatprep.mubr.bf16.mxu1 %v8684_v31 }
 0x6bc   :  { %8853 = vmatmul.mubr.bf16.vlgmr.msra.gmra.mrb[12].mxu1 %v8683_v32 }
 0x78f   :  { %v10064_v34 = vpop.f32.mrb[12].mxu1 }
 0x790   :  { %v10065_v51 = vpop.f32.mrb[13].mxu1 }
 0x791   :  { %v10066_v4 = vadd.f32 %v10065_v51, %v10064_v34  ;;  %v10067_v44 = vpop.f32.mrb[14].mxu1 }
 0x792   :  { %v10068_v10 = vpop.f32.mrb[15].mxu1 }
 0x793   :  { %v8855_v35 = vadd.f32 %v10066_v4, %v10031_v2 }
 0x795   :  { %8860 = vst [vmem:[#allocation14] sm:$0x3] %v8855_v35 }
 0x796   :  { %10596 = shalt.err (!%p10593_p4)
}
 0x797   :  { %s10597_s15 = scalar_lea.hbm %s10992_s7, 32 }
 0x798   :  { %p10598_p5 = scmp.ne.s32.totalorder %s10992_s7, %s10597_s15  ;;  %p10601_p6 = scmp.lt.u32.totalorder %s10597_s15, %s10992_s7 }
 0x79a   :  { %p10603_p7 = pnand %p10601_p6, %p10598_p5 }
 0x79c   :  { %10606 = shalt.err (!%p10603_p7)
}
 0x79d   :  { %8870 = dma.vmem_to_hbm [thread:$0]  %s8868_s13, 32, %s10992_s7, [#allocation4]  }
 0x79e   :  { %10615 = dma.done.wait [#allocation4], 32  }
 0x79f   :  { %10616 = vsyncadd [#allocation4], 4294967264 }
 0x7a0   :  { %8874 = vsyncpa [#allocation3], 1 }
 0x7a1   :  { %8875 = vsyncpa [#allocation6], 1 }
 0x7a2   :  { %8876 = vsyncpa [#allocation9], 1 }
 0x7a3   :  { %8877 = vsyncpa [#allocation12], 1 }
 0x7a4   :  { %8878 = vsyncpa [#allocation4], 1 }

</bundles_post_ra>
